<compile_context>
chip_gen: v5e
topology: v5e:2x2
jax: 0.10.0
libtpu: 0.0.40
codegen_flags: <defaults>
</compile_context>

<pallas_src>
import math

import jax
import jax.numpy as jnp
from jax.experimental import pallas as pl
from jax.experimental.pallas import tpu as pltpu

# ---------------------------------------------------------------------------
# Small, module-consistent configuration
# ---------------------------------------------------------------------------
EMBED_DIMS = 32
NUM_HEADS = 8
HEAD_DIM = EMBED_DIMS // NUM_HEADS        # 4
NUM_LEVELS = 2
NUM_POINTS = 2
BEV_SHAPES = ((8, 8), (4, 4))             # (H, W) per level, static
NUM_VALUE = sum(h * w for h, w in BEV_SHAPES)   # 80
BS = 2
NUM_QUERY = 8
# fused (offset_x, offset_y, logit) projection width: (level, point, comp, head)
OA_COLS = NUM_LEVELS * NUM_POINTS * 3 * NUM_HEADS   # 96


# ---------------------------------------------------------------------------
# The single fused kernel (one grid step == one batch element)
# ---------------------------------------------------------------------------
def _fused_kernel(qsum_ref, qres_ref, v_ref, rp_ref,
                  wv_ref, bv_ref, woa_ref, boa_ref, wo_ref, bo_ref,
                  out_ref):
    nq = qsum_ref.shape[1]
    emb = qsum_ref.shape[2]
    nv = v_ref.shape[1]

    q = qsum_ref[0]            # (nq, E)   query + query_pos
    v_in = v_ref[0]            # (nv, E)
    rp = rp_ref[0]             # (nq, 2)   normalized reference points (x, y)

    # ---- value_proj (MXU #1) ----
    val = (jnp.dot(v_in, wv_ref[...], preferred_element_type=jnp.float32)
           + bv_ref[...])                                     # (nv, E)

    # ---- fused sampling_offsets + attention_weights projection (MXU #2) ----
    # Columns ordered (level, point, comp{x, y, logit}, head); the x/y offset
    # columns were pre-divided by the level (W, H), so they are already
    # normalized sampling-location deltas.
    oa = (jnp.dot(q, woa_ref[...], preferred_element_type=jnp.float32)
          + boa_ref[...])                                     # (nq, OA_COLS)

    ref_x = rp[:, 0:1]          # (nq, 1) -> broadcasts across head lanes
    ref_y = rp[:, 1:2]

    # softmax over (level, point) per (query, head), vectorized across heads
    nlp = NUM_LEVELS * NUM_POINTS
    logit_slabs = []
    for lp in range(nlp):
        base = lp * 3 * NUM_HEADS
        logit_slabs.append(oa[:, base + 2 * NUM_HEADS: base + 3 * NUM_HEADS])
    m = logit_slabs[0]
    for s in logit_slabs[1:]:
        m = jnp.maximum(m, s)
    exps = [jnp.exp(s - m) for s in logit_slabs]
    denom = exps[0]
    for s_e in exps[1:]:
        denom = denom + s_e
    inv_denom = 1.0 / denom                                   # exact softmax

    # bilinear corner coefficients + flat value-row indices, each (nq, NUM_HEADS)
    corner_terms = []
    start = 0
    for lvl, (h_l, w_l) in enumerate(BEV_SHAPES):
        for p in range(NUM_POINTS):
            lp = lvl * NUM_POINTS + p
            base = lp * 3 * NUM_HEADS
            off_x = oa[:, base: base + NUM_HEADS]
            off_y = oa[:, base + NUM_HEADS: base + 2 * NUM_HEADS]
            w_lp = exps[lp] * inv_denom                       # attention weights
            # grid_sample(align_corners=False) pixel coordinates
            px = (ref_x + off_x) * w_l - 0.5
            py = (ref_y + off_y) * h_l - 0.5
            x0 = jnp.floor(px)
            y0 = jnp.floor(py)
            fx = px - x0
            fy = py - y0
            x0i = x0.astype(jnp.int32)
            y0i = y0.astype(jnp.int32)
            for dx, dy, cf in ((0, 0, (1.0 - fx) * (1.0 - fy)),
                               (1, 0, fx * (1.0 - fy)),
                               (0, 1, (1.0 - fx) * fy),
                               (1, 1, fx * fy)):
                xi = x0i + dx
                yi = y0i + dy
                valid = (xi >= 0) & (xi < w_l) & (yi >= 0) & (yi < h_l)
                coef = jnp.where(valid, cf * w_lp, 0.0)       # OOB -> zero padding
                idx = (start
                       + jnp.clip(yi, 0, h_l - 1) * w_l
                       + jnp.clip(xi, 0, w_l - 1))
                corner_terms.append((idx, coef))
        start += h_l * w_l

    # one-hot scatter of the coefficients into a (NUM_HEADS*nq, nv) matrix,
    # then a single lane-dense gather matmul against the value slab (MXU #3).
    col_iota = jax.lax.broadcasted_iota(jnp.int32, (nq, nv), 1)
    a_rows = []
    for h in range(NUM_HEADS):
        a_h = jnp.zeros((nq, nv), jnp.float32)
        for idx, coef in corner_terms:
            a_h = a_h + jnp.where(idx[:, h:h + 1] == col_iota,
                                  coef[:, h:h + 1], 0.0)
        a_rows.append(a_h)
    a_mat = jnp.concatenate(a_rows, axis=0)                    # (NH*nq, nv)
    gathered = jnp.dot(a_mat, val,
                       preferred_element_type=jnp.float32)     # (NH*nq, E)

    # head-diagonal selection -> lane-dense (nq, E) attention output
    lane = jax.lax.broadcasted_iota(jnp.int32, (1, emb), 1)
    attn = jnp.zeros((nq, emb), jnp.float32)
    for h in range(NUM_HEADS):
        head_mask = ((lane >= h * HEAD_DIM)
                     & (lane < (h + 1) * HEAD_DIM)).astype(jnp.float32)
        attn = attn + gathered[h * nq:(h + 1) * nq, :] * head_mask

    # ---- output_proj (MXU #4) + residual ----
    out = (jnp.dot(attn, wo_ref[...], preferred_element_type=jnp.float32)
           + bo_ref[...])
    # TODO(synk): nn.Dropout is a no-op in eval/inference mode, so it is omitted.
    out_ref[0] = out + qres_ref[0]


# ---------------------------------------------------------------------------
# Parameter fusion: sampling_offsets + attention_weights -> one (E, 96) weight
# ---------------------------------------------------------------------------
def _fuse_offset_attention_params(params):
    e = EMBED_DIMS
    nh, nl, npts = NUM_HEADS, NUM_LEVELS, NUM_POINTS
    wl = jnp.asarray([s[1] for s in BEV_SHAPES], jnp.float32)   # widths  W_l
    hl = jnp.asarray([s[0] for s in BEV_SHAPES], jnp.float32)   # heights H_l
    norm = jnp.stack([wl, hl], axis=-1)                          # (L, 2) = (W, H)

    woff = params["w_off"].reshape(e, nh, nl, npts, 2) / norm[None, None, :, None, :]
    boff = params["b_off"].reshape(nh, nl, npts, 2) / norm[None, :, None, :]
    watt = params["w_att"].reshape(e, nh, nl, npts)
    batt = params["b_att"].reshape(nh, nl, npts)

    # target column order: ((level*P + point)*3 + comp)*NH + head
    w_stack = jnp.stack([woff[..., 0], woff[..., 1], watt], axis=-1)  # (E,NH,L,P,3)
    w_fused = jnp.transpose(w_stack, (0, 2, 3, 4, 1)).reshape(e, OA_COLS)
    b_stack = jnp.stack([boff[..., 0], boff[..., 1], batt], axis=-1)  # (NH,L,P,3)
    b_fused = jnp.transpose(b_stack, (1, 2, 3, 0)).reshape(1, OA_COLS)
    return w_fused, b_fused


# ---------------------------------------------------------------------------
# Full forward (eval mode), one fused pallas_call
# ---------------------------------------------------------------------------
@jax.jit
def pallas_forward(query, value, reference_points, query_pos, params):
    nq, bs, emb = query.shape
    nv = value.shape[0]

    # tiny seq-first -> batch-first layout plumbing kept in XLA
    query_t = jnp.transpose(query, (1, 0, 2))                   # (bs, nq, E)
    qsum_t = jnp.transpose(query + query_pos, (1, 0, 2))        # (bs, nq, E)
    value_t = jnp.transpose(value, (1, 0, 2))                   # (bs, nv, E)
    ref_xy = reference_points[..., :2]                          # (bs, nq, 2)

    w_fused, b_fused = _fuse_offset_attention_params(params)
    b_value = params["b_value"].reshape(1, emb)
    b_out = params["b_out"].reshape(1, emb)

    out_bm = pl.pallas_call(
        _fused_kernel,
        grid=(bs,),
        in_specs=[
            pl.BlockSpec((1, nq, emb), lambda b: (b, 0, 0)),    # query + pos
            pl.BlockSpec((1, nq, emb), lambda b: (b, 0, 0)),    # query (residual)
            pl.BlockSpec((1, nv, emb), lambda b: (b, 0, 0)),    # value
            pl.BlockSpec((1, nq, 2), lambda b: (b, 0, 0)),      # reference points
            pl.BlockSpec((emb, emb), lambda b: (0, 0)),         # w_value
            pl.BlockSpec((1, emb), lambda b: (0, 0)),           # b_value
            pl.BlockSpec((emb, OA_COLS), lambda b: (0, 0)),     # fused off+att W
            pl.BlockSpec((1, OA_COLS), lambda b: (0, 0)),       # fused off+att b
            pl.BlockSpec((emb, emb), lambda b: (0, 0)),         # w_out
            pl.BlockSpec((1, emb), lambda b: (0, 0)),           # b_out
        ],
        out_specs=pl.BlockSpec((1, nq, emb), lambda b: (b, 0, 0)),
        out_shape=jax.ShapeDtypeStruct((bs, nq, emb), jnp.float32),
        compiler_params=pltpu.CompilerParams(
            dimension_semantics=("parallel",)),
    )(qsum_t, query_t, value_t, ref_xy,
      params["w_value"], b_value, w_fused, b_fused, params["w_out"], b_out)

    return jnp.transpose(out_bm, (1, 0, 2))                     # (nq, bs, E)


# ---------------------------------------------------------------------------
# Pure-JAX reference (mirrors the PyTorch CPU path) for a correctness check
# ---------------------------------------------------------------------------
def reference_forward(query, value, reference_points, query_pos, params):
    identity = query
    q = jnp.transpose(query + query_pos, (1, 0, 2))
    v = jnp.transpose(value, (1, 0, 2))
    bs, nq, e = q.shape
    nv = v.shape[1]
    val = (v @ params["w_value"] + params["b_value"]).reshape(
        bs, nv, NUM_HEADS, HEAD_DIM)
    off = (q @ params["w_off"] + params["b_off"]).reshape(
        bs, nq, NUM_HEADS, NUM_LEVELS, NUM_POINTS, 2)
    logits = (q @ params["w_att"] + params["b_att"]).reshape(
        bs, nq, NUM_HEADS, NUM_LEVELS * NUM_POINTS)
    attw = jax.nn.softmax(logits, axis=-1).reshape(
        bs, nq, NUM_HEADS, NUM_LEVELS, NUM_POINTS)
    shapes = jnp.asarray(BEV_SHAPES, jnp.float32)
    norm = jnp.stack([shapes[:, 1], shapes[:, 0]], axis=-1)
    loc = reference_points[:, :, None, None, None, :2] + \
        off / norm[None, None, None, :, None, :]

    out = jnp.zeros((bs, NUM_HEADS, nq, HEAD_DIM), jnp.float32)
    start = 0
    for lvl, (h_l, w_l) in enumerate(BEV_SHAPES):
        hw = h_l * w_l
        v_l = jnp.transpose(val[:, start:start + hw], (0, 2, 1, 3))  # (bs,NH,hw,HD)
        x = loc[:, :, :, lvl, :, 0] * w_l - 0.5                      # (bs,nq,NH,P)
        y = loc[:, :, :, lvl, :, 1] * h_l - 0.5
        w_lp = attw[:, :, :, lvl, :]
        x0 = jnp.floor(x)
        y0 = jnp.floor(y)
        fx = x - x0
        fy = y - y0
        x0i = x0.astype(jnp.int32)
        y0i = y0.astype(jnp.int32)
        for dx, dy, cf in ((0, 0, (1 - fx) * (1 - fy)), (1, 0, fx * (1 - fy)),
                           (0, 1, (1 - fx) * fy), (1, 1, fx * fy)):
            xi = x0i + dx
            yi = y0i + dy
            valid = (xi >= 0) & (xi < w_l) & (yi >= 0) & (yi < h_l)
            coef = jnp.where(valid, cf * w_lp, 0.0)
            idx = jnp.clip(yi, 0, h_l - 1) * w_l + jnp.clip(xi, 0, w_l - 1)
            idx_t = jnp.transpose(idx, (0, 2, 1, 3)).reshape(
                bs, NUM_HEADS, nq * NUM_POINTS)
            idx_e = jnp.broadcast_to(
                idx_t[..., None], (bs, NUM_HEADS, nq * NUM_POINTS, HEAD_DIM))
            g = jnp.take_along_axis(v_l, idx_e, axis=2).reshape(
                bs, NUM_HEADS, nq, NUM_POINTS, HEAD_DIM)
            coef_t = jnp.transpose(coef, (0, 2, 1, 3))
            out = out + jnp.sum(g * coef_t[..., None], axis=3)
        start += hw
    out = jnp.transpose(out, (0, 2, 1, 3)).reshape(bs, nq, e)
    out = out @ params["w_out"] + params["b_out"]
    out = jnp.transpose(out, (1, 0, 2))
    return out + identity


# ---------------------------------------------------------------------------
# Deterministic parameter init (follows the module's init_weights)
# ---------------------------------------------------------------------------
def init_params(key):
    k_val, k_out = jax.random.split(key)

    def xavier(k, fan_in, fan_out):
        bound = math.sqrt(6.0 / (fan_in + fan_out))
        return jax.random.uniform(k, (fan_in, fan_out), jnp.float32, -bound, bound)

    w_value = xavier(k_val, EMBED_DIMS, EMBED_DIMS)
    b_value = jnp.zeros((EMBED_DIMS,), jnp.float32)
    w_out = xavier(k_out, EMBED_DIMS, EMBED_DIMS)
    b_out = jnp.zeros((EMBED_DIMS,), jnp.float32)

    n_att = NUM_HEADS * NUM_LEVELS * NUM_POINTS
    w_att = jnp.zeros((EMBED_DIMS, n_att), jnp.float32)
    b_att = jnp.zeros((n_att,), jnp.float32)

    w_off = jnp.zeros((EMBED_DIMS, n_att * 2), jnp.float32)
    thetas = jnp.arange(NUM_HEADS, dtype=jnp.float32) * (2.0 * math.pi / NUM_HEADS)
    grid = jnp.stack([jnp.cos(thetas), jnp.sin(thetas)], axis=-1)
    grid = grid / jnp.max(jnp.abs(grid), axis=-1, keepdims=True)
    grid = jnp.tile(grid[:, None, None, :], (1, NUM_LEVELS, NUM_POINTS, 1))
    grid = grid * jnp.arange(1, NUM_POINTS + 1, dtype=jnp.float32)[None, None, :, None]
    b_off = grid.reshape(-1)

    return dict(w_value=w_value, b_value=b_value,
                w_out=w_out, b_out=b_out,
                w_att=w_att, b_att=b_att,
                w_off=w_off, b_off=b_off)


if __name__ == "__main__":
    key = jax.random.PRNGKey(0)
    kq, kv, kr, kp, kparam, kw1, kw2 = jax.random.split(key, 7)
    query = jax.random.normal(kq, (NUM_QUERY, BS, EMBED_DIMS), jnp.float32)
    value = jax.random.normal(kv, (NUM_VALUE, BS, EMBED_DIMS), jnp.float32)
    query_pos = 0.1 * jax.random.normal(kp, (NUM_QUERY, BS, EMBED_DIMS), jnp.float32)
    reference_points = jax.random.uniform(kr, (BS, NUM_QUERY, 3), jnp.float32)

    params = init_params(kparam)
    # The module zero-inits sampling_offsets / attention_weights weights; add a
    # small perturbation so the correctness check exercises the fused projection.
    params["w_off"] = params["w_off"] + 0.05 * jax.random.normal(
        kw1, params["w_off"].shape, jnp.float32)
    params["w_att"] = params["w_att"] + 0.5 * jax.random.normal(
        kw2, params["w_att"].shape, jnp.float32)

    out = pallas_forward(query, value, reference_points, query_pos, params)
    out = jax.block_until_ready(out)
    assert out.shape == (NUM_QUERY, BS, EMBED_DIMS)

    ref = reference_forward(query, value, reference_points, query_pos, params)
    err = float(jnp.max(jnp.abs(out - ref)))
    assert err < 2e-3, f"mismatch vs reference: {err}"
    print("KERNEL_OK")
</pallas_src>

<mosaic_0001>
module attributes {stable_mosaic.version = 11 : i64} {
  func.func @_fused_kernel(%arg0: i32, %arg1: memref<1x8x32xf32, #tpu.memory_space<vmem>>, %arg2: memref<1x8x32xf32, #tpu.memory_space<vmem>>, %arg3: memref<1x80x32xf32, #tpu.memory_space<vmem>>, %arg4: memref<1x8x2xf32, #tpu.memory_space<vmem>>, %arg5: memref<32x32xf32, #tpu.memory_space<vmem>>, %arg6: memref<1x32xf32, #tpu.memory_space<vmem>>, %arg7: memref<32x96xf32, #tpu.memory_space<vmem>>, %arg8: memref<1x96xf32, #tpu.memory_space<vmem>>, %arg9: memref<32x32xf32, #tpu.memory_space<vmem>>, %arg10: memref<1x32xf32, #tpu.memory_space<vmem>>, %arg11: memref<1x8x32xf32, #tpu.memory_space<vmem>>) attributes {dimension_semantics = [#tpu.dimension_semantics<parallel>], iteration_bounds = array<i64: 2>, scalar_prefetch = 0 : i64, scratch_operands = 0 : i64, tpu.core_type = #tpu.core_type<tc>, window_params = [{transform_indices = @transform_0, window_bounds = array<i64: 1, 8, 32>}, {transform_indices = @transform_1, window_bounds = array<i64: 1, 8, 32>}, {transform_indices = @transform_2, window_bounds = array<i64: 1, 80, 32>}, {transform_indices = @transform_3, window_bounds = array<i64: 1, 8, 2>}, {pipeline_mode = #tpu.pipeline_mode<synchronous>, transform_indices = @transform_4, window_bounds = array<i64: 32, 32>}, {pipeline_mode = #tpu.pipeline_mode<synchronous>, transform_indices = @transform_5, window_bounds = array<i64: 1, 32>}, {pipeline_mode = #tpu.pipeline_mode<synchronous>, transform_indices = @transform_6, window_bounds = array<i64: 32, 96>}, {pipeline_mode = #tpu.pipeline_mode<synchronous>, transform_indices = @transform_7, window_bounds = array<i64: 1, 96>}, {pipeline_mode = #tpu.pipeline_mode<synchronous>, transform_indices = @transform_8, window_bounds = array<i64: 32, 32>}, {pipeline_mode = #tpu.pipeline_mode<synchronous>, transform_indices = @transform_9, window_bounds = array<i64: 1, 32>}, {transform_indices = @transform_10, window_bounds = array<i64: 1, 8, 32>}]} {
    %c0 = arith.constant 0 : index
    %c0_0 = arith.constant 0 : index
    %c0_1 = arith.constant 0 : index
    %0 = vector.load %arg1[%c0, %c0_0, %c0_1] : memref<1x8x32xf32, #tpu.memory_space<vmem>>, vector<1x8x32xf32>
    %1 = vector.shape_cast %0 : vector<1x8x32xf32> to vector<8x32xf32>
    %c0_2 = arith.constant 0 : index
    %c0_3 = arith.constant 0 : index
    %c0_4 = arith.constant 0 : index
    %2 = vector.load %arg3[%c0_2, %c0_3, %c0_4] : memref<1x80x32xf32, #tpu.memory_space<vmem>>, vector<1x80x32xf32>
    %3 = vector.shape_cast %2 : vector<1x80x32xf32> to vector<80x32xf32>
    %c0_5 = arith.constant 0 : index
    %c0_6 = arith.constant 0 : index
    %c0_7 = arith.constant 0 : index
    %4 = vector.load %arg4[%c0_5, %c0_6, %c0_7] : memref<1x8x2xf32, #tpu.memory_space<vmem>>, vector<1x8x2xf32>
    %5 = vector.shape_cast %4 : vector<1x8x2xf32> to vector<8x2xf32>
    %c0_8 = arith.constant 0 : index
    %c0_9 = arith.constant 0 : index
    %6 = vector.load %arg5[%c0_8, %c0_9] : memref<32x32xf32, #tpu.memory_space<vmem>>, vector<32x32xf32>
    %cst = arith.constant dense<0.000000e+00> : vector<80x32xf32>
    %7 = tpu.matmul %3, %6, %cst {dimension_numbers = #tpu.dot_dimension_numbers<[1], [0], [0], [1], [0, 0, 1, 1], [], []>} : vector<80x32xf32>, vector<32x32xf32>, vector<80x32xf32> -> vector<80x32xf32>
    %c0_10 = arith.constant 0 : index
    %c0_11 = arith.constant 0 : index
    %8 = vector.load %arg6[%c0_10, %c0_11] : memref<1x32xf32, #tpu.memory_space<vmem>>, vector<1x32xf32>
    %9 = vector.broadcast %8 : vector<1x32xf32> to vector<80x32xf32>
    %10 = arith.addf %7, %9 : vector<80x32xf32>
    %c0_12 = arith.constant 0 : index
    %c0_13 = arith.constant 0 : index
    %11 = vector.load %arg7[%c0_12, %c0_13] : memref<32x96xf32, #tpu.memory_space<vmem>>, vector<32x96xf32>
    %cst_14 = arith.constant dense<0.000000e+00> : vector<8x96xf32>
    %12 = tpu.matmul %1, %11, %cst_14 {dimension_numbers = #tpu.dot_dimension_numbers<[1], [0], [0], [1], [0, 0, 1, 1], [], []>} : vector<8x32xf32>, vector<32x96xf32>, vector<8x96xf32> -> vector<8x96xf32>
    %c0_15 = arith.constant 0 : index
    %c0_16 = arith.constant 0 : index
    %13 = vector.load %arg8[%c0_15, %c0_16] : memref<1x96xf32, #tpu.memory_space<vmem>>, vector<1x96xf32>
    %14 = vector.broadcast %13 : vector<1x96xf32> to vector<8x96xf32>
    %15 = arith.addf %12, %14 : vector<8x96xf32>
    %16 = vector.extract_strided_slice %5 {offsets = [0, 0], sizes = [8, 1], strides = [1, 1]} : vector<8x2xf32> to vector<8x1xf32>
    %17 = vector.extract_strided_slice %5 {offsets = [0, 1], sizes = [8, 1], strides = [1, 1]} : vector<8x2xf32> to vector<8x1xf32>
    %18 = vector.extract_strided_slice %15 {offsets = [0, 16], sizes = [8, 8], strides = [1, 1]} : vector<8x96xf32> to vector<8x8xf32>
    %19 = vector.extract_strided_slice %15 {offsets = [0, 40], sizes = [8, 8], strides = [1, 1]} : vector<8x96xf32> to vector<8x8xf32>
    %20 = vector.extract_strided_slice %15 {offsets = [0, 64], sizes = [8, 8], strides = [1, 1]} : vector<8x96xf32> to vector<8x8xf32>
    %21 = vector.extract_strided_slice %15 {offsets = [0, 88], sizes = [8, 8], strides = [1, 1]} : vector<8x96xf32> to vector<8x8xf32>
    %22 = arith.maximumf %18, %19 : vector<8x8xf32>
    %23 = arith.maximumf %22, %20 : vector<8x8xf32>
    %24 = arith.maximumf %23, %21 : vector<8x8xf32>
    %25 = arith.subf %18, %24 : vector<8x8xf32>
    %26 = math.exp %25 : vector<8x8xf32>
    %27 = arith.subf %19, %24 : vector<8x8xf32>
    %28 = math.exp %27 : vector<8x8xf32>
    %29 = arith.subf %20, %24 : vector<8x8xf32>
    %30 = math.exp %29 : vector<8x8xf32>
    %31 = arith.subf %21, %24 : vector<8x8xf32>
    %32 = math.exp %31 : vector<8x8xf32>
    %33 = arith.addf %26, %28 : vector<8x8xf32>
    %34 = arith.addf %33, %30 : vector<8x8xf32>
    %35 = arith.addf %34, %32 : vector<8x8xf32>
    %cst_17 = arith.constant 1.000000e+00 : f32
    %36 = vector.broadcast %cst_17 : f32 to vector<8x8xf32>
    %37 = arith.divf %36, %35 : vector<8x8xf32>
    %38 = vector.extract_strided_slice %15 {offsets = [0, 0], sizes = [8, 8], strides = [1, 1]} : vector<8x96xf32> to vector<8x8xf32>
    %39 = vector.extract_strided_slice %15 {offsets = [0, 8], sizes = [8, 8], strides = [1, 1]} : vector<8x96xf32> to vector<8x8xf32>
    %40 = arith.mulf %26, %37 : vector<8x8xf32>
    %41 = vector.broadcast %16 : vector<8x1xf32> to vector<8x8xf32>
    %42 = arith.addf %41, %38 : vector<8x8xf32>
    %cst_18 = arith.constant 8.000000e+00 : f32
    %43 = vector.broadcast %cst_18 : f32 to vector<8x8xf32>
    %44 = arith.mulf %42, %43 : vector<8x8xf32>
    %cst_19 = arith.constant 5.000000e-01 : f32
    %45 = vector.broadcast %cst_19 : f32 to vector<8x8xf32>
    %46 = arith.subf %44, %45 : vector<8x8xf32>
    %47 = vector.broadcast %17 : vector<8x1xf32> to vector<8x8xf32>
    %48 = arith.addf %47, %39 : vector<8x8xf32>
    %cst_20 = arith.constant 8.000000e+00 : f32
    %49 = vector.broadcast %cst_20 : f32 to vector<8x8xf32>
    %50 = arith.mulf %48, %49 : vector<8x8xf32>
    %cst_21 = arith.constant 5.000000e-01 : f32
    %51 = vector.broadcast %cst_21 : f32 to vector<8x8xf32>
    %52 = arith.subf %50, %51 : vector<8x8xf32>
    %53 = math.floor %46 : vector<8x8xf32>
    %54 = math.floor %52 : vector<8x8xf32>
    %55 = arith.subf %46, %53 : vector<8x8xf32>
    %56 = arith.subf %52, %54 : vector<8x8xf32>
    %57 = arith.fptosi %53 : vector<8x8xf32> to vector<8x8xi32>
    %58 = arith.fptosi %54 : vector<8x8xf32> to vector<8x8xi32>
    %cst_22 = arith.constant 1.000000e+00 : f32
    %59 = vector.broadcast %cst_22 : f32 to vector<8x8xf32>
    %60 = arith.subf %59, %55 : vector<8x8xf32>
    %cst_23 = arith.constant 1.000000e+00 : f32
    %61 = vector.broadcast %cst_23 : f32 to vector<8x8xf32>
    %62 = arith.subf %61, %56 : vector<8x8xf32>
    %63 = arith.mulf %60, %62 : vector<8x8xf32>
    %cst_24 = arith.constant 1.000000e+00 : f32
    %64 = vector.broadcast %cst_24 : f32 to vector<8x8xf32>
    %65 = arith.subf %64, %56 : vector<8x8xf32>
    %66 = arith.mulf %55, %65 : vector<8x8xf32>
    %cst_25 = arith.constant 1.000000e+00 : f32
    %67 = vector.broadcast %cst_25 : f32 to vector<8x8xf32>
    %68 = arith.subf %67, %55 : vector<8x8xf32>
    %69 = arith.mulf %68, %56 : vector<8x8xf32>
    %70 = arith.mulf %55, %56 : vector<8x8xf32>
    %c0_i32 = arith.constant 0 : i32
    %71 = vector.broadcast %c0_i32 : i32 to vector<8x8xi32>
    %72 = arith.addi %57, %71 : vector<8x8xi32>
    %c0_i32_26 = arith.constant 0 : i32
    %73 = vector.broadcast %c0_i32_26 : i32 to vector<8x8xi32>
    %74 = arith.addi %58, %73 : vector<8x8xi32>
    %c0_i32_27 = arith.constant 0 : i32
    %75 = vector.broadcast %c0_i32_27 : i32 to vector<8x8xi32>
    %76 = arith.cmpi sge, %72, %75 : vector<8x8xi32>
    %c8_i32 = arith.constant 8 : i32
    %77 = vector.broadcast %c8_i32 : i32 to vector<8x8xi32>
    %78 = arith.cmpi slt, %72, %77 : vector<8x8xi32>
    %79 = arith.andi %76, %78 : vector<8x8xi1>
    %c0_i32_28 = arith.constant 0 : i32
    %80 = vector.broadcast %c0_i32_28 : i32 to vector<8x8xi32>
    %81 = arith.cmpi sge, %74, %80 : vector<8x8xi32>
    %82 = arith.andi %79, %81 : vector<8x8xi1>
    %c8_i32_29 = arith.constant 8 : i32
    %83 = vector.broadcast %c8_i32_29 : i32 to vector<8x8xi32>
    %84 = arith.cmpi slt, %74, %83 : vector<8x8xi32>
    %85 = arith.andi %82, %84 : vector<8x8xi1>
    %86 = arith.mulf %63, %40 : vector<8x8xf32>
    %cst_30 = arith.constant 0.000000e+00 : f32
    %87 = vector.broadcast %cst_30 : f32 to vector<8x8xf32>
    %88 = arith.select %85, %86, %87 : vector<8x8xi1>, vector<8x8xf32>
    %c0_i32_31 = arith.constant 0 : i32
    %c7_i32 = arith.constant 7 : i32
    %89 = vector.broadcast %c0_i32_31 : i32 to vector<8x8xi32>
    %90 = arith.maxsi %89, %74 : vector<8x8xi32>
    %91 = vector.broadcast %c7_i32 : i32 to vector<8x8xi32>
    %92 = arith.minsi %91, %90 : vector<8x8xi32>
    %c8_i32_32 = arith.constant 8 : i32
    %93 = vector.broadcast %c8_i32_32 : i32 to vector<8x8xi32>
    %94 = arith.muli %92, %93 : vector<8x8xi32>
    %c0_i32_33 = arith.constant 0 : i32
    %95 = vector.broadcast %c0_i32_33 : i32 to vector<8x8xi32>
    %96 = arith.addi %95, %94 : vector<8x8xi32>
    %c0_i32_34 = arith.constant 0 : i32
    %c7_i32_35 = arith.constant 7 : i32
    %97 = vector.broadcast %c0_i32_34 : i32 to vector<8x8xi32>
    %98 = arith.maxsi %97, %72 : vector<8x8xi32>
    %99 = vector.broadcast %c7_i32_35 : i32 to vector<8x8xi32>
    %100 = arith.minsi %99, %98 : vector<8x8xi32>
    %101 = arith.addi %96, %100 : vector<8x8xi32>
    %c1_i32 = arith.constant 1 : i32
    %102 = vector.broadcast %c1_i32 : i32 to vector<8x8xi32>
    %103 = arith.addi %57, %102 : vector<8x8xi32>
    %c0_i32_36 = arith.constant 0 : i32
    %104 = vector.broadcast %c0_i32_36 : i32 to vector<8x8xi32>
    %105 = arith.addi %58, %104 : vector<8x8xi32>
    %c0_i32_37 = arith.constant 0 : i32
    %106 = vector.broadcast %c0_i32_37 : i32 to vector<8x8xi32>
    %107 = arith.cmpi sge, %103, %106 : vector<8x8xi32>
    %c8_i32_38 = arith.constant 8 : i32
    %108 = vector.broadcast %c8_i32_38 : i32 to vector<8x8xi32>
    %109 = arith.cmpi slt, %103, %108 : vector<8x8xi32>
    %110 = arith.andi %107, %109 : vector<8x8xi1>
    %c0_i32_39 = arith.constant 0 : i32
    %111 = vector.broadcast %c0_i32_39 : i32 to vector<8x8xi32>
    %112 = arith.cmpi sge, %105, %111 : vector<8x8xi32>
    %113 = arith.andi %110, %112 : vector<8x8xi1>
    %c8_i32_40 = arith.constant 8 : i32
    %114 = vector.broadcast %c8_i32_40 : i32 to vector<8x8xi32>
    %115 = arith.cmpi slt, %105, %114 : vector<8x8xi32>
    %116 = arith.andi %113, %115 : vector<8x8xi1>
    %117 = arith.mulf %66, %40 : vector<8x8xf32>
    %cst_41 = arith.constant 0.000000e+00 : f32
    %118 = vector.broadcast %cst_41 : f32 to vector<8x8xf32>
    %119 = arith.select %116, %117, %118 : vector<8x8xi1>, vector<8x8xf32>
    %c0_i32_42 = arith.constant 0 : i32
    %c7_i32_43 = arith.constant 7 : i32
    %120 = vector.broadcast %c0_i32_42 : i32 to vector<8x8xi32>
    %121 = arith.maxsi %120, %105 : vector<8x8xi32>
    %122 = vector.broadcast %c7_i32_43 : i32 to vector<8x8xi32>
    %123 = arith.minsi %122, %121 : vector<8x8xi32>
    %c8_i32_44 = arith.constant 8 : i32
    %124 = vector.broadcast %c8_i32_44 : i32 to vector<8x8xi32>
    %125 = arith.muli %123, %124 : vector<8x8xi32>
    %c0_i32_45 = arith.constant 0 : i32
    %126 = vector.broadcast %c0_i32_45 : i32 to vector<8x8xi32>
    %127 = arith.addi %126, %125 : vector<8x8xi32>
    %c0_i32_46 = arith.constant 0 : i32
    %c7_i32_47 = arith.constant 7 : i32
    %128 = vector.broadcast %c0_i32_46 : i32 to vector<8x8xi32>
    %129 = arith.maxsi %128, %103 : vector<8x8xi32>
    %130 = vector.broadcast %c7_i32_47 : i32 to vector<8x8xi32>
    %131 = arith.minsi %130, %129 : vector<8x8xi32>
    %132 = arith.addi %127, %131 : vector<8x8xi32>
    %c0_i32_48 = arith.constant 0 : i32
    %133 = vector.broadcast %c0_i32_48 : i32 to vector<8x8xi32>
    %134 = arith.addi %57, %133 : vector<8x8xi32>
    %c1_i32_49 = arith.constant 1 : i32
    %135 = vector.broadcast %c1_i32_49 : i32 to vector<8x8xi32>
    %136 = arith.addi %58, %135 : vector<8x8xi32>
    %c0_i32_50 = arith.constant 0 : i32
    %137 = vector.broadcast %c0_i32_50 : i32 to vector<8x8xi32>
    %138 = arith.cmpi sge, %134, %137 : vector<8x8xi32>
    %c8_i32_51 = arith.constant 8 : i32
    %139 = vector.broadcast %c8_i32_51 : i32 to vector<8x8xi32>
    %140 = arith.cmpi slt, %134, %139 : vector<8x8xi32>
    %141 = arith.andi %138, %140 : vector<8x8xi1>
    %c0_i32_52 = arith.constant 0 : i32
    %142 = vector.broadcast %c0_i32_52 : i32 to vector<8x8xi32>
    %143 = arith.cmpi sge, %136, %142 : vector<8x8xi32>
    %144 = arith.andi %141, %143 : vector<8x8xi1>
    %c8_i32_53 = arith.constant 8 : i32
    %145 = vector.broadcast %c8_i32_53 : i32 to vector<8x8xi32>
    %146 = arith.cmpi slt, %136, %145 : vector<8x8xi32>
    %147 = arith.andi %144, %146 : vector<8x8xi1>
    %148 = arith.mulf %69, %40 : vector<8x8xf32>
    %cst_54 = arith.constant 0.000000e+00 : f32
    %149 = vector.broadcast %cst_54 : f32 to vector<8x8xf32>
    %150 = arith.select %147, %148, %149 : vector<8x8xi1>, vector<8x8xf32>
    %c0_i32_55 = arith.constant 0 : i32
    %c7_i32_56 = arith.constant 7 : i32
    %151 = vector.broadcast %c0_i32_55 : i32 to vector<8x8xi32>
    %152 = arith.maxsi %151, %136 : vector<8x8xi32>
    %153 = vector.broadcast %c7_i32_56 : i32 to vector<8x8xi32>
    %154 = arith.minsi %153, %152 : vector<8x8xi32>
    %c8_i32_57 = arith.constant 8 : i32
    %155 = vector.broadcast %c8_i32_57 : i32 to vector<8x8xi32>
    %156 = arith.muli %154, %155 : vector<8x8xi32>
    %c0_i32_58 = arith.constant 0 : i32
    %157 = vector.broadcast %c0_i32_58 : i32 to vector<8x8xi32>
    %158 = arith.addi %157, %156 : vector<8x8xi32>
    %c0_i32_59 = arith.constant 0 : i32
    %c7_i32_60 = arith.constant 7 : i32
    %159 = vector.broadcast %c0_i32_59 : i32 to vector<8x8xi32>
    %160 = arith.maxsi %159, %134 : vector<8x8xi32>
    %161 = vector.broadcast %c7_i32_60 : i32 to vector<8x8xi32>
    %162 = arith.minsi %161, %160 : vector<8x8xi32>
    %163 = arith.addi %158, %162 : vector<8x8xi32>
    %c1_i32_61 = arith.constant 1 : i32
    %164 = vector.broadcast %c1_i32_61 : i32 to vector<8x8xi32>
    %165 = arith.addi %57, %164 : vector<8x8xi32>
    %c1_i32_62 = arith.constant 1 : i32
    %166 = vector.broadcast %c1_i32_62 : i32 to vector<8x8xi32>
    %167 = arith.addi %58, %166 : vector<8x8xi32>
    %c0_i32_63 = arith.constant 0 : i32
    %168 = vector.broadcast %c0_i32_63 : i32 to vector<8x8xi32>
    %169 = arith.cmpi sge, %165, %168 : vector<8x8xi32>
    %c8_i32_64 = arith.constant 8 : i32
    %170 = vector.broadcast %c8_i32_64 : i32 to vector<8x8xi32>
    %171 = arith.cmpi slt, %165, %170 : vector<8x8xi32>
    %172 = arith.andi %169, %171 : vector<8x8xi1>
    %c0_i32_65 = arith.constant 0 : i32
    %173 = vector.broadcast %c0_i32_65 : i32 to vector<8x8xi32>
    %174 = arith.cmpi sge, %167, %173 : vector<8x8xi32>
    %175 = arith.andi %172, %174 : vector<8x8xi1>
    %c8_i32_66 = arith.constant 8 : i32
    %176 = vector.broadcast %c8_i32_66 : i32 to vector<8x8xi32>
    %177 = arith.cmpi slt, %167, %176 : vector<8x8xi32>
    %178 = arith.andi %175, %177 : vector<8x8xi1>
    %179 = arith.mulf %70, %40 : vector<8x8xf32>
    %cst_67 = arith.constant 0.000000e+00 : f32
    %180 = vector.broadcast %cst_67 : f32 to vector<8x8xf32>
    %181 = arith.select %178, %179, %180 : vector<8x8xi1>, vector<8x8xf32>
    %c0_i32_68 = arith.constant 0 : i32
    %c7_i32_69 = arith.constant 7 : i32
    %182 = vector.broadcast %c0_i32_68 : i32 to vector<8x8xi32>
    %183 = arith.maxsi %182, %167 : vector<8x8xi32>
    %184 = vector.broadcast %c7_i32_69 : i32 to vector<8x8xi32>
    %185 = arith.minsi %184, %183 : vector<8x8xi32>
    %c8_i32_70 = arith.constant 8 : i32
    %186 = vector.broadcast %c8_i32_70 : i32 to vector<8x8xi32>
    %187 = arith.muli %185, %186 : vector<8x8xi32>
    %c0_i32_71 = arith.constant 0 : i32
    %188 = vector.broadcast %c0_i32_71 : i32 to vector<8x8xi32>
    %189 = arith.addi %188, %187 : vector<8x8xi32>
    %c0_i32_72 = arith.constant 0 : i32
    %c7_i32_73 = arith.constant 7 : i32
    %190 = vector.broadcast %c0_i32_72 : i32 to vector<8x8xi32>
    %191 = arith.maxsi %190, %165 : vector<8x8xi32>
    %192 = vector.broadcast %c7_i32_73 : i32 to vector<8x8xi32>
    %193 = arith.minsi %192, %191 : vector<8x8xi32>
    %194 = arith.addi %189, %193 : vector<8x8xi32>
    %195 = vector.extract_strided_slice %15 {offsets = [0, 24], sizes = [8, 8], strides = [1, 1]} : vector<8x96xf32> to vector<8x8xf32>
    %196 = vector.extract_strided_slice %15 {offsets = [0, 32], sizes = [8, 8], strides = [1, 1]} : vector<8x96xf32> to vector<8x8xf32>
    %197 = arith.mulf %28, %37 : vector<8x8xf32>
    %198 = vector.broadcast %16 : vector<8x1xf32> to vector<8x8xf32>
    %199 = arith.addf %198, %195 : vector<8x8xf32>
    %cst_74 = arith.constant 8.000000e+00 : f32
    %200 = vector.broadcast %cst_74 : f32 to vector<8x8xf32>
    %201 = arith.mulf %199, %200 : vector<8x8xf32>
    %cst_75 = arith.constant 5.000000e-01 : f32
    %202 = vector.broadcast %cst_75 : f32 to vector<8x8xf32>
    %203 = arith.subf %201, %202 : vector<8x8xf32>
    %204 = vector.broadcast %17 : vector<8x1xf32> to vector<8x8xf32>
    %205 = arith.addf %204, %196 : vector<8x8xf32>
    %cst_76 = arith.constant 8.000000e+00 : f32
    %206 = vector.broadcast %cst_76 : f32 to vector<8x8xf32>
    %207 = arith.mulf %205, %206 : vector<8x8xf32>
    %cst_77 = arith.constant 5.000000e-01 : f32
    %208 = vector.broadcast %cst_77 : f32 to vector<8x8xf32>
    %209 = arith.subf %207, %208 : vector<8x8xf32>
    %210 = math.floor %203 : vector<8x8xf32>
    %211 = math.floor %209 : vector<8x8xf32>
    %212 = arith.subf %203, %210 : vector<8x8xf32>
    %213 = arith.subf %209, %211 : vector<8x8xf32>
    %214 = arith.fptosi %210 : vector<8x8xf32> to vector<8x8xi32>
    %215 = arith.fptosi %211 : vector<8x8xf32> to vector<8x8xi32>
    %cst_78 = arith.constant 1.000000e+00 : f32
    %216 = vector.broadcast %cst_78 : f32 to vector<8x8xf32>
    %217 = arith.subf %216, %212 : vector<8x8xf32>
    %cst_79 = arith.constant 1.000000e+00 : f32
    %218 = vector.broadcast %cst_79 : f32 to vector<8x8xf32>
    %219 = arith.subf %218, %213 : vector<8x8xf32>
    %220 = arith.mulf %217, %219 : vector<8x8xf32>
    %cst_80 = arith.constant 1.000000e+00 : f32
    %221 = vector.broadcast %cst_80 : f32 to vector<8x8xf32>
    %222 = arith.subf %221, %213 : vector<8x8xf32>
    %223 = arith.mulf %212, %222 : vector<8x8xf32>
    %cst_81 = arith.constant 1.000000e+00 : f32
    %224 = vector.broadcast %cst_81 : f32 to vector<8x8xf32>
    %225 = arith.subf %224, %212 : vector<8x8xf32>
    %226 = arith.mulf %225, %213 : vector<8x8xf32>
    %227 = arith.mulf %212, %213 : vector<8x8xf32>
    %c0_i32_82 = arith.constant 0 : i32
    %228 = vector.broadcast %c0_i32_82 : i32 to vector<8x8xi32>
    %229 = arith.addi %214, %228 : vector<8x8xi32>
    %c0_i32_83 = arith.constant 0 : i32
    %230 = vector.broadcast %c0_i32_83 : i32 to vector<8x8xi32>
    %231 = arith.addi %215, %230 : vector<8x8xi32>
    %c0_i32_84 = arith.constant 0 : i32
    %232 = vector.broadcast %c0_i32_84 : i32 to vector<8x8xi32>
    %233 = arith.cmpi sge, %229, %232 : vector<8x8xi32>
    %c8_i32_85 = arith.constant 8 : i32
    %234 = vector.broadcast %c8_i32_85 : i32 to vector<8x8xi32>
    %235 = arith.cmpi slt, %229, %234 : vector<8x8xi32>
    %236 = arith.andi %233, %235 : vector<8x8xi1>
    %c0_i32_86 = arith.constant 0 : i32
    %237 = vector.broadcast %c0_i32_86 : i32 to vector<8x8xi32>
    %238 = arith.cmpi sge, %231, %237 : vector<8x8xi32>
    %239 = arith.andi %236, %238 : vector<8x8xi1>
    %c8_i32_87 = arith.constant 8 : i32
    %240 = vector.broadcast %c8_i32_87 : i32 to vector<8x8xi32>
    %241 = arith.cmpi slt, %231, %240 : vector<8x8xi32>
    %242 = arith.andi %239, %241 : vector<8x8xi1>
    %243 = arith.mulf %220, %197 : vector<8x8xf32>
    %cst_88 = arith.constant 0.000000e+00 : f32
    %244 = vector.broadcast %cst_88 : f32 to vector<8x8xf32>
    %245 = arith.select %242, %243, %244 : vector<8x8xi1>, vector<8x8xf32>
    %c0_i32_89 = arith.constant 0 : i32
    %c7_i32_90 = arith.constant 7 : i32
    %246 = vector.broadcast %c0_i32_89 : i32 to vector<8x8xi32>
    %247 = arith.maxsi %246, %231 : vector<8x8xi32>
    %248 = vector.broadcast %c7_i32_90 : i32 to vector<8x8xi32>
    %249 = arith.minsi %248, %247 : vector<8x8xi32>
    %c8_i32_91 = arith.constant 8 : i32
    %250 = vector.broadcast %c8_i32_91 : i32 to vector<8x8xi32>
    %251 = arith.muli %249, %250 : vector<8x8xi32>
    %c0_i32_92 = arith.constant 0 : i32
    %252 = vector.broadcast %c0_i32_92 : i32 to vector<8x8xi32>
    %253 = arith.addi %252, %251 : vector<8x8xi32>
    %c0_i32_93 = arith.constant 0 : i32
    %c7_i32_94 = arith.constant 7 : i32
    %254 = vector.broadcast %c0_i32_93 : i32 to vector<8x8xi32>
    %255 = arith.maxsi %254, %229 : vector<8x8xi32>
    %256 = vector.broadcast %c7_i32_94 : i32 to vector<8x8xi32>
    %257 = arith.minsi %256, %255 : vector<8x8xi32>
    %258 = arith.addi %253, %257 : vector<8x8xi32>
    %c1_i32_95 = arith.constant 1 : i32
    %259 = vector.broadcast %c1_i32_95 : i32 to vector<8x8xi32>
    %260 = arith.addi %214, %259 : vector<8x8xi32>
    %c0_i32_96 = arith.constant 0 : i32
    %261 = vector.broadcast %c0_i32_96 : i32 to vector<8x8xi32>
    %262 = arith.addi %215, %261 : vector<8x8xi32>
    %c0_i32_97 = arith.constant 0 : i32
    %263 = vector.broadcast %c0_i32_97 : i32 to vector<8x8xi32>
    %264 = arith.cmpi sge, %260, %263 : vector<8x8xi32>
    %c8_i32_98 = arith.constant 8 : i32
    %265 = vector.broadcast %c8_i32_98 : i32 to vector<8x8xi32>
    %266 = arith.cmpi slt, %260, %265 : vector<8x8xi32>
    %267 = arith.andi %264, %266 : vector<8x8xi1>
    %c0_i32_99 = arith.constant 0 : i32
    %268 = vector.broadcast %c0_i32_99 : i32 to vector<8x8xi32>
    %269 = arith.cmpi sge, %262, %268 : vector<8x8xi32>
    %270 = arith.andi %267, %269 : vector<8x8xi1>
    %c8_i32_100 = arith.constant 8 : i32
    %271 = vector.broadcast %c8_i32_100 : i32 to vector<8x8xi32>
    %272 = arith.cmpi slt, %262, %271 : vector<8x8xi32>
    %273 = arith.andi %270, %272 : vector<8x8xi1>
    %274 = arith.mulf %223, %197 : vector<8x8xf32>
    %cst_101 = arith.constant 0.000000e+00 : f32
    %275 = vector.broadcast %cst_101 : f32 to vector<8x8xf32>
    %276 = arith.select %273, %274, %275 : vector<8x8xi1>, vector<8x8xf32>
    %c0_i32_102 = arith.constant 0 : i32
    %c7_i32_103 = arith.constant 7 : i32
    %277 = vector.broadcast %c0_i32_102 : i32 to vector<8x8xi32>
    %278 = arith.maxsi %277, %262 : vector<8x8xi32>
    %279 = vector.broadcast %c7_i32_103 : i32 to vector<8x8xi32>
    %280 = arith.minsi %279, %278 : vector<8x8xi32>
    %c8_i32_104 = arith.constant 8 : i32
    %281 = vector.broadcast %c8_i32_104 : i32 to vector<8x8xi32>
    %282 = arith.muli %280, %281 : vector<8x8xi32>
    %c0_i32_105 = arith.constant 0 : i32
    %283 = vector.broadcast %c0_i32_105 : i32 to vector<8x8xi32>
    %284 = arith.addi %283, %282 : vector<8x8xi32>
    %c0_i32_106 = arith.constant 0 : i32
    %c7_i32_107 = arith.constant 7 : i32
    %285 = vector.broadcast %c0_i32_106 : i32 to vector<8x8xi32>
    %286 = arith.maxsi %285, %260 : vector<8x8xi32>
    %287 = vector.broadcast %c7_i32_107 : i32 to vector<8x8xi32>
    %288 = arith.minsi %287, %286 : vector<8x8xi32>
    %289 = arith.addi %284, %288 : vector<8x8xi32>
    %c0_i32_108 = arith.constant 0 : i32
    %290 = vector.broadcast %c0_i32_108 : i32 to vector<8x8xi32>
    %291 = arith.addi %214, %290 : vector<8x8xi32>
    %c1_i32_109 = arith.constant 1 : i32
    %292 = vector.broadcast %c1_i32_109 : i32 to vector<8x8xi32>
    %293 = arith.addi %215, %292 : vector<8x8xi32>
    %c0_i32_110 = arith.constant 0 : i32
    %294 = vector.broadcast %c0_i32_110 : i32 to vector<8x8xi32>
    %295 = arith.cmpi sge, %291, %294 : vector<8x8xi32>
    %c8_i32_111 = arith.constant 8 : i32
    %296 = vector.broadcast %c8_i32_111 : i32 to vector<8x8xi32>
    %297 = arith.cmpi slt, %291, %296 : vector<8x8xi32>
    %298 = arith.andi %295, %297 : vector<8x8xi1>
    %c0_i32_112 = arith.constant 0 : i32
    %299 = vector.broadcast %c0_i32_112 : i32 to vector<8x8xi32>
    %300 = arith.cmpi sge, %293, %299 : vector<8x8xi32>
    %301 = arith.andi %298, %300 : vector<8x8xi1>
    %c8_i32_113 = arith.constant 8 : i32
    %302 = vector.broadcast %c8_i32_113 : i32 to vector<8x8xi32>
    %303 = arith.cmpi slt, %293, %302 : vector<8x8xi32>
    %304 = arith.andi %301, %303 : vector<8x8xi1>
    %305 = arith.mulf %226, %197 : vector<8x8xf32>
    %cst_114 = arith.constant 0.000000e+00 : f32
    %306 = vector.broadcast %cst_114 : f32 to vector<8x8xf32>
    %307 = arith.select %304, %305, %306 : vector<8x8xi1>, vector<8x8xf32>
    %c0_i32_115 = arith.constant 0 : i32
    %c7_i32_116 = arith.constant 7 : i32
    %308 = vector.broadcast %c0_i32_115 : i32 to vector<8x8xi32>
    %309 = arith.maxsi %308, %293 : vector<8x8xi32>
    %310 = vector.broadcast %c7_i32_116 : i32 to vector<8x8xi32>
    %311 = arith.minsi %310, %309 : vector<8x8xi32>
    %c8_i32_117 = arith.constant 8 : i32
    %312 = vector.broadcast %c8_i32_117 : i32 to vector<8x8xi32>
    %313 = arith.muli %311, %312 : vector<8x8xi32>
    %c0_i32_118 = arith.constant 0 : i32
    %314 = vector.broadcast %c0_i32_118 : i32 to vector<8x8xi32>
    %315 = arith.addi %314, %313 : vector<8x8xi32>
    %c0_i32_119 = arith.constant 0 : i32
    %c7_i32_120 = arith.constant 7 : i32
    %316 = vector.broadcast %c0_i32_119 : i32 to vector<8x8xi32>
    %317 = arith.maxsi %316, %291 : vector<8x8xi32>
    %318 = vector.broadcast %c7_i32_120 : i32 to vector<8x8xi32>
    %319 = arith.minsi %318, %317 : vector<8x8xi32>
    %320 = arith.addi %315, %319 : vector<8x8xi32>
    %c1_i32_121 = arith.constant 1 : i32
    %321 = vector.broadcast %c1_i32_121 : i32 to vector<8x8xi32>
    %322 = arith.addi %214, %321 : vector<8x8xi32>
    %c1_i32_122 = arith.constant 1 : i32
    %323 = vector.broadcast %c1_i32_122 : i32 to vector<8x8xi32>
    %324 = arith.addi %215, %323 : vector<8x8xi32>
    %c0_i32_123 = arith.constant 0 : i32
    %325 = vector.broadcast %c0_i32_123 : i32 to vector<8x8xi32>
    %326 = arith.cmpi sge, %322, %325 : vector<8x8xi32>
    %c8_i32_124 = arith.constant 8 : i32
    %327 = vector.broadcast %c8_i32_124 : i32 to vector<8x8xi32>
    %328 = arith.cmpi slt, %322, %327 : vector<8x8xi32>
    %329 = arith.andi %326, %328 : vector<8x8xi1>
    %c0_i32_125 = arith.constant 0 : i32
    %330 = vector.broadcast %c0_i32_125 : i32 to vector<8x8xi32>
    %331 = arith.cmpi sge, %324, %330 : vector<8x8xi32>
    %332 = arith.andi %329, %331 : vector<8x8xi1>
    %c8_i32_126 = arith.constant 8 : i32
    %333 = vector.broadcast %c8_i32_126 : i32 to vector<8x8xi32>
    %334 = arith.cmpi slt, %324, %333 : vector<8x8xi32>
    %335 = arith.andi %332, %334 : vector<8x8xi1>
    %336 = arith.mulf %227, %197 : vector<8x8xf32>
    %cst_127 = arith.constant 0.000000e+00 : f32
    %337 = vector.broadcast %cst_127 : f32 to vector<8x8xf32>
    %338 = arith.select %335, %336, %337 : vector<8x8xi1>, vector<8x8xf32>
    %c0_i32_128 = arith.constant 0 : i32
    %c7_i32_129 = arith.constant 7 : i32
    %339 = vector.broadcast %c0_i32_128 : i32 to vector<8x8xi32>
    %340 = arith.maxsi %339, %324 : vector<8x8xi32>
    %341 = vector.broadcast %c7_i32_129 : i32 to vector<8x8xi32>
    %342 = arith.minsi %341, %340 : vector<8x8xi32>
    %c8_i32_130 = arith.constant 8 : i32
    %343 = vector.broadcast %c8_i32_130 : i32 to vector<8x8xi32>
    %344 = arith.muli %342, %343 : vector<8x8xi32>
    %c0_i32_131 = arith.constant 0 : i32
    %345 = vector.broadcast %c0_i32_131 : i32 to vector<8x8xi32>
    %346 = arith.addi %345, %344 : vector<8x8xi32>
    %c0_i32_132 = arith.constant 0 : i32
    %c7_i32_133 = arith.constant 7 : i32
    %347 = vector.broadcast %c0_i32_132 : i32 to vector<8x8xi32>
    %348 = arith.maxsi %347, %322 : vector<8x8xi32>
    %349 = vector.broadcast %c7_i32_133 : i32 to vector<8x8xi32>
    %350 = arith.minsi %349, %348 : vector<8x8xi32>
    %351 = arith.addi %346, %350 : vector<8x8xi32>
    %352 = vector.extract_strided_slice %15 {offsets = [0, 48], sizes = [8, 8], strides = [1, 1]} : vector<8x96xf32> to vector<8x8xf32>
    %353 = vector.extract_strided_slice %15 {offsets = [0, 56], sizes = [8, 8], strides = [1, 1]} : vector<8x96xf32> to vector<8x8xf32>
    %354 = arith.mulf %30, %37 : vector<8x8xf32>
    %355 = vector.broadcast %16 : vector<8x1xf32> to vector<8x8xf32>
    %356 = arith.addf %355, %352 : vector<8x8xf32>
    %cst_134 = arith.constant 4.000000e+00 : f32
    %357 = vector.broadcast %cst_134 : f32 to vector<8x8xf32>
    %358 = arith.mulf %356, %357 : vector<8x8xf32>
    %cst_135 = arith.constant 5.000000e-01 : f32
    %359 = vector.broadcast %cst_135 : f32 to vector<8x8xf32>
    %360 = arith.subf %358, %359 : vector<8x8xf32>
    %361 = vector.broadcast %17 : vector<8x1xf32> to vector<8x8xf32>
    %362 = arith.addf %361, %353 : vector<8x8xf32>
    %cst_136 = arith.constant 4.000000e+00 : f32
    %363 = vector.broadcast %cst_136 : f32 to vector<8x8xf32>
    %364 = arith.mulf %362, %363 : vector<8x8xf32>
    %cst_137 = arith.constant 5.000000e-01 : f32
    %365 = vector.broadcast %cst_137 : f32 to vector<8x8xf32>
    %366 = arith.subf %364, %365 : vector<8x8xf32>
    %367 = math.floor %360 : vector<8x8xf32>
    %368 = math.floor %366 : vector<8x8xf32>
    %369 = arith.subf %360, %367 : vector<8x8xf32>
    %370 = arith.subf %366, %368 : vector<8x8xf32>
    %371 = arith.fptosi %367 : vector<8x8xf32> to vector<8x8xi32>
    %372 = arith.fptosi %368 : vector<8x8xf32> to vector<8x8xi32>
    %cst_138 = arith.constant 1.000000e+00 : f32
    %373 = vector.broadcast %cst_138 : f32 to vector<8x8xf32>
    %374 = arith.subf %373, %369 : vector<8x8xf32>
    %cst_139 = arith.constant 1.000000e+00 : f32
    %375 = vector.broadcast %cst_139 : f32 to vector<8x8xf32>
    %376 = arith.subf %375, %370 : vector<8x8xf32>
    %377 = arith.mulf %374, %376 : vector<8x8xf32>
    %cst_140 = arith.constant 1.000000e+00 : f32
    %378 = vector.broadcast %cst_140 : f32 to vector<8x8xf32>
    %379 = arith.subf %378, %370 : vector<8x8xf32>
    %380 = arith.mulf %369, %379 : vector<8x8xf32>
    %cst_141 = arith.constant 1.000000e+00 : f32
    %381 = vector.broadcast %cst_141 : f32 to vector<8x8xf32>
    %382 = arith.subf %381, %369 : vector<8x8xf32>
    %383 = arith.mulf %382, %370 : vector<8x8xf32>
    %384 = arith.mulf %369, %370 : vector<8x8xf32>
    %c0_i32_142 = arith.constant 0 : i32
    %385 = vector.broadcast %c0_i32_142 : i32 to vector<8x8xi32>
    %386 = arith.addi %371, %385 : vector<8x8xi32>
    %c0_i32_143 = arith.constant 0 : i32
    %387 = vector.broadcast %c0_i32_143 : i32 to vector<8x8xi32>
    %388 = arith.addi %372, %387 : vector<8x8xi32>
    %c0_i32_144 = arith.constant 0 : i32
    %389 = vector.broadcast %c0_i32_144 : i32 to vector<8x8xi32>
    %390 = arith.cmpi sge, %386, %389 : vector<8x8xi32>
    %c4_i32 = arith.constant 4 : i32
    %391 = vector.broadcast %c4_i32 : i32 to vector<8x8xi32>
    %392 = arith.cmpi slt, %386, %391 : vector<8x8xi32>
    %393 = arith.andi %390, %392 : vector<8x8xi1>
    %c0_i32_145 = arith.constant 0 : i32
    %394 = vector.broadcast %c0_i32_145 : i32 to vector<8x8xi32>
    %395 = arith.cmpi sge, %388, %394 : vector<8x8xi32>
    %396 = arith.andi %393, %395 : vector<8x8xi1>
    %c4_i32_146 = arith.constant 4 : i32
    %397 = vector.broadcast %c4_i32_146 : i32 to vector<8x8xi32>
    %398 = arith.cmpi slt, %388, %397 : vector<8x8xi32>
    %399 = arith.andi %396, %398 : vector<8x8xi1>
    %400 = arith.mulf %377, %354 : vector<8x8xf32>
    %cst_147 = arith.constant 0.000000e+00 : f32
    %401 = vector.broadcast %cst_147 : f32 to vector<8x8xf32>
    %402 = arith.select %399, %400, %401 : vector<8x8xi1>, vector<8x8xf32>
    %c0_i32_148 = arith.constant 0 : i32
    %c3_i32 = arith.constant 3 : i32
    %403 = vector.broadcast %c0_i32_148 : i32 to vector<8x8xi32>
    %404 = arith.maxsi %403, %388 : vector<8x8xi32>
    %405 = vector.broadcast %c3_i32 : i32 to vector<8x8xi32>
    %406 = arith.minsi %405, %404 : vector<8x8xi32>
    %c4_i32_149 = arith.constant 4 : i32
    %407 = vector.broadcast %c4_i32_149 : i32 to vector<8x8xi32>
    %408 = arith.muli %406, %407 : vector<8x8xi32>
    %c64_i32 = arith.constant 64 : i32
    %409 = vector.broadcast %c64_i32 : i32 to vector<8x8xi32>
    %410 = arith.addi %409, %408 : vector<8x8xi32>
    %c0_i32_150 = arith.constant 0 : i32
    %c3_i32_151 = arith.constant 3 : i32
    %411 = vector.broadcast %c0_i32_150 : i32 to vector<8x8xi32>
    %412 = arith.maxsi %411, %386 : vector<8x8xi32>
    %413 = vector.broadcast %c3_i32_151 : i32 to vector<8x8xi32>
    %414 = arith.minsi %413, %412 : vector<8x8xi32>
    %415 = arith.addi %410, %414 : vector<8x8xi32>
    %c1_i32_152 = arith.constant 1 : i32
    %416 = vector.broadcast %c1_i32_152 : i32 to vector<8x8xi32>
    %417 = arith.addi %371, %416 : vector<8x8xi32>
    %c0_i32_153 = arith.constant 0 : i32
    %418 = vector.broadcast %c0_i32_153 : i32 to vector<8x8xi32>
    %419 = arith.addi %372, %418 : vector<8x8xi32>
    %c0_i32_154 = arith.constant 0 : i32
    %420 = vector.broadcast %c0_i32_154 : i32 to vector<8x8xi32>
    %421 = arith.cmpi sge, %417, %420 : vector<8x8xi32>
    %c4_i32_155 = arith.constant 4 : i32
    %422 = vector.broadcast %c4_i32_155 : i32 to vector<8x8xi32>
    %423 = arith.cmpi slt, %417, %422 : vector<8x8xi32>
    %424 = arith.andi %421, %423 : vector<8x8xi1>
    %c0_i32_156 = arith.constant 0 : i32
    %425 = vector.broadcast %c0_i32_156 : i32 to vector<8x8xi32>
    %426 = arith.cmpi sge, %419, %425 : vector<8x8xi32>
    %427 = arith.andi %424, %426 : vector<8x8xi1>
    %c4_i32_157 = arith.constant 4 : i32
    %428 = vector.broadcast %c4_i32_157 : i32 to vector<8x8xi32>
    %429 = arith.cmpi slt, %419, %428 : vector<8x8xi32>
    %430 = arith.andi %427, %429 : vector<8x8xi1>
    %431 = arith.mulf %380, %354 : vector<8x8xf32>
    %cst_158 = arith.constant 0.000000e+00 : f32
    %432 = vector.broadcast %cst_158 : f32 to vector<8x8xf32>
    %433 = arith.select %430, %431, %432 : vector<8x8xi1>, vector<8x8xf32>
    %c0_i32_159 = arith.constant 0 : i32
    %c3_i32_160 = arith.constant 3 : i32
    %434 = vector.broadcast %c0_i32_159 : i32 to vector<8x8xi32>
    %435 = arith.maxsi %434, %419 : vector<8x8xi32>
    %436 = vector.broadcast %c3_i32_160 : i32 to vector<8x8xi32>
    %437 = arith.minsi %436, %435 : vector<8x8xi32>
    %c4_i32_161 = arith.constant 4 : i32
    %438 = vector.broadcast %c4_i32_161 : i32 to vector<8x8xi32>
    %439 = arith.muli %437, %438 : vector<8x8xi32>
    %c64_i32_162 = arith.constant 64 : i32
    %440 = vector.broadcast %c64_i32_162 : i32 to vector<8x8xi32>
    %441 = arith.addi %440, %439 : vector<8x8xi32>
    %c0_i32_163 = arith.constant 0 : i32
    %c3_i32_164 = arith.constant 3 : i32
    %442 = vector.broadcast %c0_i32_163 : i32 to vector<8x8xi32>
    %443 = arith.maxsi %442, %417 : vector<8x8xi32>
    %444 = vector.broadcast %c3_i32_164 : i32 to vector<8x8xi32>
    %445 = arith.minsi %444, %443 : vector<8x8xi32>
    %446 = arith.addi %441, %445 : vector<8x8xi32>
    %c0_i32_165 = arith.constant 0 : i32
    %447 = vector.broadcast %c0_i32_165 : i32 to vector<8x8xi32>
    %448 = arith.addi %371, %447 : vector<8x8xi32>
    %c1_i32_166 = arith.constant 1 : i32
    %449 = vector.broadcast %c1_i32_166 : i32 to vector<8x8xi32>
    %450 = arith.addi %372, %449 : vector<8x8xi32>
    %c0_i32_167 = arith.constant 0 : i32
    %451 = vector.broadcast %c0_i32_167 : i32 to vector<8x8xi32>
    %452 = arith.cmpi sge, %448, %451 : vector<8x8xi32>
    %c4_i32_168 = arith.constant 4 : i32
    %453 = vector.broadcast %c4_i32_168 : i32 to vector<8x8xi32>
    %454 = arith.cmpi slt, %448, %453 : vector<8x8xi32>
    %455 = arith.andi %452, %454 : vector<8x8xi1>
    %c0_i32_169 = arith.constant 0 : i32
    %456 = vector.broadcast %c0_i32_169 : i32 to vector<8x8xi32>
    %457 = arith.cmpi sge, %450, %456 : vector<8x8xi32>
    %458 = arith.andi %455, %457 : vector<8x8xi1>
    %c4_i32_170 = arith.constant 4 : i32
    %459 = vector.broadcast %c4_i32_170 : i32 to vector<8x8xi32>
    %460 = arith.cmpi slt, %450, %459 : vector<8x8xi32>
    %461 = arith.andi %458, %460 : vector<8x8xi1>
    %462 = arith.mulf %383, %354 : vector<8x8xf32>
    %cst_171 = arith.constant 0.000000e+00 : f32
    %463 = vector.broadcast %cst_171 : f32 to vector<8x8xf32>
    %464 = arith.select %461, %462, %463 : vector<8x8xi1>, vector<8x8xf32>
    %c0_i32_172 = arith.constant 0 : i32
    %c3_i32_173 = arith.constant 3 : i32
    %465 = vector.broadcast %c0_i32_172 : i32 to vector<8x8xi32>
    %466 = arith.maxsi %465, %450 : vector<8x8xi32>
    %467 = vector.broadcast %c3_i32_173 : i32 to vector<8x8xi32>
    %468 = arith.minsi %467, %466 : vector<8x8xi32>
    %c4_i32_174 = arith.constant 4 : i32
    %469 = vector.broadcast %c4_i32_174 : i32 to vector<8x8xi32>
    %470 = arith.muli %468, %469 : vector<8x8xi32>
    %c64_i32_175 = arith.constant 64 : i32
    %471 = vector.broadcast %c64_i32_175 : i32 to vector<8x8xi32>
    %472 = arith.addi %471, %470 : vector<8x8xi32>
    %c0_i32_176 = arith.constant 0 : i32
    %c3_i32_177 = arith.constant 3 : i32
    %473 = vector.broadcast %c0_i32_176 : i32 to vector<8x8xi32>
    %474 = arith.maxsi %473, %448 : vector<8x8xi32>
    %475 = vector.broadcast %c3_i32_177 : i32 to vector<8x8xi32>
    %476 = arith.minsi %475, %474 : vector<8x8xi32>
    %477 = arith.addi %472, %476 : vector<8x8xi32>
    %c1_i32_178 = arith.constant 1 : i32
    %478 = vector.broadcast %c1_i32_178 : i32 to vector<8x8xi32>
    %479 = arith.addi %371, %478 : vector<8x8xi32>
    %c1_i32_179 = arith.constant 1 : i32
    %480 = vector.broadcast %c1_i32_179 : i32 to vector<8x8xi32>
    %481 = arith.addi %372, %480 : vector<8x8xi32>
    %c0_i32_180 = arith.constant 0 : i32
    %482 = vector.broadcast %c0_i32_180 : i32 to vector<8x8xi32>
    %483 = arith.cmpi sge, %479, %482 : vector<8x8xi32>
    %c4_i32_181 = arith.constant 4 : i32
    %484 = vector.broadcast %c4_i32_181 : i32 to vector<8x8xi32>
    %485 = arith.cmpi slt, %479, %484 : vector<8x8xi32>
    %486 = arith.andi %483, %485 : vector<8x8xi1>
    %c0_i32_182 = arith.constant 0 : i32
    %487 = vector.broadcast %c0_i32_182 : i32 to vector<8x8xi32>
    %488 = arith.cmpi sge, %481, %487 : vector<8x8xi32>
    %489 = arith.andi %486, %488 : vector<8x8xi1>
    %c4_i32_183 = arith.constant 4 : i32
    %490 = vector.broadcast %c4_i32_183 : i32 to vector<8x8xi32>
    %491 = arith.cmpi slt, %481, %490 : vector<8x8xi32>
    %492 = arith.andi %489, %491 : vector<8x8xi1>
    %493 = arith.mulf %384, %354 : vector<8x8xf32>
    %cst_184 = arith.constant 0.000000e+00 : f32
    %494 = vector.broadcast %cst_184 : f32 to vector<8x8xf32>
    %495 = arith.select %492, %493, %494 : vector<8x8xi1>, vector<8x8xf32>
    %c0_i32_185 = arith.constant 0 : i32
    %c3_i32_186 = arith.constant 3 : i32
    %496 = vector.broadcast %c0_i32_185 : i32 to vector<8x8xi32>
    %497 = arith.maxsi %496, %481 : vector<8x8xi32>
    %498 = vector.broadcast %c3_i32_186 : i32 to vector<8x8xi32>
    %499 = arith.minsi %498, %497 : vector<8x8xi32>
    %c4_i32_187 = arith.constant 4 : i32
    %500 = vector.broadcast %c4_i32_187 : i32 to vector<8x8xi32>
    %501 = arith.muli %499, %500 : vector<8x8xi32>
    %c64_i32_188 = arith.constant 64 : i32
    %502 = vector.broadcast %c64_i32_188 : i32 to vector<8x8xi32>
    %503 = arith.addi %502, %501 : vector<8x8xi32>
    %c0_i32_189 = arith.constant 0 : i32
    %c3_i32_190 = arith.constant 3 : i32
    %504 = vector.broadcast %c0_i32_189 : i32 to vector<8x8xi32>
    %505 = arith.maxsi %504, %479 : vector<8x8xi32>
    %506 = vector.broadcast %c3_i32_190 : i32 to vector<8x8xi32>
    %507 = arith.minsi %506, %505 : vector<8x8xi32>
    %508 = arith.addi %503, %507 : vector<8x8xi32>
    %509 = vector.extract_strided_slice %15 {offsets = [0, 72], sizes = [8, 8], strides = [1, 1]} : vector<8x96xf32> to vector<8x8xf32>
    %510 = vector.extract_strided_slice %15 {offsets = [0, 80], sizes = [8, 8], strides = [1, 1]} : vector<8x96xf32> to vector<8x8xf32>
    %511 = arith.mulf %32, %37 : vector<8x8xf32>
    %512 = vector.broadcast %16 : vector<8x1xf32> to vector<8x8xf32>
    %513 = arith.addf %512, %509 : vector<8x8xf32>
    %cst_191 = arith.constant 4.000000e+00 : f32
    %514 = vector.broadcast %cst_191 : f32 to vector<8x8xf32>
    %515 = arith.mulf %513, %514 : vector<8x8xf32>
    %cst_192 = arith.constant 5.000000e-01 : f32
    %516 = vector.broadcast %cst_192 : f32 to vector<8x8xf32>
    %517 = arith.subf %515, %516 : vector<8x8xf32>
    %518 = vector.broadcast %17 : vector<8x1xf32> to vector<8x8xf32>
    %519 = arith.addf %518, %510 : vector<8x8xf32>
    %cst_193 = arith.constant 4.000000e+00 : f32
    %520 = vector.broadcast %cst_193 : f32 to vector<8x8xf32>
    %521 = arith.mulf %519, %520 : vector<8x8xf32>
    %cst_194 = arith.constant 5.000000e-01 : f32
    %522 = vector.broadcast %cst_194 : f32 to vector<8x8xf32>
    %523 = arith.subf %521, %522 : vector<8x8xf32>
    %524 = math.floor %517 : vector<8x8xf32>
    %525 = math.floor %523 : vector<8x8xf32>
    %526 = arith.subf %517, %524 : vector<8x8xf32>
    %527 = arith.subf %523, %525 : vector<8x8xf32>
    %528 = arith.fptosi %524 : vector<8x8xf32> to vector<8x8xi32>
    %529 = arith.fptosi %525 : vector<8x8xf32> to vector<8x8xi32>
    %cst_195 = arith.constant 1.000000e+00 : f32
    %530 = vector.broadcast %cst_195 : f32 to vector<8x8xf32>
    %531 = arith.subf %530, %526 : vector<8x8xf32>
    %cst_196 = arith.constant 1.000000e+00 : f32
    %532 = vector.broadcast %cst_196 : f32 to vector<8x8xf32>
    %533 = arith.subf %532, %527 : vector<8x8xf32>
    %534 = arith.mulf %531, %533 : vector<8x8xf32>
    %cst_197 = arith.constant 1.000000e+00 : f32
    %535 = vector.broadcast %cst_197 : f32 to vector<8x8xf32>
    %536 = arith.subf %535, %527 : vector<8x8xf32>
    %537 = arith.mulf %526, %536 : vector<8x8xf32>
    %cst_198 = arith.constant 1.000000e+00 : f32
    %538 = vector.broadcast %cst_198 : f32 to vector<8x8xf32>
    %539 = arith.subf %538, %526 : vector<8x8xf32>
    %540 = arith.mulf %539, %527 : vector<8x8xf32>
    %541 = arith.mulf %526, %527 : vector<8x8xf32>
    %c0_i32_199 = arith.constant 0 : i32
    %542 = vector.broadcast %c0_i32_199 : i32 to vector<8x8xi32>
    %543 = arith.addi %528, %542 : vector<8x8xi32>
    %c0_i32_200 = arith.constant 0 : i32
    %544 = vector.broadcast %c0_i32_200 : i32 to vector<8x8xi32>
    %545 = arith.addi %529, %544 : vector<8x8xi32>
    %c0_i32_201 = arith.constant 0 : i32
    %546 = vector.broadcast %c0_i32_201 : i32 to vector<8x8xi32>
    %547 = arith.cmpi sge, %543, %546 : vector<8x8xi32>
    %c4_i32_202 = arith.constant 4 : i32
    %548 = vector.broadcast %c4_i32_202 : i32 to vector<8x8xi32>
    %549 = arith.cmpi slt, %543, %548 : vector<8x8xi32>
    %550 = arith.andi %547, %549 : vector<8x8xi1>
    %c0_i32_203 = arith.constant 0 : i32
    %551 = vector.broadcast %c0_i32_203 : i32 to vector<8x8xi32>
    %552 = arith.cmpi sge, %545, %551 : vector<8x8xi32>
    %553 = arith.andi %550, %552 : vector<8x8xi1>
    %c4_i32_204 = arith.constant 4 : i32
    %554 = vector.broadcast %c4_i32_204 : i32 to vector<8x8xi32>
    %555 = arith.cmpi slt, %545, %554 : vector<8x8xi32>
    %556 = arith.andi %553, %555 : vector<8x8xi1>
    %557 = arith.mulf %534, %511 : vector<8x8xf32>
    %cst_205 = arith.constant 0.000000e+00 : f32
    %558 = vector.broadcast %cst_205 : f32 to vector<8x8xf32>
    %559 = arith.select %556, %557, %558 : vector<8x8xi1>, vector<8x8xf32>
    %c0_i32_206 = arith.constant 0 : i32
    %c3_i32_207 = arith.constant 3 : i32
    %560 = vector.broadcast %c0_i32_206 : i32 to vector<8x8xi32>
    %561 = arith.maxsi %560, %545 : vector<8x8xi32>
    %562 = vector.broadcast %c3_i32_207 : i32 to vector<8x8xi32>
    %563 = arith.minsi %562, %561 : vector<8x8xi32>
    %c4_i32_208 = arith.constant 4 : i32
    %564 = vector.broadcast %c4_i32_208 : i32 to vector<8x8xi32>
    %565 = arith.muli %563, %564 : vector<8x8xi32>
    %c64_i32_209 = arith.constant 64 : i32
    %566 = vector.broadcast %c64_i32_209 : i32 to vector<8x8xi32>
    %567 = arith.addi %566, %565 : vector<8x8xi32>
    %c0_i32_210 = arith.constant 0 : i32
    %c3_i32_211 = arith.constant 3 : i32
    %568 = vector.broadcast %c0_i32_210 : i32 to vector<8x8xi32>
    %569 = arith.maxsi %568, %543 : vector<8x8xi32>
    %570 = vector.broadcast %c3_i32_211 : i32 to vector<8x8xi32>
    %571 = arith.minsi %570, %569 : vector<8x8xi32>
    %572 = arith.addi %567, %571 : vector<8x8xi32>
    %c1_i32_212 = arith.constant 1 : i32
    %573 = vector.broadcast %c1_i32_212 : i32 to vector<8x8xi32>
    %574 = arith.addi %528, %573 : vector<8x8xi32>
    %c0_i32_213 = arith.constant 0 : i32
    %575 = vector.broadcast %c0_i32_213 : i32 to vector<8x8xi32>
    %576 = arith.addi %529, %575 : vector<8x8xi32>
    %c0_i32_214 = arith.constant 0 : i32
    %577 = vector.broadcast %c0_i32_214 : i32 to vector<8x8xi32>
    %578 = arith.cmpi sge, %574, %577 : vector<8x8xi32>
    %c4_i32_215 = arith.constant 4 : i32
    %579 = vector.broadcast %c4_i32_215 : i32 to vector<8x8xi32>
    %580 = arith.cmpi slt, %574, %579 : vector<8x8xi32>
    %581 = arith.andi %578, %580 : vector<8x8xi1>
    %c0_i32_216 = arith.constant 0 : i32
    %582 = vector.broadcast %c0_i32_216 : i32 to vector<8x8xi32>
    %583 = arith.cmpi sge, %576, %582 : vector<8x8xi32>
    %584 = arith.andi %581, %583 : vector<8x8xi1>
    %c4_i32_217 = arith.constant 4 : i32
    %585 = vector.broadcast %c4_i32_217 : i32 to vector<8x8xi32>
    %586 = arith.cmpi slt, %576, %585 : vector<8x8xi32>
    %587 = arith.andi %584, %586 : vector<8x8xi1>
    %588 = arith.mulf %537, %511 : vector<8x8xf32>
    %cst_218 = arith.constant 0.000000e+00 : f32
    %589 = vector.broadcast %cst_218 : f32 to vector<8x8xf32>
    %590 = arith.select %587, %588, %589 : vector<8x8xi1>, vector<8x8xf32>
    %c0_i32_219 = arith.constant 0 : i32
    %c3_i32_220 = arith.constant 3 : i32
    %591 = vector.broadcast %c0_i32_219 : i32 to vector<8x8xi32>
    %592 = arith.maxsi %591, %576 : vector<8x8xi32>
    %593 = vector.broadcast %c3_i32_220 : i32 to vector<8x8xi32>
    %594 = arith.minsi %593, %592 : vector<8x8xi32>
    %c4_i32_221 = arith.constant 4 : i32
    %595 = vector.broadcast %c4_i32_221 : i32 to vector<8x8xi32>
    %596 = arith.muli %594, %595 : vector<8x8xi32>
    %c64_i32_222 = arith.constant 64 : i32
    %597 = vector.broadcast %c64_i32_222 : i32 to vector<8x8xi32>
    %598 = arith.addi %597, %596 : vector<8x8xi32>
    %c0_i32_223 = arith.constant 0 : i32
    %c3_i32_224 = arith.constant 3 : i32
    %599 = vector.broadcast %c0_i32_223 : i32 to vector<8x8xi32>
    %600 = arith.maxsi %599, %574 : vector<8x8xi32>
    %601 = vector.broadcast %c3_i32_224 : i32 to vector<8x8xi32>
    %602 = arith.minsi %601, %600 : vector<8x8xi32>
    %603 = arith.addi %598, %602 : vector<8x8xi32>
    %c0_i32_225 = arith.constant 0 : i32
    %604 = vector.broadcast %c0_i32_225 : i32 to vector<8x8xi32>
    %605 = arith.addi %528, %604 : vector<8x8xi32>
    %c1_i32_226 = arith.constant 1 : i32
    %606 = vector.broadcast %c1_i32_226 : i32 to vector<8x8xi32>
    %607 = arith.addi %529, %606 : vector<8x8xi32>
    %c0_i32_227 = arith.constant 0 : i32
    %608 = vector.broadcast %c0_i32_227 : i32 to vector<8x8xi32>
    %609 = arith.cmpi sge, %605, %608 : vector<8x8xi32>
    %c4_i32_228 = arith.constant 4 : i32
    %610 = vector.broadcast %c4_i32_228 : i32 to vector<8x8xi32>
    %611 = arith.cmpi slt, %605, %610 : vector<8x8xi32>
    %612 = arith.andi %609, %611 : vector<8x8xi1>
    %c0_i32_229 = arith.constant 0 : i32
    %613 = vector.broadcast %c0_i32_229 : i32 to vector<8x8xi32>
    %614 = arith.cmpi sge, %607, %613 : vector<8x8xi32>
    %615 = arith.andi %612, %614 : vector<8x8xi1>
    %c4_i32_230 = arith.constant 4 : i32
    %616 = vector.broadcast %c4_i32_230 : i32 to vector<8x8xi32>
    %617 = arith.cmpi slt, %607, %616 : vector<8x8xi32>
    %618 = arith.andi %615, %617 : vector<8x8xi1>
    %619 = arith.mulf %540, %511 : vector<8x8xf32>
    %cst_231 = arith.constant 0.000000e+00 : f32
    %620 = vector.broadcast %cst_231 : f32 to vector<8x8xf32>
    %621 = arith.select %618, %619, %620 : vector<8x8xi1>, vector<8x8xf32>
    %c0_i32_232 = arith.constant 0 : i32
    %c3_i32_233 = arith.constant 3 : i32
    %622 = vector.broadcast %c0_i32_232 : i32 to vector<8x8xi32>
    %623 = arith.maxsi %622, %607 : vector<8x8xi32>
    %624 = vector.broadcast %c3_i32_233 : i32 to vector<8x8xi32>
    %625 = arith.minsi %624, %623 : vector<8x8xi32>
    %c4_i32_234 = arith.constant 4 : i32
    %626 = vector.broadcast %c4_i32_234 : i32 to vector<8x8xi32>
    %627 = arith.muli %625, %626 : vector<8x8xi32>
    %c64_i32_235 = arith.constant 64 : i32
    %628 = vector.broadcast %c64_i32_235 : i32 to vector<8x8xi32>
    %629 = arith.addi %628, %627 : vector<8x8xi32>
    %c0_i32_236 = arith.constant 0 : i32
    %c3_i32_237 = arith.constant 3 : i32
    %630 = vector.broadcast %c0_i32_236 : i32 to vector<8x8xi32>
    %631 = arith.maxsi %630, %605 : vector<8x8xi32>
    %632 = vector.broadcast %c3_i32_237 : i32 to vector<8x8xi32>
    %633 = arith.minsi %632, %631 : vector<8x8xi32>
    %634 = arith.addi %629, %633 : vector<8x8xi32>
    %c1_i32_238 = arith.constant 1 : i32
    %635 = vector.broadcast %c1_i32_238 : i32 to vector<8x8xi32>
    %636 = arith.addi %528, %635 : vector<8x8xi32>
    %c1_i32_239 = arith.constant 1 : i32
    %637 = vector.broadcast %c1_i32_239 : i32 to vector<8x8xi32>
    %638 = arith.addi %529, %637 : vector<8x8xi32>
    %c0_i32_240 = arith.constant 0 : i32
    %639 = vector.broadcast %c0_i32_240 : i32 to vector<8x8xi32>
    %640 = arith.cmpi sge, %636, %639 : vector<8x8xi32>
    %c4_i32_241 = arith.constant 4 : i32
    %641 = vector.broadcast %c4_i32_241 : i32 to vector<8x8xi32>
    %642 = arith.cmpi slt, %636, %641 : vector<8x8xi32>
    %643 = arith.andi %640, %642 : vector<8x8xi1>
    %c0_i32_242 = arith.constant 0 : i32
    %644 = vector.broadcast %c0_i32_242 : i32 to vector<8x8xi32>
    %645 = arith.cmpi sge, %638, %644 : vector<8x8xi32>
    %646 = arith.andi %643, %645 : vector<8x8xi1>
    %c4_i32_243 = arith.constant 4 : i32
    %647 = vector.broadcast %c4_i32_243 : i32 to vector<8x8xi32>
    %648 = arith.cmpi slt, %638, %647 : vector<8x8xi32>
    %649 = arith.andi %646, %648 : vector<8x8xi1>
    %650 = arith.mulf %541, %511 : vector<8x8xf32>
    %cst_244 = arith.constant 0.000000e+00 : f32
    %651 = vector.broadcast %cst_244 : f32 to vector<8x8xf32>
    %652 = arith.select %649, %650, %651 : vector<8x8xi1>, vector<8x8xf32>
    %c0_i32_245 = arith.constant 0 : i32
    %c3_i32_246 = arith.constant 3 : i32
    %653 = vector.broadcast %c0_i32_245 : i32 to vector<8x8xi32>
    %654 = arith.maxsi %653, %638 : vector<8x8xi32>
    %655 = vector.broadcast %c3_i32_246 : i32 to vector<8x8xi32>
    %656 = arith.minsi %655, %654 : vector<8x8xi32>
    %c4_i32_247 = arith.constant 4 : i32
    %657 = vector.broadcast %c4_i32_247 : i32 to vector<8x8xi32>
    %658 = arith.muli %656, %657 : vector<8x8xi32>
    %c64_i32_248 = arith.constant 64 : i32
    %659 = vector.broadcast %c64_i32_248 : i32 to vector<8x8xi32>
    %660 = arith.addi %659, %658 : vector<8x8xi32>
    %c0_i32_249 = arith.constant 0 : i32
    %c3_i32_250 = arith.constant 3 : i32
    %661 = vector.broadcast %c0_i32_249 : i32 to vector<8x8xi32>
    %662 = arith.maxsi %661, %636 : vector<8x8xi32>
    %663 = vector.broadcast %c3_i32_250 : i32 to vector<8x8xi32>
    %664 = arith.minsi %663, %662 : vector<8x8xi32>
    %665 = arith.addi %660, %664 : vector<8x8xi32>
    %666 = tpu.iota {dimensions = array<i32: 1>} : vector<8x80xi32>
    %cst_251 = arith.constant 0.000000e+00 : f32
    %667 = vector.broadcast %cst_251 : f32 to vector<8x80xf32>
    %668 = vector.extract_strided_slice %101 {offsets = [0, 0], sizes = [8, 1], strides = [1, 1]} : vector<8x8xi32> to vector<8x1xi32>
    %669 = vector.broadcast %668 : vector<8x1xi32> to vector<8x80xi32>
    %670 = arith.cmpi eq, %669, %666 : vector<8x80xi32>
    %671 = vector.extract_strided_slice %88 {offsets = [0, 0], sizes = [8, 1], strides = [1, 1]} : vector<8x8xf32> to vector<8x1xf32>
    %cst_252 = arith.constant 0.000000e+00 : f32
    %672 = vector.shape_cast %671 : vector<8x1xf32> to vector<8x1xf32>
    %673 = vector.broadcast %672 : vector<8x1xf32> to vector<8x80xf32>
    %674 = vector.broadcast %cst_252 : f32 to vector<8x80xf32>
    %675 = arith.select %670, %673, %674 : vector<8x80xi1>, vector<8x80xf32>
    %676 = arith.addf %667, %675 : vector<8x80xf32>
    %677 = vector.extract_strided_slice %132 {offsets = [0, 0], sizes = [8, 1], strides = [1, 1]} : vector<8x8xi32> to vector<8x1xi32>
    %678 = vector.broadcast %677 : vector<8x1xi32> to vector<8x80xi32>
    %679 = arith.cmpi eq, %678, %666 : vector<8x80xi32>
    %680 = vector.extract_strided_slice %119 {offsets = [0, 0], sizes = [8, 1], strides = [1, 1]} : vector<8x8xf32> to vector<8x1xf32>
    %cst_253 = arith.constant 0.000000e+00 : f32
    %681 = vector.shape_cast %680 : vector<8x1xf32> to vector<8x1xf32>
    %682 = vector.broadcast %681 : vector<8x1xf32> to vector<8x80xf32>
    %683 = vector.broadcast %cst_253 : f32 to vector<8x80xf32>
    %684 = arith.select %679, %682, %683 : vector<8x80xi1>, vector<8x80xf32>
    %685 = arith.addf %676, %684 : vector<8x80xf32>
    %686 = vector.extract_strided_slice %163 {offsets = [0, 0], sizes = [8, 1], strides = [1, 1]} : vector<8x8xi32> to vector<8x1xi32>
    %687 = vector.broadcast %686 : vector<8x1xi32> to vector<8x80xi32>
    %688 = arith.cmpi eq, %687, %666 : vector<8x80xi32>
    %689 = vector.extract_strided_slice %150 {offsets = [0, 0], sizes = [8, 1], strides = [1, 1]} : vector<8x8xf32> to vector<8x1xf32>
    %cst_254 = arith.constant 0.000000e+00 : f32
    %690 = vector.shape_cast %689 : vector<8x1xf32> to vector<8x1xf32>
    %691 = vector.broadcast %690 : vector<8x1xf32> to vector<8x80xf32>
    %692 = vector.broadcast %cst_254 : f32 to vector<8x80xf32>
    %693 = arith.select %688, %691, %692 : vector<8x80xi1>, vector<8x80xf32>
    %694 = arith.addf %685, %693 : vector<8x80xf32>
    %695 = vector.extract_strided_slice %194 {offsets = [0, 0], sizes = [8, 1], strides = [1, 1]} : vector<8x8xi32> to vector<8x1xi32>
    %696 = vector.broadcast %695 : vector<8x1xi32> to vector<8x80xi32>
    %697 = arith.cmpi eq, %696, %666 : vector<8x80xi32>
    %698 = vector.extract_strided_slice %181 {offsets = [0, 0], sizes = [8, 1], strides = [1, 1]} : vector<8x8xf32> to vector<8x1xf32>
    %cst_255 = arith.constant 0.000000e+00 : f32
    %699 = vector.shape_cast %698 : vector<8x1xf32> to vector<8x1xf32>
    %700 = vector.broadcast %699 : vector<8x1xf32> to vector<8x80xf32>
    %701 = vector.broadcast %cst_255 : f32 to vector<8x80xf32>
    %702 = arith.select %697, %700, %701 : vector<8x80xi1>, vector<8x80xf32>
    %703 = arith.addf %694, %702 : vector<8x80xf32>
    %704 = vector.extract_strided_slice %258 {offsets = [0, 0], sizes = [8, 1], strides = [1, 1]} : vector<8x8xi32> to vector<8x1xi32>
    %705 = vector.broadcast %704 : vector<8x1xi32> to vector<8x80xi32>
    %706 = arith.cmpi eq, %705, %666 : vector<8x80xi32>
    %707 = vector.extract_strided_slice %245 {offsets = [0, 0], sizes = [8, 1], strides = [1, 1]} : vector<8x8xf32> to vector<8x1xf32>
    %cst_256 = arith.constant 0.000000e+00 : f32
    %708 = vector.shape_cast %707 : vector<8x1xf32> to vector<8x1xf32>
    %709 = vector.broadcast %708 : vector<8x1xf32> to vector<8x80xf32>
    %710 = vector.broadcast %cst_256 : f32 to vector<8x80xf32>
    %711 = arith.select %706, %709, %710 : vector<8x80xi1>, vector<8x80xf32>
    %712 = arith.addf %703, %711 : vector<8x80xf32>
    %713 = vector.extract_strided_slice %289 {offsets = [0, 0], sizes = [8, 1], strides = [1, 1]} : vector<8x8xi32> to vector<8x1xi32>
    %714 = vector.broadcast %713 : vector<8x1xi32> to vector<8x80xi32>
    %715 = arith.cmpi eq, %714, %666 : vector<8x80xi32>
    %716 = vector.extract_strided_slice %276 {offsets = [0, 0], sizes = [8, 1], strides = [1, 1]} : vector<8x8xf32> to vector<8x1xf32>
    %cst_257 = arith.constant 0.000000e+00 : f32
    %717 = vector.shape_cast %716 : vector<8x1xf32> to vector<8x1xf32>
    %718 = vector.broadcast %717 : vector<8x1xf32> to vector<8x80xf32>
    %719 = vector.broadcast %cst_257 : f32 to vector<8x80xf32>
    %720 = arith.select %715, %718, %719 : vector<8x80xi1>, vector<8x80xf32>
    %721 = arith.addf %712, %720 : vector<8x80xf32>
    %722 = vector.extract_strided_slice %320 {offsets = [0, 0], sizes = [8, 1], strides = [1, 1]} : vector<8x8xi32> to vector<8x1xi32>
    %723 = vector.broadcast %722 : vector<8x1xi32> to vector<8x80xi32>
    %724 = arith.cmpi eq, %723, %666 : vector<8x80xi32>
    %725 = vector.extract_strided_slice %307 {offsets = [0, 0], sizes = [8, 1], strides = [1, 1]} : vector<8x8xf32> to vector<8x1xf32>
    %cst_258 = arith.constant 0.000000e+00 : f32
    %726 = vector.shape_cast %725 : vector<8x1xf32> to vector<8x1xf32>
    %727 = vector.broadcast %726 : vector<8x1xf32> to vector<8x80xf32>
    %728 = vector.broadcast %cst_258 : f32 to vector<8x80xf32>
    %729 = arith.select %724, %727, %728 : vector<8x80xi1>, vector<8x80xf32>
    %730 = arith.addf %721, %729 : vector<8x80xf32>
    %731 = vector.extract_strided_slice %351 {offsets = [0, 0], sizes = [8, 1], strides = [1, 1]} : vector<8x8xi32> to vector<8x1xi32>
    %732 = vector.broadcast %731 : vector<8x1xi32> to vector<8x80xi32>
    %733 = arith.cmpi eq, %732, %666 : vector<8x80xi32>
    %734 = vector.extract_strided_slice %338 {offsets = [0, 0], sizes = [8, 1], strides = [1, 1]} : vector<8x8xf32> to vector<8x1xf32>
    %cst_259 = arith.constant 0.000000e+00 : f32
    %735 = vector.shape_cast %734 : vector<8x1xf32> to vector<8x1xf32>
    %736 = vector.broadcast %735 : vector<8x1xf32> to vector<8x80xf32>
    %737 = vector.broadcast %cst_259 : f32 to vector<8x80xf32>
    %738 = arith.select %733, %736, %737 : vector<8x80xi1>, vector<8x80xf32>
    %739 = arith.addf %730, %738 : vector<8x80xf32>
    %740 = vector.extract_strided_slice %415 {offsets = [0, 0], sizes = [8, 1], strides = [1, 1]} : vector<8x8xi32> to vector<8x1xi32>
    %741 = vector.broadcast %740 : vector<8x1xi32> to vector<8x80xi32>
    %742 = arith.cmpi eq, %741, %666 : vector<8x80xi32>
    %743 = vector.extract_strided_slice %402 {offsets = [0, 0], sizes = [8, 1], strides = [1, 1]} : vector<8x8xf32> to vector<8x1xf32>
    %cst_260 = arith.constant 0.000000e+00 : f32
    %744 = vector.shape_cast %743 : vector<8x1xf32> to vector<8x1xf32>
    %745 = vector.broadcast %744 : vector<8x1xf32> to vector<8x80xf32>
    %746 = vector.broadcast %cst_260 : f32 to vector<8x80xf32>
    %747 = arith.select %742, %745, %746 : vector<8x80xi1>, vector<8x80xf32>
    %748 = arith.addf %739, %747 : vector<8x80xf32>
    %749 = vector.extract_strided_slice %446 {offsets = [0, 0], sizes = [8, 1], strides = [1, 1]} : vector<8x8xi32> to vector<8x1xi32>
    %750 = vector.broadcast %749 : vector<8x1xi32> to vector<8x80xi32>
    %751 = arith.cmpi eq, %750, %666 : vector<8x80xi32>
    %752 = vector.extract_strided_slice %433 {offsets = [0, 0], sizes = [8, 1], strides = [1, 1]} : vector<8x8xf32> to vector<8x1xf32>
    %cst_261 = arith.constant 0.000000e+00 : f32
    %753 = vector.shape_cast %752 : vector<8x1xf32> to vector<8x1xf32>
    %754 = vector.broadcast %753 : vector<8x1xf32> to vector<8x80xf32>
    %755 = vector.broadcast %cst_261 : f32 to vector<8x80xf32>
    %756 = arith.select %751, %754, %755 : vector<8x80xi1>, vector<8x80xf32>
    %757 = arith.addf %748, %756 : vector<8x80xf32>
    %758 = vector.extract_strided_slice %477 {offsets = [0, 0], sizes = [8, 1], strides = [1, 1]} : vector<8x8xi32> to vector<8x1xi32>
    %759 = vector.broadcast %758 : vector<8x1xi32> to vector<8x80xi32>
    %760 = arith.cmpi eq, %759, %666 : vector<8x80xi32>
    %761 = vector.extract_strided_slice %464 {offsets = [0, 0], sizes = [8, 1], strides = [1, 1]} : vector<8x8xf32> to vector<8x1xf32>
    %cst_262 = arith.constant 0.000000e+00 : f32
    %762 = vector.shape_cast %761 : vector<8x1xf32> to vector<8x1xf32>
    %763 = vector.broadcast %762 : vector<8x1xf32> to vector<8x80xf32>
    %764 = vector.broadcast %cst_262 : f32 to vector<8x80xf32>
    %765 = arith.select %760, %763, %764 : vector<8x80xi1>, vector<8x80xf32>
    %766 = arith.addf %757, %765 : vector<8x80xf32>
    %767 = vector.extract_strided_slice %508 {offsets = [0, 0], sizes = [8, 1], strides = [1, 1]} : vector<8x8xi32> to vector<8x1xi32>
    %768 = vector.broadcast %767 : vector<8x1xi32> to vector<8x80xi32>
    %769 = arith.cmpi eq, %768, %666 : vector<8x80xi32>
    %770 = vector.extract_strided_slice %495 {offsets = [0, 0], sizes = [8, 1], strides = [1, 1]} : vector<8x8xf32> to vector<8x1xf32>
    %cst_263 = arith.constant 0.000000e+00 : f32
    %771 = vector.shape_cast %770 : vector<8x1xf32> to vector<8x1xf32>
    %772 = vector.broadcast %771 : vector<8x1xf32> to vector<8x80xf32>
    %773 = vector.broadcast %cst_263 : f32 to vector<8x80xf32>
    %774 = arith.select %769, %772, %773 : vector<8x80xi1>, vector<8x80xf32>
    %775 = arith.addf %766, %774 : vector<8x80xf32>
    %776 = vector.extract_strided_slice %572 {offsets = [0, 0], sizes = [8, 1], strides = [1, 1]} : vector<8x8xi32> to vector<8x1xi32>
    %777 = vector.broadcast %776 : vector<8x1xi32> to vector<8x80xi32>
    %778 = arith.cmpi eq, %777, %666 : vector<8x80xi32>
    %779 = vector.extract_strided_slice %559 {offsets = [0, 0], sizes = [8, 1], strides = [1, 1]} : vector<8x8xf32> to vector<8x1xf32>
    %cst_264 = arith.constant 0.000000e+00 : f32
    %780 = vector.shape_cast %779 : vector<8x1xf32> to vector<8x1xf32>
    %781 = vector.broadcast %780 : vector<8x1xf32> to vector<8x80xf32>
    %782 = vector.broadcast %cst_264 : f32 to vector<8x80xf32>
    %783 = arith.select %778, %781, %782 : vector<8x80xi1>, vector<8x80xf32>
    %784 = arith.addf %775, %783 : vector<8x80xf32>
    %785 = vector.extract_strided_slice %603 {offsets = [0, 0], sizes = [8, 1], strides = [1, 1]} : vector<8x8xi32> to vector<8x1xi32>
    %786 = vector.broadcast %785 : vector<8x1xi32> to vector<8x80xi32>
    %787 = arith.cmpi eq, %786, %666 : vector<8x80xi32>
    %788 = vector.extract_strided_slice %590 {offsets = [0, 0], sizes = [8, 1], strides = [1, 1]} : vector<8x8xf32> to vector<8x1xf32>
    %cst_265 = arith.constant 0.000000e+00 : f32
    %789 = vector.shape_cast %788 : vector<8x1xf32> to vector<8x1xf32>
    %790 = vector.broadcast %789 : vector<8x1xf32> to vector<8x80xf32>
    %791 = vector.broadcast %cst_265 : f32 to vector<8x80xf32>
    %792 = arith.select %787, %790, %791 : vector<8x80xi1>, vector<8x80xf32>
    %793 = arith.addf %784, %792 : vector<8x80xf32>
    %794 = vector.extract_strided_slice %634 {offsets = [0, 0], sizes = [8, 1], strides = [1, 1]} : vector<8x8xi32> to vector<8x1xi32>
    %795 = vector.broadcast %794 : vector<8x1xi32> to vector<8x80xi32>
    %796 = arith.cmpi eq, %795, %666 : vector<8x80xi32>
    %797 = vector.extract_strided_slice %621 {offsets = [0, 0], sizes = [8, 1], strides = [1, 1]} : vector<8x8xf32> to vector<8x1xf32>
    %cst_266 = arith.constant 0.000000e+00 : f32
    %798 = vector.shape_cast %797 : vector<8x1xf32> to vector<8x1xf32>
    %799 = vector.broadcast %798 : vector<8x1xf32> to vector<8x80xf32>
    %800 = vector.broadcast %cst_266 : f32 to vector<8x80xf32>
    %801 = arith.select %796, %799, %800 : vector<8x80xi1>, vector<8x80xf32>
    %802 = arith.addf %793, %801 : vector<8x80xf32>
    %803 = vector.extract_strided_slice %665 {offsets = [0, 0], sizes = [8, 1], strides = [1, 1]} : vector<8x8xi32> to vector<8x1xi32>
    %804 = vector.broadcast %803 : vector<8x1xi32> to vector<8x80xi32>
    %805 = arith.cmpi eq, %804, %666 : vector<8x80xi32>
    %806 = vector.extract_strided_slice %652 {offsets = [0, 0], sizes = [8, 1], strides = [1, 1]} : vector<8x8xf32> to vector<8x1xf32>
    %cst_267 = arith.constant 0.000000e+00 : f32
    %807 = vector.shape_cast %806 : vector<8x1xf32> to vector<8x1xf32>
    %808 = vector.broadcast %807 : vector<8x1xf32> to vector<8x80xf32>
    %809 = vector.broadcast %cst_267 : f32 to vector<8x80xf32>
    %810 = arith.select %805, %808, %809 : vector<8x80xi1>, vector<8x80xf32>
    %811 = arith.addf %802, %810 : vector<8x80xf32>
    %cst_268 = arith.constant 0.000000e+00 : f32
    %812 = vector.broadcast %cst_268 : f32 to vector<8x80xf32>
    %813 = vector.extract_strided_slice %101 {offsets = [0, 1], sizes = [8, 1], strides = [1, 1]} : vector<8x8xi32> to vector<8x1xi32>
    %814 = vector.broadcast %813 : vector<8x1xi32> to vector<8x80xi32>
    %815 = arith.cmpi eq, %814, %666 : vector<8x80xi32>
    %816 = vector.extract_strided_slice %88 {offsets = [0, 1], sizes = [8, 1], strides = [1, 1]} : vector<8x8xf32> to vector<8x1xf32>
    %cst_269 = arith.constant 0.000000e+00 : f32
    %817 = vector.shape_cast %816 : vector<8x1xf32> to vector<8x1xf32>
    %818 = vector.broadcast %817 : vector<8x1xf32> to vector<8x80xf32>
    %819 = vector.broadcast %cst_269 : f32 to vector<8x80xf32>
    %820 = arith.select %815, %818, %819 : vector<8x80xi1>, vector<8x80xf32>
    %821 = arith.addf %812, %820 : vector<8x80xf32>
    %822 = vector.extract_strided_slice %132 {offsets = [0, 1], sizes = [8, 1], strides = [1, 1]} : vector<8x8xi32> to vector<8x1xi32>
    %823 = vector.broadcast %822 : vector<8x1xi32> to vector<8x80xi32>
    %824 = arith.cmpi eq, %823, %666 : vector<8x80xi32>
    %825 = vector.extract_strided_slice %119 {offsets = [0, 1], sizes = [8, 1], strides = [1, 1]} : vector<8x8xf32> to vector<8x1xf32>
    %cst_270 = arith.constant 0.000000e+00 : f32
    %826 = vector.shape_cast %825 : vector<8x1xf32> to vector<8x1xf32>
    %827 = vector.broadcast %826 : vector<8x1xf32> to vector<8x80xf32>
    %828 = vector.broadcast %cst_270 : f32 to vector<8x80xf32>
    %829 = arith.select %824, %827, %828 : vector<8x80xi1>, vector<8x80xf32>
    %830 = arith.addf %821, %829 : vector<8x80xf32>
    %831 = vector.extract_strided_slice %163 {offsets = [0, 1], sizes = [8, 1], strides = [1, 1]} : vector<8x8xi32> to vector<8x1xi32>
    %832 = vector.broadcast %831 : vector<8x1xi32> to vector<8x80xi32>
    %833 = arith.cmpi eq, %832, %666 : vector<8x80xi32>
    %834 = vector.extract_strided_slice %150 {offsets = [0, 1], sizes = [8, 1], strides = [1, 1]} : vector<8x8xf32> to vector<8x1xf32>
    %cst_271 = arith.constant 0.000000e+00 : f32
    %835 = vector.shape_cast %834 : vector<8x1xf32> to vector<8x1xf32>
    %836 = vector.broadcast %835 : vector<8x1xf32> to vector<8x80xf32>
    %837 = vector.broadcast %cst_271 : f32 to vector<8x80xf32>
    %838 = arith.select %833, %836, %837 : vector<8x80xi1>, vector<8x80xf32>
    %839 = arith.addf %830, %838 : vector<8x80xf32>
    %840 = vector.extract_strided_slice %194 {offsets = [0, 1], sizes = [8, 1], strides = [1, 1]} : vector<8x8xi32> to vector<8x1xi32>
    %841 = vector.broadcast %840 : vector<8x1xi32> to vector<8x80xi32>
    %842 = arith.cmpi eq, %841, %666 : vector<8x80xi32>
    %843 = vector.extract_strided_slice %181 {offsets = [0, 1], sizes = [8, 1], strides = [1, 1]} : vector<8x8xf32> to vector<8x1xf32>
    %cst_272 = arith.constant 0.000000e+00 : f32
    %844 = vector.shape_cast %843 : vector<8x1xf32> to vector<8x1xf32>
    %845 = vector.broadcast %844 : vector<8x1xf32> to vector<8x80xf32>
    %846 = vector.broadcast %cst_272 : f32 to vector<8x80xf32>
    %847 = arith.select %842, %845, %846 : vector<8x80xi1>, vector<8x80xf32>
    %848 = arith.addf %839, %847 : vector<8x80xf32>
    %849 = vector.extract_strided_slice %258 {offsets = [0, 1], sizes = [8, 1], strides = [1, 1]} : vector<8x8xi32> to vector<8x1xi32>
    %850 = vector.broadcast %849 : vector<8x1xi32> to vector<8x80xi32>
    %851 = arith.cmpi eq, %850, %666 : vector<8x80xi32>
    %852 = vector.extract_strided_slice %245 {offsets = [0, 1], sizes = [8, 1], strides = [1, 1]} : vector<8x8xf32> to vector<8x1xf32>
    %cst_273 = arith.constant 0.000000e+00 : f32
    %853 = vector.shape_cast %852 : vector<8x1xf32> to vector<8x1xf32>
    %854 = vector.broadcast %853 : vector<8x1xf32> to vector<8x80xf32>
    %855 = vector.broadcast %cst_273 : f32 to vector<8x80xf32>
    %856 = arith.select %851, %854, %855 : vector<8x80xi1>, vector<8x80xf32>
    %857 = arith.addf %848, %856 : vector<8x80xf32>
    %858 = vector.extract_strided_slice %289 {offsets = [0, 1], sizes = [8, 1], strides = [1, 1]} : vector<8x8xi32> to vector<8x1xi32>
    %859 = vector.broadcast %858 : vector<8x1xi32> to vector<8x80xi32>
    %860 = arith.cmpi eq, %859, %666 : vector<8x80xi32>
    %861 = vector.extract_strided_slice %276 {offsets = [0, 1], sizes = [8, 1], strides = [1, 1]} : vector<8x8xf32> to vector<8x1xf32>
    %cst_274 = arith.constant 0.000000e+00 : f32
    %862 = vector.shape_cast %861 : vector<8x1xf32> to vector<8x1xf32>
    %863 = vector.broadcast %862 : vector<8x1xf32> to vector<8x80xf32>
    %864 = vector.broadcast %cst_274 : f32 to vector<8x80xf32>
    %865 = arith.select %860, %863, %864 : vector<8x80xi1>, vector<8x80xf32>
    %866 = arith.addf %857, %865 : vector<8x80xf32>
    %867 = vector.extract_strided_slice %320 {offsets = [0, 1], sizes = [8, 1], strides = [1, 1]} : vector<8x8xi32> to vector<8x1xi32>
    %868 = vector.broadcast %867 : vector<8x1xi32> to vector<8x80xi32>
    %869 = arith.cmpi eq, %868, %666 : vector<8x80xi32>
    %870 = vector.extract_strided_slice %307 {offsets = [0, 1], sizes = [8, 1], strides = [1, 1]} : vector<8x8xf32> to vector<8x1xf32>
    %cst_275 = arith.constant 0.000000e+00 : f32
    %871 = vector.shape_cast %870 : vector<8x1xf32> to vector<8x1xf32>
    %872 = vector.broadcast %871 : vector<8x1xf32> to vector<8x80xf32>
    %873 = vector.broadcast %cst_275 : f32 to vector<8x80xf32>
    %874 = arith.select %869, %872, %873 : vector<8x80xi1>, vector<8x80xf32>
    %875 = arith.addf %866, %874 : vector<8x80xf32>
    %876 = vector.extract_strided_slice %351 {offsets = [0, 1], sizes = [8, 1], strides = [1, 1]} : vector<8x8xi32> to vector<8x1xi32>
    %877 = vector.broadcast %876 : vector<8x1xi32> to vector<8x80xi32>
    %878 = arith.cmpi eq, %877, %666 : vector<8x80xi32>
    %879 = vector.extract_strided_slice %338 {offsets = [0, 1], sizes = [8, 1], strides = [1, 1]} : vector<8x8xf32> to vector<8x1xf32>
    %cst_276 = arith.constant 0.000000e+00 : f32
    %880 = vector.shape_cast %879 : vector<8x1xf32> to vector<8x1xf32>
    %881 = vector.broadcast %880 : vector<8x1xf32> to vector<8x80xf32>
    %882 = vector.broadcast %cst_276 : f32 to vector<8x80xf32>
    %883 = arith.select %878, %881, %882 : vector<8x80xi1>, vector<8x80xf32>
    %884 = arith.addf %875, %883 : vector<8x80xf32>
    %885 = vector.extract_strided_slice %415 {offsets = [0, 1], sizes = [8, 1], strides = [1, 1]} : vector<8x8xi32> to vector<8x1xi32>
    %886 = vector.broadcast %885 : vector<8x1xi32> to vector<8x80xi32>
    %887 = arith.cmpi eq, %886, %666 : vector<8x80xi32>
    %888 = vector.extract_strided_slice %402 {offsets = [0, 1], sizes = [8, 1], strides = [1, 1]} : vector<8x8xf32> to vector<8x1xf32>
    %cst_277 = arith.constant 0.000000e+00 : f32
    %889 = vector.shape_cast %888 : vector<8x1xf32> to vector<8x1xf32>
    %890 = vector.broadcast %889 : vector<8x1xf32> to vector<8x80xf32>
    %891 = vector.broadcast %cst_277 : f32 to vector<8x80xf32>
    %892 = arith.select %887, %890, %891 : vector<8x80xi1>, vector<8x80xf32>
    %893 = arith.addf %884, %892 : vector<8x80xf32>
    %894 = vector.extract_strided_slice %446 {offsets = [0, 1], sizes = [8, 1], strides = [1, 1]} : vector<8x8xi32> to vector<8x1xi32>
    %895 = vector.broadcast %894 : vector<8x1xi32> to vector<8x80xi32>
    %896 = arith.cmpi eq, %895, %666 : vector<8x80xi32>
    %897 = vector.extract_strided_slice %433 {offsets = [0, 1], sizes = [8, 1], strides = [1, 1]} : vector<8x8xf32> to vector<8x1xf32>
    %cst_278 = arith.constant 0.000000e+00 : f32
    %898 = vector.shape_cast %897 : vector<8x1xf32> to vector<8x1xf32>
    %899 = vector.broadcast %898 : vector<8x1xf32> to vector<8x80xf32>
    %900 = vector.broadcast %cst_278 : f32 to vector<8x80xf32>
    %901 = arith.select %896, %899, %900 : vector<8x80xi1>, vector<8x80xf32>
    %902 = arith.addf %893, %901 : vector<8x80xf32>
    %903 = vector.extract_strided_slice %477 {offsets = [0, 1], sizes = [8, 1], strides = [1, 1]} : vector<8x8xi32> to vector<8x1xi32>
    %904 = vector.broadcast %903 : vector<8x1xi32> to vector<8x80xi32>
    %905 = arith.cmpi eq, %904, %666 : vector<8x80xi32>
    %906 = vector.extract_strided_slice %464 {offsets = [0, 1], sizes = [8, 1], strides = [1, 1]} : vector<8x8xf32> to vector<8x1xf32>
    %cst_279 = arith.constant 0.000000e+00 : f32
    %907 = vector.shape_cast %906 : vector<8x1xf32> to vector<8x1xf32>
    %908 = vector.broadcast %907 : vector<8x1xf32> to vector<8x80xf32>
    %909 = vector.broadcast %cst_279 : f32 to vector<8x80xf32>
    %910 = arith.select %905, %908, %909 : vector<8x80xi1>, vector<8x80xf32>
    %911 = arith.addf %902, %910 : vector<8x80xf32>
    %912 = vector.extract_strided_slice %508 {offsets = [0, 1], sizes = [8, 1], strides = [1, 1]} : vector<8x8xi32> to vector<8x1xi32>
    %913 = vector.broadcast %912 : vector<8x1xi32> to vector<8x80xi32>
    %914 = arith.cmpi eq, %913, %666 : vector<8x80xi32>
    %915 = vector.extract_strided_slice %495 {offsets = [0, 1], sizes = [8, 1], strides = [1, 1]} : vector<8x8xf32> to vector<8x1xf32>
    %cst_280 = arith.constant 0.000000e+00 : f32
    %916 = vector.shape_cast %915 : vector<8x1xf32> to vector<8x1xf32>
    %917 = vector.broadcast %916 : vector<8x1xf32> to vector<8x80xf32>
    %918 = vector.broadcast %cst_280 : f32 to vector<8x80xf32>
    %919 = arith.select %914, %917, %918 : vector<8x80xi1>, vector<8x80xf32>
    %920 = arith.addf %911, %919 : vector<8x80xf32>
    %921 = vector.extract_strided_slice %572 {offsets = [0, 1], sizes = [8, 1], strides = [1, 1]} : vector<8x8xi32> to vector<8x1xi32>
    %922 = vector.broadcast %921 : vector<8x1xi32> to vector<8x80xi32>
    %923 = arith.cmpi eq, %922, %666 : vector<8x80xi32>
    %924 = vector.extract_strided_slice %559 {offsets = [0, 1], sizes = [8, 1], strides = [1, 1]} : vector<8x8xf32> to vector<8x1xf32>
    %cst_281 = arith.constant 0.000000e+00 : f32
    %925 = vector.shape_cast %924 : vector<8x1xf32> to vector<8x1xf32>
    %926 = vector.broadcast %925 : vector<8x1xf32> to vector<8x80xf32>
    %927 = vector.broadcast %cst_281 : f32 to vector<8x80xf32>
    %928 = arith.select %923, %926, %927 : vector<8x80xi1>, vector<8x80xf32>
    %929 = arith.addf %920, %928 : vector<8x80xf32>
    %930 = vector.extract_strided_slice %603 {offsets = [0, 1], sizes = [8, 1], strides = [1, 1]} : vector<8x8xi32> to vector<8x1xi32>
    %931 = vector.broadcast %930 : vector<8x1xi32> to vector<8x80xi32>
    %932 = arith.cmpi eq, %931, %666 : vector<8x80xi32>
    %933 = vector.extract_strided_slice %590 {offsets = [0, 1], sizes = [8, 1], strides = [1, 1]} : vector<8x8xf32> to vector<8x1xf32>
    %cst_282 = arith.constant 0.000000e+00 : f32
    %934 = vector.shape_cast %933 : vector<8x1xf32> to vector<8x1xf32>
    %935 = vector.broadcast %934 : vector<8x1xf32> to vector<8x80xf32>
    %936 = vector.broadcast %cst_282 : f32 to vector<8x80xf32>
    %937 = arith.select %932, %935, %936 : vector<8x80xi1>, vector<8x80xf32>
    %938 = arith.addf %929, %937 : vector<8x80xf32>
    %939 = vector.extract_strided_slice %634 {offsets = [0, 1], sizes = [8, 1], strides = [1, 1]} : vector<8x8xi32> to vector<8x1xi32>
    %940 = vector.broadcast %939 : vector<8x1xi32> to vector<8x80xi32>
    %941 = arith.cmpi eq, %940, %666 : vector<8x80xi32>
    %942 = vector.extract_strided_slice %621 {offsets = [0, 1], sizes = [8, 1], strides = [1, 1]} : vector<8x8xf32> to vector<8x1xf32>
    %cst_283 = arith.constant 0.000000e+00 : f32
    %943 = vector.shape_cast %942 : vector<8x1xf32> to vector<8x1xf32>
    %944 = vector.broadcast %943 : vector<8x1xf32> to vector<8x80xf32>
    %945 = vector.broadcast %cst_283 : f32 to vector<8x80xf32>
    %946 = arith.select %941, %944, %945 : vector<8x80xi1>, vector<8x80xf32>
    %947 = arith.addf %938, %946 : vector<8x80xf32>
    %948 = vector.extract_strided_slice %665 {offsets = [0, 1], sizes = [8, 1], strides = [1, 1]} : vector<8x8xi32> to vector<8x1xi32>
    %949 = vector.broadcast %948 : vector<8x1xi32> to vector<8x80xi32>
    %950 = arith.cmpi eq, %949, %666 : vector<8x80xi32>
    %951 = vector.extract_strided_slice %652 {offsets = [0, 1], sizes = [8, 1], strides = [1, 1]} : vector<8x8xf32> to vector<8x1xf32>
    %cst_284 = arith.constant 0.000000e+00 : f32
    %952 = vector.shape_cast %951 : vector<8x1xf32> to vector<8x1xf32>
    %953 = vector.broadcast %952 : vector<8x1xf32> to vector<8x80xf32>
    %954 = vector.broadcast %cst_284 : f32 to vector<8x80xf32>
    %955 = arith.select %950, %953, %954 : vector<8x80xi1>, vector<8x80xf32>
    %956 = arith.addf %947, %955 : vector<8x80xf32>
    %cst_285 = arith.constant 0.000000e+00 : f32
    %957 = vector.broadcast %cst_285 : f32 to vector<8x80xf32>
    %958 = vector.extract_strided_slice %101 {offsets = [0, 2], sizes = [8, 1], strides = [1, 1]} : vector<8x8xi32> to vector<8x1xi32>
    %959 = vector.broadcast %958 : vector<8x1xi32> to vector<8x80xi32>
    %960 = arith.cmpi eq, %959, %666 : vector<8x80xi32>
    %961 = vector.extract_strided_slice %88 {offsets = [0, 2], sizes = [8, 1], strides = [1, 1]} : vector<8x8xf32> to vector<8x1xf32>
    %cst_286 = arith.constant 0.000000e+00 : f32
    %962 = vector.shape_cast %961 : vector<8x1xf32> to vector<8x1xf32>
    %963 = vector.broadcast %962 : vector<8x1xf32> to vector<8x80xf32>
    %964 = vector.broadcast %cst_286 : f32 to vector<8x80xf32>
    %965 = arith.select %960, %963, %964 : vector<8x80xi1>, vector<8x80xf32>
    %966 = arith.addf %957, %965 : vector<8x80xf32>
    %967 = vector.extract_strided_slice %132 {offsets = [0, 2], sizes = [8, 1], strides = [1, 1]} : vector<8x8xi32> to vector<8x1xi32>
    %968 = vector.broadcast %967 : vector<8x1xi32> to vector<8x80xi32>
    %969 = arith.cmpi eq, %968, %666 : vector<8x80xi32>
    %970 = vector.extract_strided_slice %119 {offsets = [0, 2], sizes = [8, 1], strides = [1, 1]} : vector<8x8xf32> to vector<8x1xf32>
    %cst_287 = arith.constant 0.000000e+00 : f32
    %971 = vector.shape_cast %970 : vector<8x1xf32> to vector<8x1xf32>
    %972 = vector.broadcast %971 : vector<8x1xf32> to vector<8x80xf32>
    %973 = vector.broadcast %cst_287 : f32 to vector<8x80xf32>
    %974 = arith.select %969, %972, %973 : vector<8x80xi1>, vector<8x80xf32>
    %975 = arith.addf %966, %974 : vector<8x80xf32>
    %976 = vector.extract_strided_slice %163 {offsets = [0, 2], sizes = [8, 1], strides = [1, 1]} : vector<8x8xi32> to vector<8x1xi32>
    %977 = vector.broadcast %976 : vector<8x1xi32> to vector<8x80xi32>
    %978 = arith.cmpi eq, %977, %666 : vector<8x80xi32>
    %979 = vector.extract_strided_slice %150 {offsets = [0, 2], sizes = [8, 1], strides = [1, 1]} : vector<8x8xf32> to vector<8x1xf32>
    %cst_288 = arith.constant 0.000000e+00 : f32
    %980 = vector.shape_cast %979 : vector<8x1xf32> to vector<8x1xf32>
    %981 = vector.broadcast %980 : vector<8x1xf32> to vector<8x80xf32>
    %982 = vector.broadcast %cst_288 : f32 to vector<8x80xf32>
    %983 = arith.select %978, %981, %982 : vector<8x80xi1>, vector<8x80xf32>
    %984 = arith.addf %975, %983 : vector<8x80xf32>
    %985 = vector.extract_strided_slice %194 {offsets = [0, 2], sizes = [8, 1], strides = [1, 1]} : vector<8x8xi32> to vector<8x1xi32>
    %986 = vector.broadcast %985 : vector<8x1xi32> to vector<8x80xi32>
    %987 = arith.cmpi eq, %986, %666 : vector<8x80xi32>
    %988 = vector.extract_strided_slice %181 {offsets = [0, 2], sizes = [8, 1], strides = [1, 1]} : vector<8x8xf32> to vector<8x1xf32>
    %cst_289 = arith.constant 0.000000e+00 : f32
    %989 = vector.shape_cast %988 : vector<8x1xf32> to vector<8x1xf32>
    %990 = vector.broadcast %989 : vector<8x1xf32> to vector<8x80xf32>
    %991 = vector.broadcast %cst_289 : f32 to vector<8x80xf32>
    %992 = arith.select %987, %990, %991 : vector<8x80xi1>, vector<8x80xf32>
    %993 = arith.addf %984, %992 : vector<8x80xf32>
    %994 = vector.extract_strided_slice %258 {offsets = [0, 2], sizes = [8, 1], strides = [1, 1]} : vector<8x8xi32> to vector<8x1xi32>
    %995 = vector.broadcast %994 : vector<8x1xi32> to vector<8x80xi32>
    %996 = arith.cmpi eq, %995, %666 : vector<8x80xi32>
    %997 = vector.extract_strided_slice %245 {offsets = [0, 2], sizes = [8, 1], strides = [1, 1]} : vector<8x8xf32> to vector<8x1xf32>
    %cst_290 = arith.constant 0.000000e+00 : f32
    %998 = vector.shape_cast %997 : vector<8x1xf32> to vector<8x1xf32>
    %999 = vector.broadcast %998 : vector<8x1xf32> to vector<8x80xf32>
    %1000 = vector.broadcast %cst_290 : f32 to vector<8x80xf32>
    %1001 = arith.select %996, %999, %1000 : vector<8x80xi1>, vector<8x80xf32>
    %1002 = arith.addf %993, %1001 : vector<8x80xf32>
    %1003 = vector.extract_strided_slice %289 {offsets = [0, 2], sizes = [8, 1], strides = [1, 1]} : vector<8x8xi32> to vector<8x1xi32>
    %1004 = vector.broadcast %1003 : vector<8x1xi32> to vector<8x80xi32>
    %1005 = arith.cmpi eq, %1004, %666 : vector<8x80xi32>
    %1006 = vector.extract_strided_slice %276 {offsets = [0, 2], sizes = [8, 1], strides = [1, 1]} : vector<8x8xf32> to vector<8x1xf32>
    %cst_291 = arith.constant 0.000000e+00 : f32
    %1007 = vector.shape_cast %1006 : vector<8x1xf32> to vector<8x1xf32>
    %1008 = vector.broadcast %1007 : vector<8x1xf32> to vector<8x80xf32>
    %1009 = vector.broadcast %cst_291 : f32 to vector<8x80xf32>
    %1010 = arith.select %1005, %1008, %1009 : vector<8x80xi1>, vector<8x80xf32>
    %1011 = arith.addf %1002, %1010 : vector<8x80xf32>
    %1012 = vector.extract_strided_slice %320 {offsets = [0, 2], sizes = [8, 1], strides = [1, 1]} : vector<8x8xi32> to vector<8x1xi32>
    %1013 = vector.broadcast %1012 : vector<8x1xi32> to vector<8x80xi32>
    %1014 = arith.cmpi eq, %1013, %666 : vector<8x80xi32>
    %1015 = vector.extract_strided_slice %307 {offsets = [0, 2], sizes = [8, 1], strides = [1, 1]} : vector<8x8xf32> to vector<8x1xf32>
    %cst_292 = arith.constant 0.000000e+00 : f32
    %1016 = vector.shape_cast %1015 : vector<8x1xf32> to vector<8x1xf32>
    %1017 = vector.broadcast %1016 : vector<8x1xf32> to vector<8x80xf32>
    %1018 = vector.broadcast %cst_292 : f32 to vector<8x80xf32>
    %1019 = arith.select %1014, %1017, %1018 : vector<8x80xi1>, vector<8x80xf32>
    %1020 = arith.addf %1011, %1019 : vector<8x80xf32>
    %1021 = vector.extract_strided_slice %351 {offsets = [0, 2], sizes = [8, 1], strides = [1, 1]} : vector<8x8xi32> to vector<8x1xi32>
    %1022 = vector.broadcast %1021 : vector<8x1xi32> to vector<8x80xi32>
    %1023 = arith.cmpi eq, %1022, %666 : vector<8x80xi32>
    %1024 = vector.extract_strided_slice %338 {offsets = [0, 2], sizes = [8, 1], strides = [1, 1]} : vector<8x8xf32> to vector<8x1xf32>
    %cst_293 = arith.constant 0.000000e+00 : f32
    %1025 = vector.shape_cast %1024 : vector<8x1xf32> to vector<8x1xf32>
    %1026 = vector.broadcast %1025 : vector<8x1xf32> to vector<8x80xf32>
    %1027 = vector.broadcast %cst_293 : f32 to vector<8x80xf32>
    %1028 = arith.select %1023, %1026, %1027 : vector<8x80xi1>, vector<8x80xf32>
    %1029 = arith.addf %1020, %1028 : vector<8x80xf32>
    %1030 = vector.extract_strided_slice %415 {offsets = [0, 2], sizes = [8, 1], strides = [1, 1]} : vector<8x8xi32> to vector<8x1xi32>
    %1031 = vector.broadcast %1030 : vector<8x1xi32> to vector<8x80xi32>
    %1032 = arith.cmpi eq, %1031, %666 : vector<8x80xi32>
    %1033 = vector.extract_strided_slice %402 {offsets = [0, 2], sizes = [8, 1], strides = [1, 1]} : vector<8x8xf32> to vector<8x1xf32>
    %cst_294 = arith.constant 0.000000e+00 : f32
    %1034 = vector.shape_cast %1033 : vector<8x1xf32> to vector<8x1xf32>
    %1035 = vector.broadcast %1034 : vector<8x1xf32> to vector<8x80xf32>
    %1036 = vector.broadcast %cst_294 : f32 to vector<8x80xf32>
    %1037 = arith.select %1032, %1035, %1036 : vector<8x80xi1>, vector<8x80xf32>
    %1038 = arith.addf %1029, %1037 : vector<8x80xf32>
    %1039 = vector.extract_strided_slice %446 {offsets = [0, 2], sizes = [8, 1], strides = [1, 1]} : vector<8x8xi32> to vector<8x1xi32>
    %1040 = vector.broadcast %1039 : vector<8x1xi32> to vector<8x80xi32>
    %1041 = arith.cmpi eq, %1040, %666 : vector<8x80xi32>
    %1042 = vector.extract_strided_slice %433 {offsets = [0, 2], sizes = [8, 1], strides = [1, 1]} : vector<8x8xf32> to vector<8x1xf32>
    %cst_295 = arith.constant 0.000000e+00 : f32
    %1043 = vector.shape_cast %1042 : vector<8x1xf32> to vector<8x1xf32>
    %1044 = vector.broadcast %1043 : vector<8x1xf32> to vector<8x80xf32>
    %1045 = vector.broadcast %cst_295 : f32 to vector<8x80xf32>
    %1046 = arith.select %1041, %1044, %1045 : vector<8x80xi1>, vector<8x80xf32>
    %1047 = arith.addf %1038, %1046 : vector<8x80xf32>
    %1048 = vector.extract_strided_slice %477 {offsets = [0, 2], sizes = [8, 1], strides = [1, 1]} : vector<8x8xi32> to vector<8x1xi32>
    %1049 = vector.broadcast %1048 : vector<8x1xi32> to vector<8x80xi32>
    %1050 = arith.cmpi eq, %1049, %666 : vector<8x80xi32>
    %1051 = vector.extract_strided_slice %464 {offsets = [0, 2], sizes = [8, 1], strides = [1, 1]} : vector<8x8xf32> to vector<8x1xf32>
    %cst_296 = arith.constant 0.000000e+00 : f32
    %1052 = vector.shape_cast %1051 : vector<8x1xf32> to vector<8x1xf32>
    %1053 = vector.broadcast %1052 : vector<8x1xf32> to vector<8x80xf32>
    %1054 = vector.broadcast %cst_296 : f32 to vector<8x80xf32>
    %1055 = arith.select %1050, %1053, %1054 : vector<8x80xi1>, vector<8x80xf32>
    %1056 = arith.addf %1047, %1055 : vector<8x80xf32>
    %1057 = vector.extract_strided_slice %508 {offsets = [0, 2], sizes = [8, 1], strides = [1, 1]} : vector<8x8xi32> to vector<8x1xi32>
    %1058 = vector.broadcast %1057 : vector<8x1xi32> to vector<8x80xi32>
    %1059 = arith.cmpi eq, %1058, %666 : vector<8x80xi32>
    %1060 = vector.extract_strided_slice %495 {offsets = [0, 2], sizes = [8, 1], strides = [1, 1]} : vector<8x8xf32> to vector<8x1xf32>
    %cst_297 = arith.constant 0.000000e+00 : f32
    %1061 = vector.shape_cast %1060 : vector<8x1xf32> to vector<8x1xf32>
    %1062 = vector.broadcast %1061 : vector<8x1xf32> to vector<8x80xf32>
    %1063 = vector.broadcast %cst_297 : f32 to vector<8x80xf32>
    %1064 = arith.select %1059, %1062, %1063 : vector<8x80xi1>, vector<8x80xf32>
    %1065 = arith.addf %1056, %1064 : vector<8x80xf32>
    %1066 = vector.extract_strided_slice %572 {offsets = [0, 2], sizes = [8, 1], strides = [1, 1]} : vector<8x8xi32> to vector<8x1xi32>
    %1067 = vector.broadcast %1066 : vector<8x1xi32> to vector<8x80xi32>
    %1068 = arith.cmpi eq, %1067, %666 : vector<8x80xi32>
    %1069 = vector.extract_strided_slice %559 {offsets = [0, 2], sizes = [8, 1], strides = [1, 1]} : vector<8x8xf32> to vector<8x1xf32>
    %cst_298 = arith.constant 0.000000e+00 : f32
    %1070 = vector.shape_cast %1069 : vector<8x1xf32> to vector<8x1xf32>
    %1071 = vector.broadcast %1070 : vector<8x1xf32> to vector<8x80xf32>
    %1072 = vector.broadcast %cst_298 : f32 to vector<8x80xf32>
    %1073 = arith.select %1068, %1071, %1072 : vector<8x80xi1>, vector<8x80xf32>
    %1074 = arith.addf %1065, %1073 : vector<8x80xf32>
    %1075 = vector.extract_strided_slice %603 {offsets = [0, 2], sizes = [8, 1], strides = [1, 1]} : vector<8x8xi32> to vector<8x1xi32>
    %1076 = vector.broadcast %1075 : vector<8x1xi32> to vector<8x80xi32>
    %1077 = arith.cmpi eq, %1076, %666 : vector<8x80xi32>
    %1078 = vector.extract_strided_slice %590 {offsets = [0, 2], sizes = [8, 1], strides = [1, 1]} : vector<8x8xf32> to vector<8x1xf32>
    %cst_299 = arith.constant 0.000000e+00 : f32
    %1079 = vector.shape_cast %1078 : vector<8x1xf32> to vector<8x1xf32>
    %1080 = vector.broadcast %1079 : vector<8x1xf32> to vector<8x80xf32>
    %1081 = vector.broadcast %cst_299 : f32 to vector<8x80xf32>
    %1082 = arith.select %1077, %1080, %1081 : vector<8x80xi1>, vector<8x80xf32>
    %1083 = arith.addf %1074, %1082 : vector<8x80xf32>
    %1084 = vector.extract_strided_slice %634 {offsets = [0, 2], sizes = [8, 1], strides = [1, 1]} : vector<8x8xi32> to vector<8x1xi32>
    %1085 = vector.broadcast %1084 : vector<8x1xi32> to vector<8x80xi32>
    %1086 = arith.cmpi eq, %1085, %666 : vector<8x80xi32>
    %1087 = vector.extract_strided_slice %621 {offsets = [0, 2], sizes = [8, 1], strides = [1, 1]} : vector<8x8xf32> to vector<8x1xf32>
    %cst_300 = arith.constant 0.000000e+00 : f32
    %1088 = vector.shape_cast %1087 : vector<8x1xf32> to vector<8x1xf32>
    %1089 = vector.broadcast %1088 : vector<8x1xf32> to vector<8x80xf32>
    %1090 = vector.broadcast %cst_300 : f32 to vector<8x80xf32>
    %1091 = arith.select %1086, %1089, %1090 : vector<8x80xi1>, vector<8x80xf32>
    %1092 = arith.addf %1083, %1091 : vector<8x80xf32>
    %1093 = vector.extract_strided_slice %665 {offsets = [0, 2], sizes = [8, 1], strides = [1, 1]} : vector<8x8xi32> to vector<8x1xi32>
    %1094 = vector.broadcast %1093 : vector<8x1xi32> to vector<8x80xi32>
    %1095 = arith.cmpi eq, %1094, %666 : vector<8x80xi32>
    %1096 = vector.extract_strided_slice %652 {offsets = [0, 2], sizes = [8, 1], strides = [1, 1]} : vector<8x8xf32> to vector<8x1xf32>
    %cst_301 = arith.constant 0.000000e+00 : f32
    %1097 = vector.shape_cast %1096 : vector<8x1xf32> to vector<8x1xf32>
    %1098 = vector.broadcast %1097 : vector<8x1xf32> to vector<8x80xf32>
    %1099 = vector.broadcast %cst_301 : f32 to vector<8x80xf32>
    %1100 = arith.select %1095, %1098, %1099 : vector<8x80xi1>, vector<8x80xf32>
    %1101 = arith.addf %1092, %1100 : vector<8x80xf32>
    %cst_302 = arith.constant 0.000000e+00 : f32
    %1102 = vector.broadcast %cst_302 : f32 to vector<8x80xf32>
    %1103 = vector.extract_strided_slice %101 {offsets = [0, 3], sizes = [8, 1], strides = [1, 1]} : vector<8x8xi32> to vector<8x1xi32>
    %1104 = vector.broadcast %1103 : vector<8x1xi32> to vector<8x80xi32>
    %1105 = arith.cmpi eq, %1104, %666 : vector<8x80xi32>
    %1106 = vector.extract_strided_slice %88 {offsets = [0, 3], sizes = [8, 1], strides = [1, 1]} : vector<8x8xf32> to vector<8x1xf32>
    %cst_303 = arith.constant 0.000000e+00 : f32
    %1107 = vector.shape_cast %1106 : vector<8x1xf32> to vector<8x1xf32>
    %1108 = vector.broadcast %1107 : vector<8x1xf32> to vector<8x80xf32>
    %1109 = vector.broadcast %cst_303 : f32 to vector<8x80xf32>
    %1110 = arith.select %1105, %1108, %1109 : vector<8x80xi1>, vector<8x80xf32>
    %1111 = arith.addf %1102, %1110 : vector<8x80xf32>
    %1112 = vector.extract_strided_slice %132 {offsets = [0, 3], sizes = [8, 1], strides = [1, 1]} : vector<8x8xi32> to vector<8x1xi32>
    %1113 = vector.broadcast %1112 : vector<8x1xi32> to vector<8x80xi32>
    %1114 = arith.cmpi eq, %1113, %666 : vector<8x80xi32>
    %1115 = vector.extract_strided_slice %119 {offsets = [0, 3], sizes = [8, 1], strides = [1, 1]} : vector<8x8xf32> to vector<8x1xf32>
    %cst_304 = arith.constant 0.000000e+00 : f32
    %1116 = vector.shape_cast %1115 : vector<8x1xf32> to vector<8x1xf32>
    %1117 = vector.broadcast %1116 : vector<8x1xf32> to vector<8x80xf32>
    %1118 = vector.broadcast %cst_304 : f32 to vector<8x80xf32>
    %1119 = arith.select %1114, %1117, %1118 : vector<8x80xi1>, vector<8x80xf32>
    %1120 = arith.addf %1111, %1119 : vector<8x80xf32>
    %1121 = vector.extract_strided_slice %163 {offsets = [0, 3], sizes = [8, 1], strides = [1, 1]} : vector<8x8xi32> to vector<8x1xi32>
    %1122 = vector.broadcast %1121 : vector<8x1xi32> to vector<8x80xi32>
    %1123 = arith.cmpi eq, %1122, %666 : vector<8x80xi32>
    %1124 = vector.extract_strided_slice %150 {offsets = [0, 3], sizes = [8, 1], strides = [1, 1]} : vector<8x8xf32> to vector<8x1xf32>
    %cst_305 = arith.constant 0.000000e+00 : f32
    %1125 = vector.shape_cast %1124 : vector<8x1xf32> to vector<8x1xf32>
    %1126 = vector.broadcast %1125 : vector<8x1xf32> to vector<8x80xf32>
    %1127 = vector.broadcast %cst_305 : f32 to vector<8x80xf32>
    %1128 = arith.select %1123, %1126, %1127 : vector<8x80xi1>, vector<8x80xf32>
    %1129 = arith.addf %1120, %1128 : vector<8x80xf32>
    %1130 = vector.extract_strided_slice %194 {offsets = [0, 3], sizes = [8, 1], strides = [1, 1]} : vector<8x8xi32> to vector<8x1xi32>
    %1131 = vector.broadcast %1130 : vector<8x1xi32> to vector<8x80xi32>
    %1132 = arith.cmpi eq, %1131, %666 : vector<8x80xi32>
    %1133 = vector.extract_strided_slice %181 {offsets = [0, 3], sizes = [8, 1], strides = [1, 1]} : vector<8x8xf32> to vector<8x1xf32>
    %cst_306 = arith.constant 0.000000e+00 : f32
    %1134 = vector.shape_cast %1133 : vector<8x1xf32> to vector<8x1xf32>
    %1135 = vector.broadcast %1134 : vector<8x1xf32> to vector<8x80xf32>
    %1136 = vector.broadcast %cst_306 : f32 to vector<8x80xf32>
    %1137 = arith.select %1132, %1135, %1136 : vector<8x80xi1>, vector<8x80xf32>
    %1138 = arith.addf %1129, %1137 : vector<8x80xf32>
    %1139 = vector.extract_strided_slice %258 {offsets = [0, 3], sizes = [8, 1], strides = [1, 1]} : vector<8x8xi32> to vector<8x1xi32>
    %1140 = vector.broadcast %1139 : vector<8x1xi32> to vector<8x80xi32>
    %1141 = arith.cmpi eq, %1140, %666 : vector<8x80xi32>
    %1142 = vector.extract_strided_slice %245 {offsets = [0, 3], sizes = [8, 1], strides = [1, 1]} : vector<8x8xf32> to vector<8x1xf32>
    %cst_307 = arith.constant 0.000000e+00 : f32
    %1143 = vector.shape_cast %1142 : vector<8x1xf32> to vector<8x1xf32>
    %1144 = vector.broadcast %1143 : vector<8x1xf32> to vector<8x80xf32>
    %1145 = vector.broadcast %cst_307 : f32 to vector<8x80xf32>
    %1146 = arith.select %1141, %1144, %1145 : vector<8x80xi1>, vector<8x80xf32>
    %1147 = arith.addf %1138, %1146 : vector<8x80xf32>
    %1148 = vector.extract_strided_slice %289 {offsets = [0, 3], sizes = [8, 1], strides = [1, 1]} : vector<8x8xi32> to vector<8x1xi32>
    %1149 = vector.broadcast %1148 : vector<8x1xi32> to vector<8x80xi32>
    %1150 = arith.cmpi eq, %1149, %666 : vector<8x80xi32>
    %1151 = vector.extract_strided_slice %276 {offsets = [0, 3], sizes = [8, 1], strides = [1, 1]} : vector<8x8xf32> to vector<8x1xf32>
    %cst_308 = arith.constant 0.000000e+00 : f32
    %1152 = vector.shape_cast %1151 : vector<8x1xf32> to vector<8x1xf32>
    %1153 = vector.broadcast %1152 : vector<8x1xf32> to vector<8x80xf32>
    %1154 = vector.broadcast %cst_308 : f32 to vector<8x80xf32>
    %1155 = arith.select %1150, %1153, %1154 : vector<8x80xi1>, vector<8x80xf32>
    %1156 = arith.addf %1147, %1155 : vector<8x80xf32>
    %1157 = vector.extract_strided_slice %320 {offsets = [0, 3], sizes = [8, 1], strides = [1, 1]} : vector<8x8xi32> to vector<8x1xi32>
    %1158 = vector.broadcast %1157 : vector<8x1xi32> to vector<8x80xi32>
    %1159 = arith.cmpi eq, %1158, %666 : vector<8x80xi32>
    %1160 = vector.extract_strided_slice %307 {offsets = [0, 3], sizes = [8, 1], strides = [1, 1]} : vector<8x8xf32> to vector<8x1xf32>
    %cst_309 = arith.constant 0.000000e+00 : f32
    %1161 = vector.shape_cast %1160 : vector<8x1xf32> to vector<8x1xf32>
    %1162 = vector.broadcast %1161 : vector<8x1xf32> to vector<8x80xf32>
    %1163 = vector.broadcast %cst_309 : f32 to vector<8x80xf32>
    %1164 = arith.select %1159, %1162, %1163 : vector<8x80xi1>, vector<8x80xf32>
    %1165 = arith.addf %1156, %1164 : vector<8x80xf32>
    %1166 = vector.extract_strided_slice %351 {offsets = [0, 3], sizes = [8, 1], strides = [1, 1]} : vector<8x8xi32> to vector<8x1xi32>
    %1167 = vector.broadcast %1166 : vector<8x1xi32> to vector<8x80xi32>
    %1168 = arith.cmpi eq, %1167, %666 : vector<8x80xi32>
    %1169 = vector.extract_strided_slice %338 {offsets = [0, 3], sizes = [8, 1], strides = [1, 1]} : vector<8x8xf32> to vector<8x1xf32>
    %cst_310 = arith.constant 0.000000e+00 : f32
    %1170 = vector.shape_cast %1169 : vector<8x1xf32> to vector<8x1xf32>
    %1171 = vector.broadcast %1170 : vector<8x1xf32> to vector<8x80xf32>
    %1172 = vector.broadcast %cst_310 : f32 to vector<8x80xf32>
    %1173 = arith.select %1168, %1171, %1172 : vector<8x80xi1>, vector<8x80xf32>
    %1174 = arith.addf %1165, %1173 : vector<8x80xf32>
    %1175 = vector.extract_strided_slice %415 {offsets = [0, 3], sizes = [8, 1], strides = [1, 1]} : vector<8x8xi32> to vector<8x1xi32>
    %1176 = vector.broadcast %1175 : vector<8x1xi32> to vector<8x80xi32>
    %1177 = arith.cmpi eq, %1176, %666 : vector<8x80xi32>
    %1178 = vector.extract_strided_slice %402 {offsets = [0, 3], sizes = [8, 1], strides = [1, 1]} : vector<8x8xf32> to vector<8x1xf32>
    %cst_311 = arith.constant 0.000000e+00 : f32
    %1179 = vector.shape_cast %1178 : vector<8x1xf32> to vector<8x1xf32>
    %1180 = vector.broadcast %1179 : vector<8x1xf32> to vector<8x80xf32>
    %1181 = vector.broadcast %cst_311 : f32 to vector<8x80xf32>
    %1182 = arith.select %1177, %1180, %1181 : vector<8x80xi1>, vector<8x80xf32>
    %1183 = arith.addf %1174, %1182 : vector<8x80xf32>
    %1184 = vector.extract_strided_slice %446 {offsets = [0, 3], sizes = [8, 1], strides = [1, 1]} : vector<8x8xi32> to vector<8x1xi32>
    %1185 = vector.broadcast %1184 : vector<8x1xi32> to vector<8x80xi32>
    %1186 = arith.cmpi eq, %1185, %666 : vector<8x80xi32>
    %1187 = vector.extract_strided_slice %433 {offsets = [0, 3], sizes = [8, 1], strides = [1, 1]} : vector<8x8xf32> to vector<8x1xf32>
    %cst_312 = arith.constant 0.000000e+00 : f32
    %1188 = vector.shape_cast %1187 : vector<8x1xf32> to vector<8x1xf32>
    %1189 = vector.broadcast %1188 : vector<8x1xf32> to vector<8x80xf32>
    %1190 = vector.broadcast %cst_312 : f32 to vector<8x80xf32>
    %1191 = arith.select %1186, %1189, %1190 : vector<8x80xi1>, vector<8x80xf32>
    %1192 = arith.addf %1183, %1191 : vector<8x80xf32>
    %1193 = vector.extract_strided_slice %477 {offsets = [0, 3], sizes = [8, 1], strides = [1, 1]} : vector<8x8xi32> to vector<8x1xi32>
    %1194 = vector.broadcast %1193 : vector<8x1xi32> to vector<8x80xi32>
    %1195 = arith.cmpi eq, %1194, %666 : vector<8x80xi32>
    %1196 = vector.extract_strided_slice %464 {offsets = [0, 3], sizes = [8, 1], strides = [1, 1]} : vector<8x8xf32> to vector<8x1xf32>
    %cst_313 = arith.constant 0.000000e+00 : f32
    %1197 = vector.shape_cast %1196 : vector<8x1xf32> to vector<8x1xf32>
    %1198 = vector.broadcast %1197 : vector<8x1xf32> to vector<8x80xf32>
    %1199 = vector.broadcast %cst_313 : f32 to vector<8x80xf32>
    %1200 = arith.select %1195, %1198, %1199 : vector<8x80xi1>, vector<8x80xf32>
    %1201 = arith.addf %1192, %1200 : vector<8x80xf32>
    %1202 = vector.extract_strided_slice %508 {offsets = [0, 3], sizes = [8, 1], strides = [1, 1]} : vector<8x8xi32> to vector<8x1xi32>
    %1203 = vector.broadcast %1202 : vector<8x1xi32> to vector<8x80xi32>
    %1204 = arith.cmpi eq, %1203, %666 : vector<8x80xi32>
    %1205 = vector.extract_strided_slice %495 {offsets = [0, 3], sizes = [8, 1], strides = [1, 1]} : vector<8x8xf32> to vector<8x1xf32>
    %cst_314 = arith.constant 0.000000e+00 : f32
    %1206 = vector.shape_cast %1205 : vector<8x1xf32> to vector<8x1xf32>
    %1207 = vector.broadcast %1206 : vector<8x1xf32> to vector<8x80xf32>
    %1208 = vector.broadcast %cst_314 : f32 to vector<8x80xf32>
    %1209 = arith.select %1204, %1207, %1208 : vector<8x80xi1>, vector<8x80xf32>
    %1210 = arith.addf %1201, %1209 : vector<8x80xf32>
    %1211 = vector.extract_strided_slice %572 {offsets = [0, 3], sizes = [8, 1], strides = [1, 1]} : vector<8x8xi32> to vector<8x1xi32>
    %1212 = vector.broadcast %1211 : vector<8x1xi32> to vector<8x80xi32>
    %1213 = arith.cmpi eq, %1212, %666 : vector<8x80xi32>
    %1214 = vector.extract_strided_slice %559 {offsets = [0, 3], sizes = [8, 1], strides = [1, 1]} : vector<8x8xf32> to vector<8x1xf32>
    %cst_315 = arith.constant 0.000000e+00 : f32
    %1215 = vector.shape_cast %1214 : vector<8x1xf32> to vector<8x1xf32>
    %1216 = vector.broadcast %1215 : vector<8x1xf32> to vector<8x80xf32>
    %1217 = vector.broadcast %cst_315 : f32 to vector<8x80xf32>
    %1218 = arith.select %1213, %1216, %1217 : vector<8x80xi1>, vector<8x80xf32>
    %1219 = arith.addf %1210, %1218 : vector<8x80xf32>
    %1220 = vector.extract_strided_slice %603 {offsets = [0, 3], sizes = [8, 1], strides = [1, 1]} : vector<8x8xi32> to vector<8x1xi32>
    %1221 = vector.broadcast %1220 : vector<8x1xi32> to vector<8x80xi32>
    %1222 = arith.cmpi eq, %1221, %666 : vector<8x80xi32>
    %1223 = vector.extract_strided_slice %590 {offsets = [0, 3], sizes = [8, 1], strides = [1, 1]} : vector<8x8xf32> to vector<8x1xf32>
    %cst_316 = arith.constant 0.000000e+00 : f32
    %1224 = vector.shape_cast %1223 : vector<8x1xf32> to vector<8x1xf32>
    %1225 = vector.broadcast %1224 : vector<8x1xf32> to vector<8x80xf32>
    %1226 = vector.broadcast %cst_316 : f32 to vector<8x80xf32>
    %1227 = arith.select %1222, %1225, %1226 : vector<8x80xi1>, vector<8x80xf32>
    %1228 = arith.addf %1219, %1227 : vector<8x80xf32>
    %1229 = vector.extract_strided_slice %634 {offsets = [0, 3], sizes = [8, 1], strides = [1, 1]} : vector<8x8xi32> to vector<8x1xi32>
    %1230 = vector.broadcast %1229 : vector<8x1xi32> to vector<8x80xi32>
    %1231 = arith.cmpi eq, %1230, %666 : vector<8x80xi32>
    %1232 = vector.extract_strided_slice %621 {offsets = [0, 3], sizes = [8, 1], strides = [1, 1]} : vector<8x8xf32> to vector<8x1xf32>
    %cst_317 = arith.constant 0.000000e+00 : f32
    %1233 = vector.shape_cast %1232 : vector<8x1xf32> to vector<8x1xf32>
    %1234 = vector.broadcast %1233 : vector<8x1xf32> to vector<8x80xf32>
    %1235 = vector.broadcast %cst_317 : f32 to vector<8x80xf32>
    %1236 = arith.select %1231, %1234, %1235 : vector<8x80xi1>, vector<8x80xf32>
    %1237 = arith.addf %1228, %1236 : vector<8x80xf32>
    %1238 = vector.extract_strided_slice %665 {offsets = [0, 3], sizes = [8, 1], strides = [1, 1]} : vector<8x8xi32> to vector<8x1xi32>
    %1239 = vector.broadcast %1238 : vector<8x1xi32> to vector<8x80xi32>
    %1240 = arith.cmpi eq, %1239, %666 : vector<8x80xi32>
    %1241 = vector.extract_strided_slice %652 {offsets = [0, 3], sizes = [8, 1], strides = [1, 1]} : vector<8x8xf32> to vector<8x1xf32>
    %cst_318 = arith.constant 0.000000e+00 : f32
    %1242 = vector.shape_cast %1241 : vector<8x1xf32> to vector<8x1xf32>
    %1243 = vector.broadcast %1242 : vector<8x1xf32> to vector<8x80xf32>
    %1244 = vector.broadcast %cst_318 : f32 to vector<8x80xf32>
    %1245 = arith.select %1240, %1243, %1244 : vector<8x80xi1>, vector<8x80xf32>
    %1246 = arith.addf %1237, %1245 : vector<8x80xf32>
    %cst_319 = arith.constant 0.000000e+00 : f32
    %1247 = vector.broadcast %cst_319 : f32 to vector<8x80xf32>
    %1248 = vector.extract_strided_slice %101 {offsets = [0, 4], sizes = [8, 1], strides = [1, 1]} : vector<8x8xi32> to vector<8x1xi32>
    %1249 = vector.broadcast %1248 : vector<8x1xi32> to vector<8x80xi32>
    %1250 = arith.cmpi eq, %1249, %666 : vector<8x80xi32>
    %1251 = vector.extract_strided_slice %88 {offsets = [0, 4], sizes = [8, 1], strides = [1, 1]} : vector<8x8xf32> to vector<8x1xf32>
    %cst_320 = arith.constant 0.000000e+00 : f32
    %1252 = vector.shape_cast %1251 : vector<8x1xf32> to vector<8x1xf32>
    %1253 = vector.broadcast %1252 : vector<8x1xf32> to vector<8x80xf32>
    %1254 = vector.broadcast %cst_320 : f32 to vector<8x80xf32>
    %1255 = arith.select %1250, %1253, %1254 : vector<8x80xi1>, vector<8x80xf32>
    %1256 = arith.addf %1247, %1255 : vector<8x80xf32>
    %1257 = vector.extract_strided_slice %132 {offsets = [0, 4], sizes = [8, 1], strides = [1, 1]} : vector<8x8xi32> to vector<8x1xi32>
    %1258 = vector.broadcast %1257 : vector<8x1xi32> to vector<8x80xi32>
    %1259 = arith.cmpi eq, %1258, %666 : vector<8x80xi32>
    %1260 = vector.extract_strided_slice %119 {offsets = [0, 4], sizes = [8, 1], strides = [1, 1]} : vector<8x8xf32> to vector<8x1xf32>
    %cst_321 = arith.constant 0.000000e+00 : f32
    %1261 = vector.shape_cast %1260 : vector<8x1xf32> to vector<8x1xf32>
    %1262 = vector.broadcast %1261 : vector<8x1xf32> to vector<8x80xf32>
    %1263 = vector.broadcast %cst_321 : f32 to vector<8x80xf32>
    %1264 = arith.select %1259, %1262, %1263 : vector<8x80xi1>, vector<8x80xf32>
    %1265 = arith.addf %1256, %1264 : vector<8x80xf32>
    %1266 = vector.extract_strided_slice %163 {offsets = [0, 4], sizes = [8, 1], strides = [1, 1]} : vector<8x8xi32> to vector<8x1xi32>
    %1267 = vector.broadcast %1266 : vector<8x1xi32> to vector<8x80xi32>
    %1268 = arith.cmpi eq, %1267, %666 : vector<8x80xi32>
    %1269 = vector.extract_strided_slice %150 {offsets = [0, 4], sizes = [8, 1], strides = [1, 1]} : vector<8x8xf32> to vector<8x1xf32>
    %cst_322 = arith.constant 0.000000e+00 : f32
    %1270 = vector.shape_cast %1269 : vector<8x1xf32> to vector<8x1xf32>
    %1271 = vector.broadcast %1270 : vector<8x1xf32> to vector<8x80xf32>
    %1272 = vector.broadcast %cst_322 : f32 to vector<8x80xf32>
    %1273 = arith.select %1268, %1271, %1272 : vector<8x80xi1>, vector<8x80xf32>
    %1274 = arith.addf %1265, %1273 : vector<8x80xf32>
    %1275 = vector.extract_strided_slice %194 {offsets = [0, 4], sizes = [8, 1], strides = [1, 1]} : vector<8x8xi32> to vector<8x1xi32>
    %1276 = vector.broadcast %1275 : vector<8x1xi32> to vector<8x80xi32>
    %1277 = arith.cmpi eq, %1276, %666 : vector<8x80xi32>
    %1278 = vector.extract_strided_slice %181 {offsets = [0, 4], sizes = [8, 1], strides = [1, 1]} : vector<8x8xf32> to vector<8x1xf32>
    %cst_323 = arith.constant 0.000000e+00 : f32
    %1279 = vector.shape_cast %1278 : vector<8x1xf32> to vector<8x1xf32>
    %1280 = vector.broadcast %1279 : vector<8x1xf32> to vector<8x80xf32>
    %1281 = vector.broadcast %cst_323 : f32 to vector<8x80xf32>
    %1282 = arith.select %1277, %1280, %1281 : vector<8x80xi1>, vector<8x80xf32>
    %1283 = arith.addf %1274, %1282 : vector<8x80xf32>
    %1284 = vector.extract_strided_slice %258 {offsets = [0, 4], sizes = [8, 1], strides = [1, 1]} : vector<8x8xi32> to vector<8x1xi32>
    %1285 = vector.broadcast %1284 : vector<8x1xi32> to vector<8x80xi32>
    %1286 = arith.cmpi eq, %1285, %666 : vector<8x80xi32>
    %1287 = vector.extract_strided_slice %245 {offsets = [0, 4], sizes = [8, 1], strides = [1, 1]} : vector<8x8xf32> to vector<8x1xf32>
    %cst_324 = arith.constant 0.000000e+00 : f32
    %1288 = vector.shape_cast %1287 : vector<8x1xf32> to vector<8x1xf32>
    %1289 = vector.broadcast %1288 : vector<8x1xf32> to vector<8x80xf32>
    %1290 = vector.broadcast %cst_324 : f32 to vector<8x80xf32>
    %1291 = arith.select %1286, %1289, %1290 : vector<8x80xi1>, vector<8x80xf32>
    %1292 = arith.addf %1283, %1291 : vector<8x80xf32>
    %1293 = vector.extract_strided_slice %289 {offsets = [0, 4], sizes = [8, 1], strides = [1, 1]} : vector<8x8xi32> to vector<8x1xi32>
    %1294 = vector.broadcast %1293 : vector<8x1xi32> to vector<8x80xi32>
    %1295 = arith.cmpi eq, %1294, %666 : vector<8x80xi32>
    %1296 = vector.extract_strided_slice %276 {offsets = [0, 4], sizes = [8, 1], strides = [1, 1]} : vector<8x8xf32> to vector<8x1xf32>
    %cst_325 = arith.constant 0.000000e+00 : f32
    %1297 = vector.shape_cast %1296 : vector<8x1xf32> to vector<8x1xf32>
    %1298 = vector.broadcast %1297 : vector<8x1xf32> to vector<8x80xf32>
    %1299 = vector.broadcast %cst_325 : f32 to vector<8x80xf32>
    %1300 = arith.select %1295, %1298, %1299 : vector<8x80xi1>, vector<8x80xf32>
    %1301 = arith.addf %1292, %1300 : vector<8x80xf32>
    %1302 = vector.extract_strided_slice %320 {offsets = [0, 4], sizes = [8, 1], strides = [1, 1]} : vector<8x8xi32> to vector<8x1xi32>
    %1303 = vector.broadcast %1302 : vector<8x1xi32> to vector<8x80xi32>
    %1304 = arith.cmpi eq, %1303, %666 : vector<8x80xi32>
    %1305 = vector.extract_strided_slice %307 {offsets = [0, 4], sizes = [8, 1], strides = [1, 1]} : vector<8x8xf32> to vector<8x1xf32>
    %cst_326 = arith.constant 0.000000e+00 : f32
    %1306 = vector.shape_cast %1305 : vector<8x1xf32> to vector<8x1xf32>
    %1307 = vector.broadcast %1306 : vector<8x1xf32> to vector<8x80xf32>
    %1308 = vector.broadcast %cst_326 : f32 to vector<8x80xf32>
    %1309 = arith.select %1304, %1307, %1308 : vector<8x80xi1>, vector<8x80xf32>
    %1310 = arith.addf %1301, %1309 : vector<8x80xf32>
    %1311 = vector.extract_strided_slice %351 {offsets = [0, 4], sizes = [8, 1], strides = [1, 1]} : vector<8x8xi32> to vector<8x1xi32>
    %1312 = vector.broadcast %1311 : vector<8x1xi32> to vector<8x80xi32>
    %1313 = arith.cmpi eq, %1312, %666 : vector<8x80xi32>
    %1314 = vector.extract_strided_slice %338 {offsets = [0, 4], sizes = [8, 1], strides = [1, 1]} : vector<8x8xf32> to vector<8x1xf32>
    %cst_327 = arith.constant 0.000000e+00 : f32
    %1315 = vector.shape_cast %1314 : vector<8x1xf32> to vector<8x1xf32>
    %1316 = vector.broadcast %1315 : vector<8x1xf32> to vector<8x80xf32>
    %1317 = vector.broadcast %cst_327 : f32 to vector<8x80xf32>
    %1318 = arith.select %1313, %1316, %1317 : vector<8x80xi1>, vector<8x80xf32>
    %1319 = arith.addf %1310, %1318 : vector<8x80xf32>
    %1320 = vector.extract_strided_slice %415 {offsets = [0, 4], sizes = [8, 1], strides = [1, 1]} : vector<8x8xi32> to vector<8x1xi32>
    %1321 = vector.broadcast %1320 : vector<8x1xi32> to vector<8x80xi32>
    %1322 = arith.cmpi eq, %1321, %666 : vector<8x80xi32>
    %1323 = vector.extract_strided_slice %402 {offsets = [0, 4], sizes = [8, 1], strides = [1, 1]} : vector<8x8xf32> to vector<8x1xf32>
    %cst_328 = arith.constant 0.000000e+00 : f32
    %1324 = vector.shape_cast %1323 : vector<8x1xf32> to vector<8x1xf32>
    %1325 = vector.broadcast %1324 : vector<8x1xf32> to vector<8x80xf32>
    %1326 = vector.broadcast %cst_328 : f32 to vector<8x80xf32>
    %1327 = arith.select %1322, %1325, %1326 : vector<8x80xi1>, vector<8x80xf32>
    %1328 = arith.addf %1319, %1327 : vector<8x80xf32>
    %1329 = vector.extract_strided_slice %446 {offsets = [0, 4], sizes = [8, 1], strides = [1, 1]} : vector<8x8xi32> to vector<8x1xi32>
    %1330 = vector.broadcast %1329 : vector<8x1xi32> to vector<8x80xi32>
    %1331 = arith.cmpi eq, %1330, %666 : vector<8x80xi32>
    %1332 = vector.extract_strided_slice %433 {offsets = [0, 4], sizes = [8, 1], strides = [1, 1]} : vector<8x8xf32> to vector<8x1xf32>
    %cst_329 = arith.constant 0.000000e+00 : f32
    %1333 = vector.shape_cast %1332 : vector<8x1xf32> to vector<8x1xf32>
    %1334 = vector.broadcast %1333 : vector<8x1xf32> to vector<8x80xf32>
    %1335 = vector.broadcast %cst_329 : f32 to vector<8x80xf32>
    %1336 = arith.select %1331, %1334, %1335 : vector<8x80xi1>, vector<8x80xf32>
    %1337 = arith.addf %1328, %1336 : vector<8x80xf32>
    %1338 = vector.extract_strided_slice %477 {offsets = [0, 4], sizes = [8, 1], strides = [1, 1]} : vector<8x8xi32> to vector<8x1xi32>
    %1339 = vector.broadcast %1338 : vector<8x1xi32> to vector<8x80xi32>
    %1340 = arith.cmpi eq, %1339, %666 : vector<8x80xi32>
    %1341 = vector.extract_strided_slice %464 {offsets = [0, 4], sizes = [8, 1], strides = [1, 1]} : vector<8x8xf32> to vector<8x1xf32>
    %cst_330 = arith.constant 0.000000e+00 : f32
    %1342 = vector.shape_cast %1341 : vector<8x1xf32> to vector<8x1xf32>
    %1343 = vector.broadcast %1342 : vector<8x1xf32> to vector<8x80xf32>
    %1344 = vector.broadcast %cst_330 : f32 to vector<8x80xf32>
    %1345 = arith.select %1340, %1343, %1344 : vector<8x80xi1>, vector<8x80xf32>
    %1346 = arith.addf %1337, %1345 : vector<8x80xf32>
    %1347 = vector.extract_strided_slice %508 {offsets = [0, 4], sizes = [8, 1], strides = [1, 1]} : vector<8x8xi32> to vector<8x1xi32>
    %1348 = vector.broadcast %1347 : vector<8x1xi32> to vector<8x80xi32>
    %1349 = arith.cmpi eq, %1348, %666 : vector<8x80xi32>
    %1350 = vector.extract_strided_slice %495 {offsets = [0, 4], sizes = [8, 1], strides = [1, 1]} : vector<8x8xf32> to vector<8x1xf32>
    %cst_331 = arith.constant 0.000000e+00 : f32
    %1351 = vector.shape_cast %1350 : vector<8x1xf32> to vector<8x1xf32>
    %1352 = vector.broadcast %1351 : vector<8x1xf32> to vector<8x80xf32>
    %1353 = vector.broadcast %cst_331 : f32 to vector<8x80xf32>
    %1354 = arith.select %1349, %1352, %1353 : vector<8x80xi1>, vector<8x80xf32>
    %1355 = arith.addf %1346, %1354 : vector<8x80xf32>
    %1356 = vector.extract_strided_slice %572 {offsets = [0, 4], sizes = [8, 1], strides = [1, 1]} : vector<8x8xi32> to vector<8x1xi32>
    %1357 = vector.broadcast %1356 : vector<8x1xi32> to vector<8x80xi32>
    %1358 = arith.cmpi eq, %1357, %666 : vector<8x80xi32>
    %1359 = vector.extract_strided_slice %559 {offsets = [0, 4], sizes = [8, 1], strides = [1, 1]} : vector<8x8xf32> to vector<8x1xf32>
    %cst_332 = arith.constant 0.000000e+00 : f32
    %1360 = vector.shape_cast %1359 : vector<8x1xf32> to vector<8x1xf32>
    %1361 = vector.broadcast %1360 : vector<8x1xf32> to vector<8x80xf32>
    %1362 = vector.broadcast %cst_332 : f32 to vector<8x80xf32>
    %1363 = arith.select %1358, %1361, %1362 : vector<8x80xi1>, vector<8x80xf32>
    %1364 = arith.addf %1355, %1363 : vector<8x80xf32>
    %1365 = vector.extract_strided_slice %603 {offsets = [0, 4], sizes = [8, 1], strides = [1, 1]} : vector<8x8xi32> to vector<8x1xi32>
    %1366 = vector.broadcast %1365 : vector<8x1xi32> to vector<8x80xi32>
    %1367 = arith.cmpi eq, %1366, %666 : vector<8x80xi32>
    %1368 = vector.extract_strided_slice %590 {offsets = [0, 4], sizes = [8, 1], strides = [1, 1]} : vector<8x8xf32> to vector<8x1xf32>
    %cst_333 = arith.constant 0.000000e+00 : f32
    %1369 = vector.shape_cast %1368 : vector<8x1xf32> to vector<8x1xf32>
    %1370 = vector.broadcast %1369 : vector<8x1xf32> to vector<8x80xf32>
    %1371 = vector.broadcast %cst_333 : f32 to vector<8x80xf32>
    %1372 = arith.select %1367, %1370, %1371 : vector<8x80xi1>, vector<8x80xf32>
    %1373 = arith.addf %1364, %1372 : vector<8x80xf32>
    %1374 = vector.extract_strided_slice %634 {offsets = [0, 4], sizes = [8, 1], strides = [1, 1]} : vector<8x8xi32> to vector<8x1xi32>
    %1375 = vector.broadcast %1374 : vector<8x1xi32> to vector<8x80xi32>
    %1376 = arith.cmpi eq, %1375, %666 : vector<8x80xi32>
    %1377 = vector.extract_strided_slice %621 {offsets = [0, 4], sizes = [8, 1], strides = [1, 1]} : vector<8x8xf32> to vector<8x1xf32>
    %cst_334 = arith.constant 0.000000e+00 : f32
    %1378 = vector.shape_cast %1377 : vector<8x1xf32> to vector<8x1xf32>
    %1379 = vector.broadcast %1378 : vector<8x1xf32> to vector<8x80xf32>
    %1380 = vector.broadcast %cst_334 : f32 to vector<8x80xf32>
    %1381 = arith.select %1376, %1379, %1380 : vector<8x80xi1>, vector<8x80xf32>
    %1382 = arith.addf %1373, %1381 : vector<8x80xf32>
    %1383 = vector.extract_strided_slice %665 {offsets = [0, 4], sizes = [8, 1], strides = [1, 1]} : vector<8x8xi32> to vector<8x1xi32>
    %1384 = vector.broadcast %1383 : vector<8x1xi32> to vector<8x80xi32>
    %1385 = arith.cmpi eq, %1384, %666 : vector<8x80xi32>
    %1386 = vector.extract_strided_slice %652 {offsets = [0, 4], sizes = [8, 1], strides = [1, 1]} : vector<8x8xf32> to vector<8x1xf32>
    %cst_335 = arith.constant 0.000000e+00 : f32
    %1387 = vector.shape_cast %1386 : vector<8x1xf32> to vector<8x1xf32>
    %1388 = vector.broadcast %1387 : vector<8x1xf32> to vector<8x80xf32>
    %1389 = vector.broadcast %cst_335 : f32 to vector<8x80xf32>
    %1390 = arith.select %1385, %1388, %1389 : vector<8x80xi1>, vector<8x80xf32>
    %1391 = arith.addf %1382, %1390 : vector<8x80xf32>
    %cst_336 = arith.constant 0.000000e+00 : f32
    %1392 = vector.broadcast %cst_336 : f32 to vector<8x80xf32>
    %1393 = vector.extract_strided_slice %101 {offsets = [0, 5], sizes = [8, 1], strides = [1, 1]} : vector<8x8xi32> to vector<8x1xi32>
    %1394 = vector.broadcast %1393 : vector<8x1xi32> to vector<8x80xi32>
    %1395 = arith.cmpi eq, %1394, %666 : vector<8x80xi32>
    %1396 = vector.extract_strided_slice %88 {offsets = [0, 5], sizes = [8, 1], strides = [1, 1]} : vector<8x8xf32> to vector<8x1xf32>
    %cst_337 = arith.constant 0.000000e+00 : f32
    %1397 = vector.shape_cast %1396 : vector<8x1xf32> to vector<8x1xf32>
    %1398 = vector.broadcast %1397 : vector<8x1xf32> to vector<8x80xf32>
    %1399 = vector.broadcast %cst_337 : f32 to vector<8x80xf32>
    %1400 = arith.select %1395, %1398, %1399 : vector<8x80xi1>, vector<8x80xf32>
    %1401 = arith.addf %1392, %1400 : vector<8x80xf32>
    %1402 = vector.extract_strided_slice %132 {offsets = [0, 5], sizes = [8, 1], strides = [1, 1]} : vector<8x8xi32> to vector<8x1xi32>
    %1403 = vector.broadcast %1402 : vector<8x1xi32> to vector<8x80xi32>
    %1404 = arith.cmpi eq, %1403, %666 : vector<8x80xi32>
    %1405 = vector.extract_strided_slice %119 {offsets = [0, 5], sizes = [8, 1], strides = [1, 1]} : vector<8x8xf32> to vector<8x1xf32>
    %cst_338 = arith.constant 0.000000e+00 : f32
    %1406 = vector.shape_cast %1405 : vector<8x1xf32> to vector<8x1xf32>
    %1407 = vector.broadcast %1406 : vector<8x1xf32> to vector<8x80xf32>
    %1408 = vector.broadcast %cst_338 : f32 to vector<8x80xf32>
    %1409 = arith.select %1404, %1407, %1408 : vector<8x80xi1>, vector<8x80xf32>
    %1410 = arith.addf %1401, %1409 : vector<8x80xf32>
    %1411 = vector.extract_strided_slice %163 {offsets = [0, 5], sizes = [8, 1], strides = [1, 1]} : vector<8x8xi32> to vector<8x1xi32>
    %1412 = vector.broadcast %1411 : vector<8x1xi32> to vector<8x80xi32>
    %1413 = arith.cmpi eq, %1412, %666 : vector<8x80xi32>
    %1414 = vector.extract_strided_slice %150 {offsets = [0, 5], sizes = [8, 1], strides = [1, 1]} : vector<8x8xf32> to vector<8x1xf32>
    %cst_339 = arith.constant 0.000000e+00 : f32
    %1415 = vector.shape_cast %1414 : vector<8x1xf32> to vector<8x1xf32>
    %1416 = vector.broadcast %1415 : vector<8x1xf32> to vector<8x80xf32>
    %1417 = vector.broadcast %cst_339 : f32 to vector<8x80xf32>
    %1418 = arith.select %1413, %1416, %1417 : vector<8x80xi1>, vector<8x80xf32>
    %1419 = arith.addf %1410, %1418 : vector<8x80xf32>
    %1420 = vector.extract_strided_slice %194 {offsets = [0, 5], sizes = [8, 1], strides = [1, 1]} : vector<8x8xi32> to vector<8x1xi32>
    %1421 = vector.broadcast %1420 : vector<8x1xi32> to vector<8x80xi32>
    %1422 = arith.cmpi eq, %1421, %666 : vector<8x80xi32>
    %1423 = vector.extract_strided_slice %181 {offsets = [0, 5], sizes = [8, 1], strides = [1, 1]} : vector<8x8xf32> to vector<8x1xf32>
    %cst_340 = arith.constant 0.000000e+00 : f32
    %1424 = vector.shape_cast %1423 : vector<8x1xf32> to vector<8x1xf32>
    %1425 = vector.broadcast %1424 : vector<8x1xf32> to vector<8x80xf32>
    %1426 = vector.broadcast %cst_340 : f32 to vector<8x80xf32>
    %1427 = arith.select %1422, %1425, %1426 : vector<8x80xi1>, vector<8x80xf32>
    %1428 = arith.addf %1419, %1427 : vector<8x80xf32>
    %1429 = vector.extract_strided_slice %258 {offsets = [0, 5], sizes = [8, 1], strides = [1, 1]} : vector<8x8xi32> to vector<8x1xi32>
    %1430 = vector.broadcast %1429 : vector<8x1xi32> to vector<8x80xi32>
    %1431 = arith.cmpi eq, %1430, %666 : vector<8x80xi32>
    %1432 = vector.extract_strided_slice %245 {offsets = [0, 5], sizes = [8, 1], strides = [1, 1]} : vector<8x8xf32> to vector<8x1xf32>
    %cst_341 = arith.constant 0.000000e+00 : f32
    %1433 = vector.shape_cast %1432 : vector<8x1xf32> to vector<8x1xf32>
    %1434 = vector.broadcast %1433 : vector<8x1xf32> to vector<8x80xf32>
    %1435 = vector.broadcast %cst_341 : f32 to vector<8x80xf32>
    %1436 = arith.select %1431, %1434, %1435 : vector<8x80xi1>, vector<8x80xf32>
    %1437 = arith.addf %1428, %1436 : vector<8x80xf32>
    %1438 = vector.extract_strided_slice %289 {offsets = [0, 5], sizes = [8, 1], strides = [1, 1]} : vector<8x8xi32> to vector<8x1xi32>
    %1439 = vector.broadcast %1438 : vector<8x1xi32> to vector<8x80xi32>
    %1440 = arith.cmpi eq, %1439, %666 : vector<8x80xi32>
    %1441 = vector.extract_strided_slice %276 {offsets = [0, 5], sizes = [8, 1], strides = [1, 1]} : vector<8x8xf32> to vector<8x1xf32>
    %cst_342 = arith.constant 0.000000e+00 : f32
    %1442 = vector.shape_cast %1441 : vector<8x1xf32> to vector<8x1xf32>
    %1443 = vector.broadcast %1442 : vector<8x1xf32> to vector<8x80xf32>
    %1444 = vector.broadcast %cst_342 : f32 to vector<8x80xf32>
    %1445 = arith.select %1440, %1443, %1444 : vector<8x80xi1>, vector<8x80xf32>
    %1446 = arith.addf %1437, %1445 : vector<8x80xf32>
    %1447 = vector.extract_strided_slice %320 {offsets = [0, 5], sizes = [8, 1], strides = [1, 1]} : vector<8x8xi32> to vector<8x1xi32>
    %1448 = vector.broadcast %1447 : vector<8x1xi32> to vector<8x80xi32>
    %1449 = arith.cmpi eq, %1448, %666 : vector<8x80xi32>
    %1450 = vector.extract_strided_slice %307 {offsets = [0, 5], sizes = [8, 1], strides = [1, 1]} : vector<8x8xf32> to vector<8x1xf32>
    %cst_343 = arith.constant 0.000000e+00 : f32
    %1451 = vector.shape_cast %1450 : vector<8x1xf32> to vector<8x1xf32>
    %1452 = vector.broadcast %1451 : vector<8x1xf32> to vector<8x80xf32>
    %1453 = vector.broadcast %cst_343 : f32 to vector<8x80xf32>
    %1454 = arith.select %1449, %1452, %1453 : vector<8x80xi1>, vector<8x80xf32>
    %1455 = arith.addf %1446, %1454 : vector<8x80xf32>
    %1456 = vector.extract_strided_slice %351 {offsets = [0, 5], sizes = [8, 1], strides = [1, 1]} : vector<8x8xi32> to vector<8x1xi32>
    %1457 = vector.broadcast %1456 : vector<8x1xi32> to vector<8x80xi32>
    %1458 = arith.cmpi eq, %1457, %666 : vector<8x80xi32>
    %1459 = vector.extract_strided_slice %338 {offsets = [0, 5], sizes = [8, 1], strides = [1, 1]} : vector<8x8xf32> to vector<8x1xf32>
    %cst_344 = arith.constant 0.000000e+00 : f32
    %1460 = vector.shape_cast %1459 : vector<8x1xf32> to vector<8x1xf32>
    %1461 = vector.broadcast %1460 : vector<8x1xf32> to vector<8x80xf32>
    %1462 = vector.broadcast %cst_344 : f32 to vector<8x80xf32>
    %1463 = arith.select %1458, %1461, %1462 : vector<8x80xi1>, vector<8x80xf32>
    %1464 = arith.addf %1455, %1463 : vector<8x80xf32>
    %1465 = vector.extract_strided_slice %415 {offsets = [0, 5], sizes = [8, 1], strides = [1, 1]} : vector<8x8xi32> to vector<8x1xi32>
    %1466 = vector.broadcast %1465 : vector<8x1xi32> to vector<8x80xi32>
    %1467 = arith.cmpi eq, %1466, %666 : vector<8x80xi32>
    %1468 = vector.extract_strided_slice %402 {offsets = [0, 5], sizes = [8, 1], strides = [1, 1]} : vector<8x8xf32> to vector<8x1xf32>
    %cst_345 = arith.constant 0.000000e+00 : f32
    %1469 = vector.shape_cast %1468 : vector<8x1xf32> to vector<8x1xf32>
    %1470 = vector.broadcast %1469 : vector<8x1xf32> to vector<8x80xf32>
    %1471 = vector.broadcast %cst_345 : f32 to vector<8x80xf32>
    %1472 = arith.select %1467, %1470, %1471 : vector<8x80xi1>, vector<8x80xf32>
    %1473 = arith.addf %1464, %1472 : vector<8x80xf32>
    %1474 = vector.extract_strided_slice %446 {offsets = [0, 5], sizes = [8, 1], strides = [1, 1]} : vector<8x8xi32> to vector<8x1xi32>
    %1475 = vector.broadcast %1474 : vector<8x1xi32> to vector<8x80xi32>
    %1476 = arith.cmpi eq, %1475, %666 : vector<8x80xi32>
    %1477 = vector.extract_strided_slice %433 {offsets = [0, 5], sizes = [8, 1], strides = [1, 1]} : vector<8x8xf32> to vector<8x1xf32>
    %cst_346 = arith.constant 0.000000e+00 : f32
    %1478 = vector.shape_cast %1477 : vector<8x1xf32> to vector<8x1xf32>
    %1479 = vector.broadcast %1478 : vector<8x1xf32> to vector<8x80xf32>
    %1480 = vector.broadcast %cst_346 : f32 to vector<8x80xf32>
    %1481 = arith.select %1476, %1479, %1480 : vector<8x80xi1>, vector<8x80xf32>
    %1482 = arith.addf %1473, %1481 : vector<8x80xf32>
    %1483 = vector.extract_strided_slice %477 {offsets = [0, 5], sizes = [8, 1], strides = [1, 1]} : vector<8x8xi32> to vector<8x1xi32>
    %1484 = vector.broadcast %1483 : vector<8x1xi32> to vector<8x80xi32>
    %1485 = arith.cmpi eq, %1484, %666 : vector<8x80xi32>
    %1486 = vector.extract_strided_slice %464 {offsets = [0, 5], sizes = [8, 1], strides = [1, 1]} : vector<8x8xf32> to vector<8x1xf32>
    %cst_347 = arith.constant 0.000000e+00 : f32
    %1487 = vector.shape_cast %1486 : vector<8x1xf32> to vector<8x1xf32>
    %1488 = vector.broadcast %1487 : vector<8x1xf32> to vector<8x80xf32>
    %1489 = vector.broadcast %cst_347 : f32 to vector<8x80xf32>
    %1490 = arith.select %1485, %1488, %1489 : vector<8x80xi1>, vector<8x80xf32>
    %1491 = arith.addf %1482, %1490 : vector<8x80xf32>
    %1492 = vector.extract_strided_slice %508 {offsets = [0, 5], sizes = [8, 1], strides = [1, 1]} : vector<8x8xi32> to vector<8x1xi32>
    %1493 = vector.broadcast %1492 : vector<8x1xi32> to vector<8x80xi32>
    %1494 = arith.cmpi eq, %1493, %666 : vector<8x80xi32>
    %1495 = vector.extract_strided_slice %495 {offsets = [0, 5], sizes = [8, 1], strides = [1, 1]} : vector<8x8xf32> to vector<8x1xf32>
    %cst_348 = arith.constant 0.000000e+00 : f32
    %1496 = vector.shape_cast %1495 : vector<8x1xf32> to vector<8x1xf32>
    %1497 = vector.broadcast %1496 : vector<8x1xf32> to vector<8x80xf32>
    %1498 = vector.broadcast %cst_348 : f32 to vector<8x80xf32>
    %1499 = arith.select %1494, %1497, %1498 : vector<8x80xi1>, vector<8x80xf32>
    %1500 = arith.addf %1491, %1499 : vector<8x80xf32>
    %1501 = vector.extract_strided_slice %572 {offsets = [0, 5], sizes = [8, 1], strides = [1, 1]} : vector<8x8xi32> to vector<8x1xi32>
    %1502 = vector.broadcast %1501 : vector<8x1xi32> to vector<8x80xi32>
    %1503 = arith.cmpi eq, %1502, %666 : vector<8x80xi32>
    %1504 = vector.extract_strided_slice %559 {offsets = [0, 5], sizes = [8, 1], strides = [1, 1]} : vector<8x8xf32> to vector<8x1xf32>
    %cst_349 = arith.constant 0.000000e+00 : f32
    %1505 = vector.shape_cast %1504 : vector<8x1xf32> to vector<8x1xf32>
    %1506 = vector.broadcast %1505 : vector<8x1xf32> to vector<8x80xf32>
    %1507 = vector.broadcast %cst_349 : f32 to vector<8x80xf32>
    %1508 = arith.select %1503, %1506, %1507 : vector<8x80xi1>, vector<8x80xf32>
    %1509 = arith.addf %1500, %1508 : vector<8x80xf32>
    %1510 = vector.extract_strided_slice %603 {offsets = [0, 5], sizes = [8, 1], strides = [1, 1]} : vector<8x8xi32> to vector<8x1xi32>
    %1511 = vector.broadcast %1510 : vector<8x1xi32> to vector<8x80xi32>
    %1512 = arith.cmpi eq, %1511, %666 : vector<8x80xi32>
    %1513 = vector.extract_strided_slice %590 {offsets = [0, 5], sizes = [8, 1], strides = [1, 1]} : vector<8x8xf32> to vector<8x1xf32>
    %cst_350 = arith.constant 0.000000e+00 : f32
    %1514 = vector.shape_cast %1513 : vector<8x1xf32> to vector<8x1xf32>
    %1515 = vector.broadcast %1514 : vector<8x1xf32> to vector<8x80xf32>
    %1516 = vector.broadcast %cst_350 : f32 to vector<8x80xf32>
    %1517 = arith.select %1512, %1515, %1516 : vector<8x80xi1>, vector<8x80xf32>
    %1518 = arith.addf %1509, %1517 : vector<8x80xf32>
    %1519 = vector.extract_strided_slice %634 {offsets = [0, 5], sizes = [8, 1], strides = [1, 1]} : vector<8x8xi32> to vector<8x1xi32>
    %1520 = vector.broadcast %1519 : vector<8x1xi32> to vector<8x80xi32>
    %1521 = arith.cmpi eq, %1520, %666 : vector<8x80xi32>
    %1522 = vector.extract_strided_slice %621 {offsets = [0, 5], sizes = [8, 1], strides = [1, 1]} : vector<8x8xf32> to vector<8x1xf32>
    %cst_351 = arith.constant 0.000000e+00 : f32
    %1523 = vector.shape_cast %1522 : vector<8x1xf32> to vector<8x1xf32>
    %1524 = vector.broadcast %1523 : vector<8x1xf32> to vector<8x80xf32>
    %1525 = vector.broadcast %cst_351 : f32 to vector<8x80xf32>
    %1526 = arith.select %1521, %1524, %1525 : vector<8x80xi1>, vector<8x80xf32>
    %1527 = arith.addf %1518, %1526 : vector<8x80xf32>
    %1528 = vector.extract_strided_slice %665 {offsets = [0, 5], sizes = [8, 1], strides = [1, 1]} : vector<8x8xi32> to vector<8x1xi32>
    %1529 = vector.broadcast %1528 : vector<8x1xi32> to vector<8x80xi32>
    %1530 = arith.cmpi eq, %1529, %666 : vector<8x80xi32>
    %1531 = vector.extract_strided_slice %652 {offsets = [0, 5], sizes = [8, 1], strides = [1, 1]} : vector<8x8xf32> to vector<8x1xf32>
    %cst_352 = arith.constant 0.000000e+00 : f32
    %1532 = vector.shape_cast %1531 : vector<8x1xf32> to vector<8x1xf32>
    %1533 = vector.broadcast %1532 : vector<8x1xf32> to vector<8x80xf32>
    %1534 = vector.broadcast %cst_352 : f32 to vector<8x80xf32>
    %1535 = arith.select %1530, %1533, %1534 : vector<8x80xi1>, vector<8x80xf32>
    %1536 = arith.addf %1527, %1535 : vector<8x80xf32>
    %cst_353 = arith.constant 0.000000e+00 : f32
    %1537 = vector.broadcast %cst_353 : f32 to vector<8x80xf32>
    %1538 = vector.extract_strided_slice %101 {offsets = [0, 6], sizes = [8, 1], strides = [1, 1]} : vector<8x8xi32> to vector<8x1xi32>
    %1539 = vector.broadcast %1538 : vector<8x1xi32> to vector<8x80xi32>
    %1540 = arith.cmpi eq, %1539, %666 : vector<8x80xi32>
    %1541 = vector.extract_strided_slice %88 {offsets = [0, 6], sizes = [8, 1], strides = [1, 1]} : vector<8x8xf32> to vector<8x1xf32>
    %cst_354 = arith.constant 0.000000e+00 : f32
    %1542 = vector.shape_cast %1541 : vector<8x1xf32> to vector<8x1xf32>
    %1543 = vector.broadcast %1542 : vector<8x1xf32> to vector<8x80xf32>
    %1544 = vector.broadcast %cst_354 : f32 to vector<8x80xf32>
    %1545 = arith.select %1540, %1543, %1544 : vector<8x80xi1>, vector<8x80xf32>
    %1546 = arith.addf %1537, %1545 : vector<8x80xf32>
    %1547 = vector.extract_strided_slice %132 {offsets = [0, 6], sizes = [8, 1], strides = [1, 1]} : vector<8x8xi32> to vector<8x1xi32>
    %1548 = vector.broadcast %1547 : vector<8x1xi32> to vector<8x80xi32>
    %1549 = arith.cmpi eq, %1548, %666 : vector<8x80xi32>
    %1550 = vector.extract_strided_slice %119 {offsets = [0, 6], sizes = [8, 1], strides = [1, 1]} : vector<8x8xf32> to vector<8x1xf32>
    %cst_355 = arith.constant 0.000000e+00 : f32
    %1551 = vector.shape_cast %1550 : vector<8x1xf32> to vector<8x1xf32>
    %1552 = vector.broadcast %1551 : vector<8x1xf32> to vector<8x80xf32>
    %1553 = vector.broadcast %cst_355 : f32 to vector<8x80xf32>
    %1554 = arith.select %1549, %1552, %1553 : vector<8x80xi1>, vector<8x80xf32>
    %1555 = arith.addf %1546, %1554 : vector<8x80xf32>
    %1556 = vector.extract_strided_slice %163 {offsets = [0, 6], sizes = [8, 1], strides = [1, 1]} : vector<8x8xi32> to vector<8x1xi32>
    %1557 = vector.broadcast %1556 : vector<8x1xi32> to vector<8x80xi32>
    %1558 = arith.cmpi eq, %1557, %666 : vector<8x80xi32>
    %1559 = vector.extract_strided_slice %150 {offsets = [0, 6], sizes = [8, 1], strides = [1, 1]} : vector<8x8xf32> to vector<8x1xf32>
    %cst_356 = arith.constant 0.000000e+00 : f32
    %1560 = vector.shape_cast %1559 : vector<8x1xf32> to vector<8x1xf32>
    %1561 = vector.broadcast %1560 : vector<8x1xf32> to vector<8x80xf32>
    %1562 = vector.broadcast %cst_356 : f32 to vector<8x80xf32>
    %1563 = arith.select %1558, %1561, %1562 : vector<8x80xi1>, vector<8x80xf32>
    %1564 = arith.addf %1555, %1563 : vector<8x80xf32>
    %1565 = vector.extract_strided_slice %194 {offsets = [0, 6], sizes = [8, 1], strides = [1, 1]} : vector<8x8xi32> to vector<8x1xi32>
    %1566 = vector.broadcast %1565 : vector<8x1xi32> to vector<8x80xi32>
    %1567 = arith.cmpi eq, %1566, %666 : vector<8x80xi32>
    %1568 = vector.extract_strided_slice %181 {offsets = [0, 6], sizes = [8, 1], strides = [1, 1]} : vector<8x8xf32> to vector<8x1xf32>
    %cst_357 = arith.constant 0.000000e+00 : f32
    %1569 = vector.shape_cast %1568 : vector<8x1xf32> to vector<8x1xf32>
    %1570 = vector.broadcast %1569 : vector<8x1xf32> to vector<8x80xf32>
    %1571 = vector.broadcast %cst_357 : f32 to vector<8x80xf32>
    %1572 = arith.select %1567, %1570, %1571 : vector<8x80xi1>, vector<8x80xf32>
    %1573 = arith.addf %1564, %1572 : vector<8x80xf32>
    %1574 = vector.extract_strided_slice %258 {offsets = [0, 6], sizes = [8, 1], strides = [1, 1]} : vector<8x8xi32> to vector<8x1xi32>
    %1575 = vector.broadcast %1574 : vector<8x1xi32> to vector<8x80xi32>
    %1576 = arith.cmpi eq, %1575, %666 : vector<8x80xi32>
    %1577 = vector.extract_strided_slice %245 {offsets = [0, 6], sizes = [8, 1], strides = [1, 1]} : vector<8x8xf32> to vector<8x1xf32>
    %cst_358 = arith.constant 0.000000e+00 : f32
    %1578 = vector.shape_cast %1577 : vector<8x1xf32> to vector<8x1xf32>
    %1579 = vector.broadcast %1578 : vector<8x1xf32> to vector<8x80xf32>
    %1580 = vector.broadcast %cst_358 : f32 to vector<8x80xf32>
    %1581 = arith.select %1576, %1579, %1580 : vector<8x80xi1>, vector<8x80xf32>
    %1582 = arith.addf %1573, %1581 : vector<8x80xf32>
    %1583 = vector.extract_strided_slice %289 {offsets = [0, 6], sizes = [8, 1], strides = [1, 1]} : vector<8x8xi32> to vector<8x1xi32>
    %1584 = vector.broadcast %1583 : vector<8x1xi32> to vector<8x80xi32>
    %1585 = arith.cmpi eq, %1584, %666 : vector<8x80xi32>
    %1586 = vector.extract_strided_slice %276 {offsets = [0, 6], sizes = [8, 1], strides = [1, 1]} : vector<8x8xf32> to vector<8x1xf32>
    %cst_359 = arith.constant 0.000000e+00 : f32
    %1587 = vector.shape_cast %1586 : vector<8x1xf32> to vector<8x1xf32>
    %1588 = vector.broadcast %1587 : vector<8x1xf32> to vector<8x80xf32>
    %1589 = vector.broadcast %cst_359 : f32 to vector<8x80xf32>
    %1590 = arith.select %1585, %1588, %1589 : vector<8x80xi1>, vector<8x80xf32>
    %1591 = arith.addf %1582, %1590 : vector<8x80xf32>
    %1592 = vector.extract_strided_slice %320 {offsets = [0, 6], sizes = [8, 1], strides = [1, 1]} : vector<8x8xi32> to vector<8x1xi32>
    %1593 = vector.broadcast %1592 : vector<8x1xi32> to vector<8x80xi32>
    %1594 = arith.cmpi eq, %1593, %666 : vector<8x80xi32>
    %1595 = vector.extract_strided_slice %307 {offsets = [0, 6], sizes = [8, 1], strides = [1, 1]} : vector<8x8xf32> to vector<8x1xf32>
    %cst_360 = arith.constant 0.000000e+00 : f32
    %1596 = vector.shape_cast %1595 : vector<8x1xf32> to vector<8x1xf32>
    %1597 = vector.broadcast %1596 : vector<8x1xf32> to vector<8x80xf32>
    %1598 = vector.broadcast %cst_360 : f32 to vector<8x80xf32>
    %1599 = arith.select %1594, %1597, %1598 : vector<8x80xi1>, vector<8x80xf32>
    %1600 = arith.addf %1591, %1599 : vector<8x80xf32>
    %1601 = vector.extract_strided_slice %351 {offsets = [0, 6], sizes = [8, 1], strides = [1, 1]} : vector<8x8xi32> to vector<8x1xi32>
    %1602 = vector.broadcast %1601 : vector<8x1xi32> to vector<8x80xi32>
    %1603 = arith.cmpi eq, %1602, %666 : vector<8x80xi32>
    %1604 = vector.extract_strided_slice %338 {offsets = [0, 6], sizes = [8, 1], strides = [1, 1]} : vector<8x8xf32> to vector<8x1xf32>
    %cst_361 = arith.constant 0.000000e+00 : f32
    %1605 = vector.shape_cast %1604 : vector<8x1xf32> to vector<8x1xf32>
    %1606 = vector.broadcast %1605 : vector<8x1xf32> to vector<8x80xf32>
    %1607 = vector.broadcast %cst_361 : f32 to vector<8x80xf32>
    %1608 = arith.select %1603, %1606, %1607 : vector<8x80xi1>, vector<8x80xf32>
    %1609 = arith.addf %1600, %1608 : vector<8x80xf32>
    %1610 = vector.extract_strided_slice %415 {offsets = [0, 6], sizes = [8, 1], strides = [1, 1]} : vector<8x8xi32> to vector<8x1xi32>
    %1611 = vector.broadcast %1610 : vector<8x1xi32> to vector<8x80xi32>
    %1612 = arith.cmpi eq, %1611, %666 : vector<8x80xi32>
    %1613 = vector.extract_strided_slice %402 {offsets = [0, 6], sizes = [8, 1], strides = [1, 1]} : vector<8x8xf32> to vector<8x1xf32>
    %cst_362 = arith.constant 0.000000e+00 : f32
    %1614 = vector.shape_cast %1613 : vector<8x1xf32> to vector<8x1xf32>
    %1615 = vector.broadcast %1614 : vector<8x1xf32> to vector<8x80xf32>
    %1616 = vector.broadcast %cst_362 : f32 to vector<8x80xf32>
    %1617 = arith.select %1612, %1615, %1616 : vector<8x80xi1>, vector<8x80xf32>
    %1618 = arith.addf %1609, %1617 : vector<8x80xf32>
    %1619 = vector.extract_strided_slice %446 {offsets = [0, 6], sizes = [8, 1], strides = [1, 1]} : vector<8x8xi32> to vector<8x1xi32>
    %1620 = vector.broadcast %1619 : vector<8x1xi32> to vector<8x80xi32>
    %1621 = arith.cmpi eq, %1620, %666 : vector<8x80xi32>
    %1622 = vector.extract_strided_slice %433 {offsets = [0, 6], sizes = [8, 1], strides = [1, 1]} : vector<8x8xf32> to vector<8x1xf32>
    %cst_363 = arith.constant 0.000000e+00 : f32
    %1623 = vector.shape_cast %1622 : vector<8x1xf32> to vector<8x1xf32>
    %1624 = vector.broadcast %1623 : vector<8x1xf32> to vector<8x80xf32>
    %1625 = vector.broadcast %cst_363 : f32 to vector<8x80xf32>
    %1626 = arith.select %1621, %1624, %1625 : vector<8x80xi1>, vector<8x80xf32>
    %1627 = arith.addf %1618, %1626 : vector<8x80xf32>
    %1628 = vector.extract_strided_slice %477 {offsets = [0, 6], sizes = [8, 1], strides = [1, 1]} : vector<8x8xi32> to vector<8x1xi32>
    %1629 = vector.broadcast %1628 : vector<8x1xi32> to vector<8x80xi32>
    %1630 = arith.cmpi eq, %1629, %666 : vector<8x80xi32>
    %1631 = vector.extract_strided_slice %464 {offsets = [0, 6], sizes = [8, 1], strides = [1, 1]} : vector<8x8xf32> to vector<8x1xf32>
    %cst_364 = arith.constant 0.000000e+00 : f32
    %1632 = vector.shape_cast %1631 : vector<8x1xf32> to vector<8x1xf32>
    %1633 = vector.broadcast %1632 : vector<8x1xf32> to vector<8x80xf32>
    %1634 = vector.broadcast %cst_364 : f32 to vector<8x80xf32>
    %1635 = arith.select %1630, %1633, %1634 : vector<8x80xi1>, vector<8x80xf32>
    %1636 = arith.addf %1627, %1635 : vector<8x80xf32>
    %1637 = vector.extract_strided_slice %508 {offsets = [0, 6], sizes = [8, 1], strides = [1, 1]} : vector<8x8xi32> to vector<8x1xi32>
    %1638 = vector.broadcast %1637 : vector<8x1xi32> to vector<8x80xi32>
    %1639 = arith.cmpi eq, %1638, %666 : vector<8x80xi32>
    %1640 = vector.extract_strided_slice %495 {offsets = [0, 6], sizes = [8, 1], strides = [1, 1]} : vector<8x8xf32> to vector<8x1xf32>
    %cst_365 = arith.constant 0.000000e+00 : f32
    %1641 = vector.shape_cast %1640 : vector<8x1xf32> to vector<8x1xf32>
    %1642 = vector.broadcast %1641 : vector<8x1xf32> to vector<8x80xf32>
    %1643 = vector.broadcast %cst_365 : f32 to vector<8x80xf32>
    %1644 = arith.select %1639, %1642, %1643 : vector<8x80xi1>, vector<8x80xf32>
    %1645 = arith.addf %1636, %1644 : vector<8x80xf32>
    %1646 = vector.extract_strided_slice %572 {offsets = [0, 6], sizes = [8, 1], strides = [1, 1]} : vector<8x8xi32> to vector<8x1xi32>
    %1647 = vector.broadcast %1646 : vector<8x1xi32> to vector<8x80xi32>
    %1648 = arith.cmpi eq, %1647, %666 : vector<8x80xi32>
    %1649 = vector.extract_strided_slice %559 {offsets = [0, 6], sizes = [8, 1], strides = [1, 1]} : vector<8x8xf32> to vector<8x1xf32>
    %cst_366 = arith.constant 0.000000e+00 : f32
    %1650 = vector.shape_cast %1649 : vector<8x1xf32> to vector<8x1xf32>
    %1651 = vector.broadcast %1650 : vector<8x1xf32> to vector<8x80xf32>
    %1652 = vector.broadcast %cst_366 : f32 to vector<8x80xf32>
    %1653 = arith.select %1648, %1651, %1652 : vector<8x80xi1>, vector<8x80xf32>
    %1654 = arith.addf %1645, %1653 : vector<8x80xf32>
    %1655 = vector.extract_strided_slice %603 {offsets = [0, 6], sizes = [8, 1], strides = [1, 1]} : vector<8x8xi32> to vector<8x1xi32>
    %1656 = vector.broadcast %1655 : vector<8x1xi32> to vector<8x80xi32>
    %1657 = arith.cmpi eq, %1656, %666 : vector<8x80xi32>
    %1658 = vector.extract_strided_slice %590 {offsets = [0, 6], sizes = [8, 1], strides = [1, 1]} : vector<8x8xf32> to vector<8x1xf32>
    %cst_367 = arith.constant 0.000000e+00 : f32
    %1659 = vector.shape_cast %1658 : vector<8x1xf32> to vector<8x1xf32>
    %1660 = vector.broadcast %1659 : vector<8x1xf32> to vector<8x80xf32>
    %1661 = vector.broadcast %cst_367 : f32 to vector<8x80xf32>
    %1662 = arith.select %1657, %1660, %1661 : vector<8x80xi1>, vector<8x80xf32>
    %1663 = arith.addf %1654, %1662 : vector<8x80xf32>
    %1664 = vector.extract_strided_slice %634 {offsets = [0, 6], sizes = [8, 1], strides = [1, 1]} : vector<8x8xi32> to vector<8x1xi32>
    %1665 = vector.broadcast %1664 : vector<8x1xi32> to vector<8x80xi32>
    %1666 = arith.cmpi eq, %1665, %666 : vector<8x80xi32>
    %1667 = vector.extract_strided_slice %621 {offsets = [0, 6], sizes = [8, 1], strides = [1, 1]} : vector<8x8xf32> to vector<8x1xf32>
    %cst_368 = arith.constant 0.000000e+00 : f32
    %1668 = vector.shape_cast %1667 : vector<8x1xf32> to vector<8x1xf32>
    %1669 = vector.broadcast %1668 : vector<8x1xf32> to vector<8x80xf32>
    %1670 = vector.broadcast %cst_368 : f32 to vector<8x80xf32>
    %1671 = arith.select %1666, %1669, %1670 : vector<8x80xi1>, vector<8x80xf32>
    %1672 = arith.addf %1663, %1671 : vector<8x80xf32>
    %1673 = vector.extract_strided_slice %665 {offsets = [0, 6], sizes = [8, 1], strides = [1, 1]} : vector<8x8xi32> to vector<8x1xi32>
    %1674 = vector.broadcast %1673 : vector<8x1xi32> to vector<8x80xi32>
    %1675 = arith.cmpi eq, %1674, %666 : vector<8x80xi32>
    %1676 = vector.extract_strided_slice %652 {offsets = [0, 6], sizes = [8, 1], strides = [1, 1]} : vector<8x8xf32> to vector<8x1xf32>
    %cst_369 = arith.constant 0.000000e+00 : f32
    %1677 = vector.shape_cast %1676 : vector<8x1xf32> to vector<8x1xf32>
    %1678 = vector.broadcast %1677 : vector<8x1xf32> to vector<8x80xf32>
    %1679 = vector.broadcast %cst_369 : f32 to vector<8x80xf32>
    %1680 = arith.select %1675, %1678, %1679 : vector<8x80xi1>, vector<8x80xf32>
    %1681 = arith.addf %1672, %1680 : vector<8x80xf32>
    %cst_370 = arith.constant 0.000000e+00 : f32
    %1682 = vector.broadcast %cst_370 : f32 to vector<8x80xf32>
    %1683 = vector.extract_strided_slice %101 {offsets = [0, 7], sizes = [8, 1], strides = [1, 1]} : vector<8x8xi32> to vector<8x1xi32>
    %1684 = vector.broadcast %1683 : vector<8x1xi32> to vector<8x80xi32>
    %1685 = arith.cmpi eq, %1684, %666 : vector<8x80xi32>
    %1686 = vector.extract_strided_slice %88 {offsets = [0, 7], sizes = [8, 1], strides = [1, 1]} : vector<8x8xf32> to vector<8x1xf32>
    %cst_371 = arith.constant 0.000000e+00 : f32
    %1687 = vector.shape_cast %1686 : vector<8x1xf32> to vector<8x1xf32>
    %1688 = vector.broadcast %1687 : vector<8x1xf32> to vector<8x80xf32>
    %1689 = vector.broadcast %cst_371 : f32 to vector<8x80xf32>
    %1690 = arith.select %1685, %1688, %1689 : vector<8x80xi1>, vector<8x80xf32>
    %1691 = arith.addf %1682, %1690 : vector<8x80xf32>
    %1692 = vector.extract_strided_slice %132 {offsets = [0, 7], sizes = [8, 1], strides = [1, 1]} : vector<8x8xi32> to vector<8x1xi32>
    %1693 = vector.broadcast %1692 : vector<8x1xi32> to vector<8x80xi32>
    %1694 = arith.cmpi eq, %1693, %666 : vector<8x80xi32>
    %1695 = vector.extract_strided_slice %119 {offsets = [0, 7], sizes = [8, 1], strides = [1, 1]} : vector<8x8xf32> to vector<8x1xf32>
    %cst_372 = arith.constant 0.000000e+00 : f32
    %1696 = vector.shape_cast %1695 : vector<8x1xf32> to vector<8x1xf32>
    %1697 = vector.broadcast %1696 : vector<8x1xf32> to vector<8x80xf32>
    %1698 = vector.broadcast %cst_372 : f32 to vector<8x80xf32>
    %1699 = arith.select %1694, %1697, %1698 : vector<8x80xi1>, vector<8x80xf32>
    %1700 = arith.addf %1691, %1699 : vector<8x80xf32>
    %1701 = vector.extract_strided_slice %163 {offsets = [0, 7], sizes = [8, 1], strides = [1, 1]} : vector<8x8xi32> to vector<8x1xi32>
    %1702 = vector.broadcast %1701 : vector<8x1xi32> to vector<8x80xi32>
    %1703 = arith.cmpi eq, %1702, %666 : vector<8x80xi32>
    %1704 = vector.extract_strided_slice %150 {offsets = [0, 7], sizes = [8, 1], strides = [1, 1]} : vector<8x8xf32> to vector<8x1xf32>
    %cst_373 = arith.constant 0.000000e+00 : f32
    %1705 = vector.shape_cast %1704 : vector<8x1xf32> to vector<8x1xf32>
    %1706 = vector.broadcast %1705 : vector<8x1xf32> to vector<8x80xf32>
    %1707 = vector.broadcast %cst_373 : f32 to vector<8x80xf32>
    %1708 = arith.select %1703, %1706, %1707 : vector<8x80xi1>, vector<8x80xf32>
    %1709 = arith.addf %1700, %1708 : vector<8x80xf32>
    %1710 = vector.extract_strided_slice %194 {offsets = [0, 7], sizes = [8, 1], strides = [1, 1]} : vector<8x8xi32> to vector<8x1xi32>
    %1711 = vector.broadcast %1710 : vector<8x1xi32> to vector<8x80xi32>
    %1712 = arith.cmpi eq, %1711, %666 : vector<8x80xi32>
    %1713 = vector.extract_strided_slice %181 {offsets = [0, 7], sizes = [8, 1], strides = [1, 1]} : vector<8x8xf32> to vector<8x1xf32>
    %cst_374 = arith.constant 0.000000e+00 : f32
    %1714 = vector.shape_cast %1713 : vector<8x1xf32> to vector<8x1xf32>
    %1715 = vector.broadcast %1714 : vector<8x1xf32> to vector<8x80xf32>
    %1716 = vector.broadcast %cst_374 : f32 to vector<8x80xf32>
    %1717 = arith.select %1712, %1715, %1716 : vector<8x80xi1>, vector<8x80xf32>
    %1718 = arith.addf %1709, %1717 : vector<8x80xf32>
    %1719 = vector.extract_strided_slice %258 {offsets = [0, 7], sizes = [8, 1], strides = [1, 1]} : vector<8x8xi32> to vector<8x1xi32>
    %1720 = vector.broadcast %1719 : vector<8x1xi32> to vector<8x80xi32>
    %1721 = arith.cmpi eq, %1720, %666 : vector<8x80xi32>
    %1722 = vector.extract_strided_slice %245 {offsets = [0, 7], sizes = [8, 1], strides = [1, 1]} : vector<8x8xf32> to vector<8x1xf32>
    %cst_375 = arith.constant 0.000000e+00 : f32
    %1723 = vector.shape_cast %1722 : vector<8x1xf32> to vector<8x1xf32>
    %1724 = vector.broadcast %1723 : vector<8x1xf32> to vector<8x80xf32>
    %1725 = vector.broadcast %cst_375 : f32 to vector<8x80xf32>
    %1726 = arith.select %1721, %1724, %1725 : vector<8x80xi1>, vector<8x80xf32>
    %1727 = arith.addf %1718, %1726 : vector<8x80xf32>
    %1728 = vector.extract_strided_slice %289 {offsets = [0, 7], sizes = [8, 1], strides = [1, 1]} : vector<8x8xi32> to vector<8x1xi32>
    %1729 = vector.broadcast %1728 : vector<8x1xi32> to vector<8x80xi32>
    %1730 = arith.cmpi eq, %1729, %666 : vector<8x80xi32>
    %1731 = vector.extract_strided_slice %276 {offsets = [0, 7], sizes = [8, 1], strides = [1, 1]} : vector<8x8xf32> to vector<8x1xf32>
    %cst_376 = arith.constant 0.000000e+00 : f32
    %1732 = vector.shape_cast %1731 : vector<8x1xf32> to vector<8x1xf32>
    %1733 = vector.broadcast %1732 : vector<8x1xf32> to vector<8x80xf32>
    %1734 = vector.broadcast %cst_376 : f32 to vector<8x80xf32>
    %1735 = arith.select %1730, %1733, %1734 : vector<8x80xi1>, vector<8x80xf32>
    %1736 = arith.addf %1727, %1735 : vector<8x80xf32>
    %1737 = vector.extract_strided_slice %320 {offsets = [0, 7], sizes = [8, 1], strides = [1, 1]} : vector<8x8xi32> to vector<8x1xi32>
    %1738 = vector.broadcast %1737 : vector<8x1xi32> to vector<8x80xi32>
    %1739 = arith.cmpi eq, %1738, %666 : vector<8x80xi32>
    %1740 = vector.extract_strided_slice %307 {offsets = [0, 7], sizes = [8, 1], strides = [1, 1]} : vector<8x8xf32> to vector<8x1xf32>
    %cst_377 = arith.constant 0.000000e+00 : f32
    %1741 = vector.shape_cast %1740 : vector<8x1xf32> to vector<8x1xf32>
    %1742 = vector.broadcast %1741 : vector<8x1xf32> to vector<8x80xf32>
    %1743 = vector.broadcast %cst_377 : f32 to vector<8x80xf32>
    %1744 = arith.select %1739, %1742, %1743 : vector<8x80xi1>, vector<8x80xf32>
    %1745 = arith.addf %1736, %1744 : vector<8x80xf32>
    %1746 = vector.extract_strided_slice %351 {offsets = [0, 7], sizes = [8, 1], strides = [1, 1]} : vector<8x8xi32> to vector<8x1xi32>
    %1747 = vector.broadcast %1746 : vector<8x1xi32> to vector<8x80xi32>
    %1748 = arith.cmpi eq, %1747, %666 : vector<8x80xi32>
    %1749 = vector.extract_strided_slice %338 {offsets = [0, 7], sizes = [8, 1], strides = [1, 1]} : vector<8x8xf32> to vector<8x1xf32>
    %cst_378 = arith.constant 0.000000e+00 : f32
    %1750 = vector.shape_cast %1749 : vector<8x1xf32> to vector<8x1xf32>
    %1751 = vector.broadcast %1750 : vector<8x1xf32> to vector<8x80xf32>
    %1752 = vector.broadcast %cst_378 : f32 to vector<8x80xf32>
    %1753 = arith.select %1748, %1751, %1752 : vector<8x80xi1>, vector<8x80xf32>
    %1754 = arith.addf %1745, %1753 : vector<8x80xf32>
    %1755 = vector.extract_strided_slice %415 {offsets = [0, 7], sizes = [8, 1], strides = [1, 1]} : vector<8x8xi32> to vector<8x1xi32>
    %1756 = vector.broadcast %1755 : vector<8x1xi32> to vector<8x80xi32>
    %1757 = arith.cmpi eq, %1756, %666 : vector<8x80xi32>
    %1758 = vector.extract_strided_slice %402 {offsets = [0, 7], sizes = [8, 1], strides = [1, 1]} : vector<8x8xf32> to vector<8x1xf32>
    %cst_379 = arith.constant 0.000000e+00 : f32
    %1759 = vector.shape_cast %1758 : vector<8x1xf32> to vector<8x1xf32>
    %1760 = vector.broadcast %1759 : vector<8x1xf32> to vector<8x80xf32>
    %1761 = vector.broadcast %cst_379 : f32 to vector<8x80xf32>
    %1762 = arith.select %1757, %1760, %1761 : vector<8x80xi1>, vector<8x80xf32>
    %1763 = arith.addf %1754, %1762 : vector<8x80xf32>
    %1764 = vector.extract_strided_slice %446 {offsets = [0, 7], sizes = [8, 1], strides = [1, 1]} : vector<8x8xi32> to vector<8x1xi32>
    %1765 = vector.broadcast %1764 : vector<8x1xi32> to vector<8x80xi32>
    %1766 = arith.cmpi eq, %1765, %666 : vector<8x80xi32>
    %1767 = vector.extract_strided_slice %433 {offsets = [0, 7], sizes = [8, 1], strides = [1, 1]} : vector<8x8xf32> to vector<8x1xf32>
    %cst_380 = arith.constant 0.000000e+00 : f32
    %1768 = vector.shape_cast %1767 : vector<8x1xf32> to vector<8x1xf32>
    %1769 = vector.broadcast %1768 : vector<8x1xf32> to vector<8x80xf32>
    %1770 = vector.broadcast %cst_380 : f32 to vector<8x80xf32>
    %1771 = arith.select %1766, %1769, %1770 : vector<8x80xi1>, vector<8x80xf32>
    %1772 = arith.addf %1763, %1771 : vector<8x80xf32>
    %1773 = vector.extract_strided_slice %477 {offsets = [0, 7], sizes = [8, 1], strides = [1, 1]} : vector<8x8xi32> to vector<8x1xi32>
    %1774 = vector.broadcast %1773 : vector<8x1xi32> to vector<8x80xi32>
    %1775 = arith.cmpi eq, %1774, %666 : vector<8x80xi32>
    %1776 = vector.extract_strided_slice %464 {offsets = [0, 7], sizes = [8, 1], strides = [1, 1]} : vector<8x8xf32> to vector<8x1xf32>
    %cst_381 = arith.constant 0.000000e+00 : f32
    %1777 = vector.shape_cast %1776 : vector<8x1xf32> to vector<8x1xf32>
    %1778 = vector.broadcast %1777 : vector<8x1xf32> to vector<8x80xf32>
    %1779 = vector.broadcast %cst_381 : f32 to vector<8x80xf32>
    %1780 = arith.select %1775, %1778, %1779 : vector<8x80xi1>, vector<8x80xf32>
    %1781 = arith.addf %1772, %1780 : vector<8x80xf32>
    %1782 = vector.extract_strided_slice %508 {offsets = [0, 7], sizes = [8, 1], strides = [1, 1]} : vector<8x8xi32> to vector<8x1xi32>
    %1783 = vector.broadcast %1782 : vector<8x1xi32> to vector<8x80xi32>
    %1784 = arith.cmpi eq, %1783, %666 : vector<8x80xi32>
    %1785 = vector.extract_strided_slice %495 {offsets = [0, 7], sizes = [8, 1], strides = [1, 1]} : vector<8x8xf32> to vector<8x1xf32>
    %cst_382 = arith.constant 0.000000e+00 : f32
    %1786 = vector.shape_cast %1785 : vector<8x1xf32> to vector<8x1xf32>
    %1787 = vector.broadcast %1786 : vector<8x1xf32> to vector<8x80xf32>
    %1788 = vector.broadcast %cst_382 : f32 to vector<8x80xf32>
    %1789 = arith.select %1784, %1787, %1788 : vector<8x80xi1>, vector<8x80xf32>
    %1790 = arith.addf %1781, %1789 : vector<8x80xf32>
    %1791 = vector.extract_strided_slice %572 {offsets = [0, 7], sizes = [8, 1], strides = [1, 1]} : vector<8x8xi32> to vector<8x1xi32>
    %1792 = vector.broadcast %1791 : vector<8x1xi32> to vector<8x80xi32>
    %1793 = arith.cmpi eq, %1792, %666 : vector<8x80xi32>
    %1794 = vector.extract_strided_slice %559 {offsets = [0, 7], sizes = [8, 1], strides = [1, 1]} : vector<8x8xf32> to vector<8x1xf32>
    %cst_383 = arith.constant 0.000000e+00 : f32
    %1795 = vector.shape_cast %1794 : vector<8x1xf32> to vector<8x1xf32>
    %1796 = vector.broadcast %1795 : vector<8x1xf32> to vector<8x80xf32>
    %1797 = vector.broadcast %cst_383 : f32 to vector<8x80xf32>
    %1798 = arith.select %1793, %1796, %1797 : vector<8x80xi1>, vector<8x80xf32>
    %1799 = arith.addf %1790, %1798 : vector<8x80xf32>
    %1800 = vector.extract_strided_slice %603 {offsets = [0, 7], sizes = [8, 1], strides = [1, 1]} : vector<8x8xi32> to vector<8x1xi32>
    %1801 = vector.broadcast %1800 : vector<8x1xi32> to vector<8x80xi32>
    %1802 = arith.cmpi eq, %1801, %666 : vector<8x80xi32>
    %1803 = vector.extract_strided_slice %590 {offsets = [0, 7], sizes = [8, 1], strides = [1, 1]} : vector<8x8xf32> to vector<8x1xf32>
    %cst_384 = arith.constant 0.000000e+00 : f32
    %1804 = vector.shape_cast %1803 : vector<8x1xf32> to vector<8x1xf32>
    %1805 = vector.broadcast %1804 : vector<8x1xf32> to vector<8x80xf32>
    %1806 = vector.broadcast %cst_384 : f32 to vector<8x80xf32>
    %1807 = arith.select %1802, %1805, %1806 : vector<8x80xi1>, vector<8x80xf32>
    %1808 = arith.addf %1799, %1807 : vector<8x80xf32>
    %1809 = vector.extract_strided_slice %634 {offsets = [0, 7], sizes = [8, 1], strides = [1, 1]} : vector<8x8xi32> to vector<8x1xi32>
    %1810 = vector.broadcast %1809 : vector<8x1xi32> to vector<8x80xi32>
    %1811 = arith.cmpi eq, %1810, %666 : vector<8x80xi32>
    %1812 = vector.extract_strided_slice %621 {offsets = [0, 7], sizes = [8, 1], strides = [1, 1]} : vector<8x8xf32> to vector<8x1xf32>
    %cst_385 = arith.constant 0.000000e+00 : f32
    %1813 = vector.shape_cast %1812 : vector<8x1xf32> to vector<8x1xf32>
    %1814 = vector.broadcast %1813 : vector<8x1xf32> to vector<8x80xf32>
    %1815 = vector.broadcast %cst_385 : f32 to vector<8x80xf32>
    %1816 = arith.select %1811, %1814, %1815 : vector<8x80xi1>, vector<8x80xf32>
    %1817 = arith.addf %1808, %1816 : vector<8x80xf32>
    %1818 = vector.extract_strided_slice %665 {offsets = [0, 7], sizes = [8, 1], strides = [1, 1]} : vector<8x8xi32> to vector<8x1xi32>
    %1819 = vector.broadcast %1818 : vector<8x1xi32> to vector<8x80xi32>
    %1820 = arith.cmpi eq, %1819, %666 : vector<8x80xi32>
    %1821 = vector.extract_strided_slice %652 {offsets = [0, 7], sizes = [8, 1], strides = [1, 1]} : vector<8x8xf32> to vector<8x1xf32>
    %cst_386 = arith.constant 0.000000e+00 : f32
    %1822 = vector.shape_cast %1821 : vector<8x1xf32> to vector<8x1xf32>
    %1823 = vector.broadcast %1822 : vector<8x1xf32> to vector<8x80xf32>
    %1824 = vector.broadcast %cst_386 : f32 to vector<8x80xf32>
    %1825 = arith.select %1820, %1823, %1824 : vector<8x80xi1>, vector<8x80xf32>
    %1826 = arith.addf %1817, %1825 : vector<8x80xf32>
    %1827 = tpu.concatenate %811, %956, %1101, %1246, %1391, %1536, %1681, %1826 in 0 : vector<8x80xf32>, vector<8x80xf32>, vector<8x80xf32>, vector<8x80xf32>, vector<8x80xf32>, vector<8x80xf32>, vector<8x80xf32>, vector<8x80xf32> -> vector<64x80xf32>
    %cst_387 = arith.constant dense<0.000000e+00> : vector<64x32xf32>
    %1828 = tpu.matmul %1827, %10, %cst_387 {dimension_numbers = #tpu.dot_dimension_numbers<[1], [0], [0], [1], [0, 0, 1, 1], [], []>} : vector<64x80xf32>, vector<80x32xf32>, vector<64x32xf32> -> vector<64x32xf32>
    %1829 = tpu.iota {dimensions = array<i32: 1>} : vector<1x32xi32>
    %cst_388 = arith.constant 0.000000e+00 : f32
    %1830 = vector.broadcast %cst_388 : f32 to vector<8x32xf32>
    %c0_i32_389 = arith.constant 0 : i32
    %1831 = vector.broadcast %c0_i32_389 : i32 to vector<1x32xi32>
    %1832 = arith.cmpi sge, %1829, %1831 : vector<1x32xi32>
    %c4_i32_390 = arith.constant 4 : i32
    %1833 = vector.broadcast %c4_i32_390 : i32 to vector<1x32xi32>
    %1834 = arith.cmpi slt, %1829, %1833 : vector<1x32xi32>
    %1835 = arith.andi %1832, %1834 : vector<1x32xi1>
    %1836 = arith.extui %1835 : vector<1x32xi1> to vector<1x32xi32>
    %1837 = arith.sitofp %1836 : vector<1x32xi32> to vector<1x32xf32>
    %1838 = vector.extract_strided_slice %1828 {offsets = [0, 0], sizes = [8, 32], strides = [1, 1]} : vector<64x32xf32> to vector<8x32xf32>
    %1839 = vector.broadcast %1837 : vector<1x32xf32> to vector<8x32xf32>
    %1840 = arith.mulf %1838, %1839 : vector<8x32xf32>
    %1841 = arith.addf %1830, %1840 : vector<8x32xf32>
    %c4_i32_391 = arith.constant 4 : i32
    %1842 = vector.broadcast %c4_i32_391 : i32 to vector<1x32xi32>
    %1843 = arith.cmpi sge, %1829, %1842 : vector<1x32xi32>
    %c8_i32_392 = arith.constant 8 : i32
    %1844 = vector.broadcast %c8_i32_392 : i32 to vector<1x32xi32>
    %1845 = arith.cmpi slt, %1829, %1844 : vector<1x32xi32>
    %1846 = arith.andi %1843, %1845 : vector<1x32xi1>
    %1847 = arith.extui %1846 : vector<1x32xi1> to vector<1x32xi32>
    %1848 = arith.sitofp %1847 : vector<1x32xi32> to vector<1x32xf32>
    %1849 = vector.extract_strided_slice %1828 {offsets = [8, 0], sizes = [8, 32], strides = [1, 1]} : vector<64x32xf32> to vector<8x32xf32>
    %1850 = vector.broadcast %1848 : vector<1x32xf32> to vector<8x32xf32>
    %1851 = arith.mulf %1849, %1850 : vector<8x32xf32>
    %1852 = arith.addf %1841, %1851 : vector<8x32xf32>
    %c8_i32_393 = arith.constant 8 : i32
    %1853 = vector.broadcast %c8_i32_393 : i32 to vector<1x32xi32>
    %1854 = arith.cmpi sge, %1829, %1853 : vector<1x32xi32>
    %c12_i32 = arith.constant 12 : i32
    %1855 = vector.broadcast %c12_i32 : i32 to vector<1x32xi32>
    %1856 = arith.cmpi slt, %1829, %1855 : vector<1x32xi32>
    %1857 = arith.andi %1854, %1856 : vector<1x32xi1>
    %1858 = arith.extui %1857 : vector<1x32xi1> to vector<1x32xi32>
    %1859 = arith.sitofp %1858 : vector<1x32xi32> to vector<1x32xf32>
    %1860 = vector.extract_strided_slice %1828 {offsets = [16, 0], sizes = [8, 32], strides = [1, 1]} : vector<64x32xf32> to vector<8x32xf32>
    %1861 = vector.broadcast %1859 : vector<1x32xf32> to vector<8x32xf32>
    %1862 = arith.mulf %1860, %1861 : vector<8x32xf32>
    %1863 = arith.addf %1852, %1862 : vector<8x32xf32>
    %c12_i32_394 = arith.constant 12 : i32
    %1864 = vector.broadcast %c12_i32_394 : i32 to vector<1x32xi32>
    %1865 = arith.cmpi sge, %1829, %1864 : vector<1x32xi32>
    %c16_i32 = arith.constant 16 : i32
    %1866 = vector.broadcast %c16_i32 : i32 to vector<1x32xi32>
    %1867 = arith.cmpi slt, %1829, %1866 : vector<1x32xi32>
    %1868 = arith.andi %1865, %1867 : vector<1x32xi1>
    %1869 = arith.extui %1868 : vector<1x32xi1> to vector<1x32xi32>
    %1870 = arith.sitofp %1869 : vector<1x32xi32> to vector<1x32xf32>
    %1871 = vector.extract_strided_slice %1828 {offsets = [24, 0], sizes = [8, 32], strides = [1, 1]} : vector<64x32xf32> to vector<8x32xf32>
    %1872 = vector.broadcast %1870 : vector<1x32xf32> to vector<8x32xf32>
    %1873 = arith.mulf %1871, %1872 : vector<8x32xf32>
    %1874 = arith.addf %1863, %1873 : vector<8x32xf32>
    %c16_i32_395 = arith.constant 16 : i32
    %1875 = vector.broadcast %c16_i32_395 : i32 to vector<1x32xi32>
    %1876 = arith.cmpi sge, %1829, %1875 : vector<1x32xi32>
    %c20_i32 = arith.constant 20 : i32
    %1877 = vector.broadcast %c20_i32 : i32 to vector<1x32xi32>
    %1878 = arith.cmpi slt, %1829, %1877 : vector<1x32xi32>
    %1879 = arith.andi %1876, %1878 : vector<1x32xi1>
    %1880 = arith.extui %1879 : vector<1x32xi1> to vector<1x32xi32>
    %1881 = arith.sitofp %1880 : vector<1x32xi32> to vector<1x32xf32>
    %1882 = vector.extract_strided_slice %1828 {offsets = [32, 0], sizes = [8, 32], strides = [1, 1]} : vector<64x32xf32> to vector<8x32xf32>
    %1883 = vector.broadcast %1881 : vector<1x32xf32> to vector<8x32xf32>
    %1884 = arith.mulf %1882, %1883 : vector<8x32xf32>
    %1885 = arith.addf %1874, %1884 : vector<8x32xf32>
    %c20_i32_396 = arith.constant 20 : i32
    %1886 = vector.broadcast %c20_i32_396 : i32 to vector<1x32xi32>
    %1887 = arith.cmpi sge, %1829, %1886 : vector<1x32xi32>
    %c24_i32 = arith.constant 24 : i32
    %1888 = vector.broadcast %c24_i32 : i32 to vector<1x32xi32>
    %1889 = arith.cmpi slt, %1829, %1888 : vector<1x32xi32>
    %1890 = arith.andi %1887, %1889 : vector<1x32xi1>
    %1891 = arith.extui %1890 : vector<1x32xi1> to vector<1x32xi32>
    %1892 = arith.sitofp %1891 : vector<1x32xi32> to vector<1x32xf32>
    %1893 = vector.extract_strided_slice %1828 {offsets = [40, 0], sizes = [8, 32], strides = [1, 1]} : vector<64x32xf32> to vector<8x32xf32>
    %1894 = vector.broadcast %1892 : vector<1x32xf32> to vector<8x32xf32>
    %1895 = arith.mulf %1893, %1894 : vector<8x32xf32>
    %1896 = arith.addf %1885, %1895 : vector<8x32xf32>
    %c24_i32_397 = arith.constant 24 : i32
    %1897 = vector.broadcast %c24_i32_397 : i32 to vector<1x32xi32>
    %1898 = arith.cmpi sge, %1829, %1897 : vector<1x32xi32>
    %c28_i32 = arith.constant 28 : i32
    %1899 = vector.broadcast %c28_i32 : i32 to vector<1x32xi32>
    %1900 = arith.cmpi slt, %1829, %1899 : vector<1x32xi32>
    %1901 = arith.andi %1898, %1900 : vector<1x32xi1>
    %1902 = arith.extui %1901 : vector<1x32xi1> to vector<1x32xi32>
    %1903 = arith.sitofp %1902 : vector<1x32xi32> to vector<1x32xf32>
    %1904 = vector.extract_strided_slice %1828 {offsets = [48, 0], sizes = [8, 32], strides = [1, 1]} : vector<64x32xf32> to vector<8x32xf32>
    %1905 = vector.broadcast %1903 : vector<1x32xf32> to vector<8x32xf32>
    %1906 = arith.mulf %1904, %1905 : vector<8x32xf32>
    %1907 = arith.addf %1896, %1906 : vector<8x32xf32>
    %c28_i32_398 = arith.constant 28 : i32
    %1908 = vector.broadcast %c28_i32_398 : i32 to vector<1x32xi32>
    %1909 = arith.cmpi sge, %1829, %1908 : vector<1x32xi32>
    %c32_i32 = arith.constant 32 : i32
    %1910 = vector.broadcast %c32_i32 : i32 to vector<1x32xi32>
    %1911 = arith.cmpi slt, %1829, %1910 : vector<1x32xi32>
    %1912 = arith.andi %1909, %1911 : vector<1x32xi1>
    %1913 = arith.extui %1912 : vector<1x32xi1> to vector<1x32xi32>
    %1914 = arith.sitofp %1913 : vector<1x32xi32> to vector<1x32xf32>
    %1915 = vector.extract_strided_slice %1828 {offsets = [56, 0], sizes = [8, 32], strides = [1, 1]} : vector<64x32xf32> to vector<8x32xf32>
    %1916 = vector.broadcast %1914 : vector<1x32xf32> to vector<8x32xf32>
    %1917 = arith.mulf %1915, %1916 : vector<8x32xf32>
    %1918 = arith.addf %1907, %1917 : vector<8x32xf32>
    %c0_399 = arith.constant 0 : index
    %c0_400 = arith.constant 0 : index
    %1919 = vector.load %arg9[%c0_399, %c0_400] : memref<32x32xf32, #tpu.memory_space<vmem>>, vector<32x32xf32>
    %cst_401 = arith.constant dense<0.000000e+00> : vector<8x32xf32>
    %1920 = tpu.matmul %1918, %1919, %cst_401 {dimension_numbers = #tpu.dot_dimension_numbers<[1], [0], [0], [1], [0, 0, 1, 1], [], []>} : vector<8x32xf32>, vector<32x32xf32>, vector<8x32xf32> -> vector<8x32xf32>
    %c0_402 = arith.constant 0 : index
    %c0_403 = arith.constant 0 : index
    %1921 = vector.load %arg10[%c0_402, %c0_403] : memref<1x32xf32, #tpu.memory_space<vmem>>, vector<1x32xf32>
    %1922 = vector.broadcast %1921 : vector<1x32xf32> to vector<8x32xf32>
    %1923 = arith.addf %1920, %1922 : vector<8x32xf32>
    %c0_404 = arith.constant 0 : index
    %c0_405 = arith.constant 0 : index
    %c0_406 = arith.constant 0 : index
    %1924 = vector.load %arg2[%c0_404, %c0_405, %c0_406] : memref<1x8x32xf32, #tpu.memory_space<vmem>>, vector<1x8x32xf32>
    %1925 = vector.shape_cast %1924 : vector<1x8x32xf32> to vector<8x32xf32>
    %1926 = arith.addf %1923, %1925 : vector<8x32xf32>
    %c0_407 = arith.constant 0 : index
    %c0_408 = arith.constant 0 : index
    %c0_409 = arith.constant 0 : index
    %1927 = vector.load %arg11[%c0_407, %c0_408, %c0_409] : memref<1x8x32xf32, #tpu.memory_space<vmem>>, vector<1x8x32xf32>
    %1928 = vector.shape_cast %1927 : vector<1x8x32xf32> to vector<8x32xf32>
    %1929 = vector.shape_cast %1926 : vector<8x32xf32> to vector<1x8x32xf32>
    tpu.vector_store %arg11[%c0_407, %c0_408, %c0_409], %1929 {strides = array<i32>} : memref<1x8x32xf32, #tpu.memory_space<vmem>>, vector<1x8x32xf32>,
    return
  }
  func.func @transform_0(%arg0: i32) -> (i32, i32, i32) {
    %c0_i32 = arith.constant 0 : i32
    %c0_i32_0 = arith.constant 0 : i32
    %c0_i32_1 = arith.constant 0 : i32
    return %arg0, %c0_i32, %c0_i32_0 : i32, i32, i32
  }
  func.func @transform_1(%arg0: i32) -> (i32, i32, i32) {
    %c0_i32 = arith.constant 0 : i32
    %c0_i32_0 = arith.constant 0 : i32
    %c0_i32_1 = arith.constant 0 : i32
    return %arg0, %c0_i32, %c0_i32_0 : i32, i32, i32
  }
  func.func @transform_2(%arg0: i32) -> (i32, i32, i32) {
    %c0_i32 = arith.constant 0 : i32
    %c0_i32_0 = arith.constant 0 : i32
    %c0_i32_1 = arith.constant 0 : i32
    return %arg0, %c0_i32, %c0_i32_0 : i32, i32, i32
  }
  func.func @transform_3(%arg0: i32) -> (i32, i32, i32) {
    %c0_i32 = arith.constant 0 : i32
    %c0_i32_0 = arith.constant 0 : i32
    %c0_i32_1 = arith.constant 0 : i32
    return %arg0, %c0_i32, %c0_i32_0 : i32, i32, i32
  }
  func.func @transform_4(%arg0: i32) -> (i32, i32) {
    %c0_i32 = arith.constant 0 : i32
    %c0_i32_0 = arith.constant 0 : i32
    %c0_i32_1 = arith.constant 0 : i32
    return %c0_i32, %c0_i32_0 : i32, i32
  }
  func.func @transform_5(%arg0: i32) -> (i32, i32) {
    %c0_i32 = arith.constant 0 : i32
    %c0_i32_0 = arith.constant 0 : i32
    %c0_i32_1 = arith.constant 0 : i32
    return %c0_i32, %c0_i32_0 : i32, i32
  }
  func.func @transform_6(%arg0: i32) -> (i32, i32) {
    %c0_i32 = arith.constant 0 : i32
    %c0_i32_0 = arith.constant 0 : i32
    %c0_i32_1 = arith.constant 0 : i32
    return %c0_i32, %c0_i32_0 : i32, i32
  }
  func.func @transform_7(%arg0: i32) -> (i32, i32) {
    %c0_i32 = arith.constant 0 : i32
    %c0_i32_0 = arith.constant 0 : i32
    %c0_i32_1 = arith.constant 0 : i32
    return %c0_i32, %c0_i32_0 : i32, i32
  }
  func.func @transform_8(%arg0: i32) -> (i32, i32) {
    %c0_i32 = arith.constant 0 : i32
    %c0_i32_0 = arith.constant 0 : i32
    %c0_i32_1 = arith.constant 0 : i32
    return %c0_i32, %c0_i32_0 : i32, i32
  }
  func.func @transform_9(%arg0: i32) -> (i32, i32) {
    %c0_i32 = arith.constant 0 : i32
    %c0_i32_0 = arith.constant 0 : i32
    %c0_i32_1 = arith.constant 0 : i32
    return %c0_i32, %c0_i32_0 : i32, i32
  }
  func.func @transform_10(%arg0: i32) -> (i32, i32, i32) {
    %c0_i32 = arith.constant 0 : i32
    %c0_i32_0 = arith.constant 0 : i32
    %c0_i32_1 = arith.constant 0 : i32
    return %arg0, %c0_i32, %c0_i32_0 : i32, i32, i32
  }
}

</mosaic_0001>

<bundles_post_ra>
// kernel: pallas_forward.1
= control target key start
LH: loop header
LB: loop body
LE: loop exit
PB: predicated region body
PF: predicated region fallthrough
CT: control target
= control target key end

     0   :  { %s2906_s13 = smov 0   ;;  %s4479_s0 = inlined_call_operand.vmem [shape: f32[2,8,32], index: 0, kind: input, shape index: {}]   ;;  %s4480_s1 = inlined_call_operand.vmem [shape: f32[2,8,32], index: 1, kind: input, shape index: {}]   ;;  %s4481_s2 = inlined_call_operand.vmem [shape: f32[2,80,32], index: 2, kind: input, shape index: {}]   ;;  %s4482_s3 = inlined_call_operand.vmem [shape: f32[2,8,2], index: 3, kind: input, shape index: {}]   ;;  %s4483_s4 = inlined_call_operand.vmem [shape: f32[32,32], index: 4, kind: input, shape index: {}]   ;;  %s4484_s5 = inlined_call_operand.vmem [shape: f32[1,32], index: 5, kind: input, shape index: {}]   ;;  %s4485_s6 = inlined_call_operand.vmem [shape: f32[32,96], index: 6, kind: input, shape index: {}]   ;;  %s4486_s7 = inlined_call_operand.vmem [shape: f32[1,96], index: 7, kind: input, shape index: {}]   ;;  %s4487_s8 = inlined_call_operand.vmem [shape: f32[32,32], index: 8, kind: input, shape index: {}]   ;;  %s4488_s9 = inlined_call_operand.vmem [shape: f32[1,32], index: 9, kind: input, shape index: {}]   ;;  %s4489_s10 = inlined_call_operand.vmem [shape: f32[2,8,32], index: 10, kind: output, shape index: {}]  }
   0x1 LB: > { %s2393_s14 = sadd.s32 4294967295, %s2775_s13   ;;  %p2397_p0 = scmp.ge.s32.totalorder %s2775_s13, 1  ;;  %s2775_s13 = sphi %s2906_s13, %s20_s13  }
   0x2   : > { %p339_p1 = scmp.lt.s32.totalorder %s2775_s13, 3 }
   0x4   : > { %p340_p2 = pnand %p2397_p0, %p339_p1 }
   0x6   : > { %343 = sbr.rel (%p340_p2) target bundleno = 1861 (0x745), region = 60 }
   0xb   : > { %v424_v0 = vld [vmem:[%s4483_s4 + $0x18] sm:$0xff]  ;;  %v423_v1 = vld [vmem:[%s4483_s4 + $0x10] sm:$0xff]  ;;  %p388_p3 = scmp.lt.s32.totalorder %s2393_s14, 1  ;;  %v422_v2 = vld [vmem:[%s4483_s4 + $0x8] sm:$0xff]  ;;  %vm429_vm0 = vcmask 261120   ;;  %v4490_v8 = vmov 1  }
   0xc   : > { %2437 = vmatpush.msra.mxu1 %v424_v0  ;;  %472 = vmatpush.msra.mxu0 %v424_v0  ;;  %v421_v3 = vld [vmem:[%s4483_s4] sm:$0xff]  ;;  %v510_v4 = vld [vmem:[%s4485_s6 + $0x18] sm:$0xff]  ;;  %v509_v6 = vld [vmem:[%s4485_s6 + $0x10] sm:$0xff]  ;;  %v4512_v10 = vmov 0   ;;  %s2779_s28 = smov 56   ;;  %s2780_s29 = smov 104  }
   0xd   : > { %s4790_s14 = smov (!%p388_p3, %s2393_s14), 1  ;;  %2543 = vset.pattern.permute.xlu1 %v4490_v8  ;;  %v508_v9 = vld [vmem:[%s4485_s6 + $0x8] sm:$0xff]  ;;  %2542 = vset.pattern.permute.xlu0 %v4512_v10  ;;  %v507_v11 = vld [vmem:[%s4485_s6] sm:$0xff]  ;;  %s2781_s11 = smov 80   ;;  %v4496_v8 = vmov 37  }
   0xe   : > { %2438 = vmatpush.msra.mxu1 %v423_v1  ;;  %473 = vmatpush.msra.mxu0 %v423_v1  ;;  %s2451_s23 = smul.u32 80, %s4790_s14  ;;  %s2926_s24 = sshll.u32 %s4790_s14, 3  ;;  %v2755_v19 = vld [vmem:[%s4484_s5] ss:$0 sm:$0xff] }
   0xf   : > { %s404_s27 = scalar_lea.vmem %s4482_s3, %s2926_s24  ;;  %s391_s22 = scalar_lea.vmem %s4479_s0, %s2926_s24  ;;  %v2756_v24 = vld [vmem:[%s4486_s7] ss:$0 sm:$0xff] }
  0x10   : > { %2439 = vmatpush.msra.mxu1 %v422_v2  ;;  %474 = vmatpush.msra.mxu0 %v422_v2  ;;  %s2935_s30 = scalar_lea.vmem %s4481_s2, %s2451_s23  ;;  %v420_v7 = vld [vmem:[%s404_s27] sm:$0xff]  ;;  %s2782_s12 = smov 120  }
  0x11   : > { %v416_v5 = vld [vmem:[%s2935_s30 + $0x30] sm:$0xff]  ;;  %613 = vperm.xlu1 %2543, %v420_v7   ;;  %606 = vperm.xlu0 %2542, %v420_v7   ;;  %v417_v12 = vld [vmem:[%s2935_s30 + $0x38] sm:$0xff]  ;;  %v418_v13 = vld [vmem:[%s2935_s30 + $0x40] sm:$0xff]  ;;  %s2783_s14 = smov 8   ;;  %s2786_s15 = smov 24  }
  0x12   : > { %2440 = vmatpush.msra.mxu1 %v421_v3  ;;  %475 = vmatpush.msra.mxu0 %v421_v3  ;;  %v419_v14 = vld [vmem:[%s2935_s30 + $0x48] sm:$0xff]  ;;  %v409_v15 = vld [vmem:[%s391_s22] sm:$0xff]  ;;  %s2787_s16 = smov 48   ;;  %s2788_s17 = smov 72  }
  0x13   : > { %2409 = vmatmul.msk.f32.vlgmr.msra.gmra.mxu1 %vm429_vm0, %v416_v5  ;;  %s2815_s18 = smov 112  }
  0x14   : > { %530 = vmatpush.msrb.mxu1 %v510_v4 }
  0x16   : > { %531 = vmatpush.msrb.mxu1 %v509_v6 }
  0x18   : > { %532 = vmatpush.msrb.mxu1 %v508_v9 }
  0x1a   : > { %533 = vmatpush.msrb.mxu1 %v507_v11 }
  0x1b   : > { %2410 = vmatmul.msk.f32.gmra.mxu1 %vm429_vm0, %v417_v12  ;;  %v2784_v12 = vmov 8  }
  0x1c   : > { %2545 = vset.pattern.permute.xlu0 %v2784_v12  ;;  %2544 = vset.pattern.permute.xlu2 %v2784_v12 }
  0x23   : > { %2411 = vmatmul.msk.f32.gmra.mxu1 %vm429_vm0, %v418_v13 }
  0x2b   : > { %2412 = vmatmul.msk.f32.gmra.mxu1 %vm429_vm0, %v419_v14  ;;  %v2785_v14 = vmov 32  }
  0x2c   : > { %2547 = vset.pattern.permute.xlu1 %v2785_v14 }
  0x33   : > { %2413 = vmatmul.msk.f32.vlgmr.msrb.gmra.mxu1 %vm429_vm0, %v409_v15 }
  0x83   : > { %v614_v26 = vpop.permute.xlu1 %613  ;;  %v607_v28 = vpop.permute.xlu0 %606 }
  0x90   : > { %v495_v16 = vpop.f32.mrf.mxu1 }
  0x91   : > { %v496_v25 = vadd.f32 %v2755_v19, %v495_v16 }
  0x98   : > { %v498_v17 = vpop.f32.mrf.mxu1 }
  0x99   : > { %v499_v23 = vadd.f32 %v2755_v19, %v498_v17 }
  0xa0   : > { %v501_v18 = vpop.f32.mrf.mxu1 }
  0xa1   : > { %v502_v22 = vadd.f32 %v2755_v19, %v501_v18 }
  0xa8   : > { %v504_v20 = vpop.f32.mrf.mxu1 }
  0xa9   : > { %v505_v21 = vadd.f32 %v2755_v19, %v504_v20 }
  0xab   : > { %2179 = vmatpush.msra.mxu2 %v505_v21  ;;  %2441 = vmatpush.msra.mxu3 %v505_v21 }
  0xad   : > { %2180 = vmatpush.msra.mxu2 %v502_v22  ;;  %2442 = vmatpush.msra.mxu3 %v502_v22 }
  0xaf   : > { %2181 = vmatpush.msra.mxu2 %v499_v23  ;;  %2443 = vmatpush.msra.mxu3 %v499_v23 }
  0xb0   : > { %v535_v27 = vpop.f32.mrf.mxu1 }
  0xb1   : > { %v2970_v29 = vadd.f32 %v2756_v24, %v535_v27  ;;  %2182 = vmatpush.msra.mxu2 %v496_v25  ;;  %2444 = vmatpush.msra.mxu3 %v496_v25 }
  0xb3   : > { %v616_v30 = vadd.f32 %v614_v26, %v2970_v29  ;;  %v609_v31 = vadd.f32 %v607_v28, %v2970_v29  ;;  %547 = vrot.lane.b32.xlu1 %v2970_v29, %s2779_s28  ;;  %539 = vrot.lane.b32.xlu0 %v2970_v29, %s2780_s29 }
  0xb5   : > { %v617_v32 = vmul.f32 8.0, %v616_v30  ;;  %v610_v33 = vmul.f32 8.0, %v609_v31  ;;  %v734_v34 = vmul.f32 4.0, %v609_v31  ;;  %v736_v38 = vmul.f32 4.0, %v616_v30 }
  0xb7   : > { %v2415_v35 = vadd.f32 -0.5, %v617_v32  ;;  %v2414_v36 = vadd.f32 -0.5, %v610_v33  ;;  %v2416_v37 = vadd.f32 -0.5, %v734_v34  ;;  %v2417_v44 = vadd.f32 -0.5, %v736_v38 }
  0xb8   : > { %v2789_v38 = vmov 80  }
  0xb9   : > { %v619_v39 = vfloor.f32 %v2414_v36  ;;  %v738_v40 = vfloor.f32 %v2416_v37  ;;  %v620_v41 = vfloor.f32 %v2415_v35  ;;  %v739_v48 = vfloor.f32 %v2417_v44 }
  0xbb   : > { %v2978_v42 = vsub.f32 %v2414_v36, %v619_v39  ;;  %v2980_v43 = vsub.f32 %v2416_v37, %v738_v40  ;;  %543 = vrot.lane.b32.xlu0 %v2970_v29, %s2781_s11  ;;  %v622_v45 = vsub.f32 %v2415_v35, %v620_v41  ;;  %v2984_v46 = vcvt.f32.s32 %v620_v41 }
  0xbc   : > { %v741_v50 = vsub.f32 %v2417_v44, %v739_v48  ;;  %v2995_v53 = vcvt.f32.s32 %v739_v48  ;;  %v2998_v54 = vcvt.f32.s32 %v619_v39  ;;  %v3014_v60 = vcvt.f32.s32 %v738_v40 }
  0xbd   : > { %634 = vrot.lane.b32.xlu1 %v622_v45, %s2782_s12  ;;  %v626_v47 = vsub.f32 1.0, %v622_v45  ;;  %vm648_vm1 = vcmp.lt.s32.totalorder %v2984_v46, 8  ;;  %vm642_vm2 = vcmp.ge.s32.totalorder %v2984_v46, 0  ;;  %v687_v51 = vadd.s32 1, %v2984_v46 }
  0xbe   : > { %v649_v49 = vsel %vm648_vm1, 1, %v4512_v10  ;;  %v643_v52 = vsel %vm642_vm2, 1, %v4512_v10  ;;  %v745_v55 = vsub.f32 1.0, %v741_v50  ;;  %vm761_vm4 = vcmp.ge.s32.totalorder %v2995_v53, 0 }
  0xbf   : > { %628 = vrot.lane.b32.xlu2 %v626_v47, %s2782_s12  ;;  %vm688_vm3 = vcmp.ge.s32.totalorder %v687_v51, 0  ;;  %v3004_v57 = vadd.s32 1, %v2998_v54  ;;  %v3008_v58 = vadd.s32 1, %v2995_v53  ;;  %vm665_vm5 = vcmp.gt.s32.totalorder %v2998_v54, 0 }
  0xc0   : > { %v689_v56 = vsel %vm688_vm3, 1, %v4512_v10  ;;  %v762_v59 = vsel %vm761_vm4, 1, %v4512_v10  ;;  %vm767_vm6 = vcmp.lt.s32.totalorder %v2995_v53, 4  ;;  %v666_v61 = vsel %vm665_vm5, %v2998_v54, 0 }
  0xc1   : > { %vm680_vm7 = vcmp.gt.s32.totalorder %v3004_v57, 0  ;;  %v768_v62 = vsel %vm767_vm6, 1, %v4512_v10  ;;  %vm808_vm8 = vcmp.ge.s32.totalorder %v3008_v58, 0  ;;  %vm667_vm9 = vcmp.lt.s32.totalorder %v666_v61, 7 }
  0xc2   : > { %v681_v63 = vsel %vm680_vm7, %v3004_v57, 0  ;;  %v809_v0 = vsel %vm808_vm8, 1, %v4512_v10  ;;  %v3024_v1 = vadd.s32 1, %v3014_v60  ;;  %v668_v2 = vsel %vm667_vm9, %v666_v61, 7 }
  0xc3   : > { %650 = vrot.lane.b32.xlu0 %v649_v49, %s2782_s12  ;;  %vm682_vm10 = vcmp.lt.s32.totalorder %v681_v63, 7  ;;  %vm694_vm12 = vcmp.lt.s32.totalorder %v687_v51, 8  ;;  %vm785_vm13 = vcmp.gt.s32.totalorder %v3014_v60, 0  ;;  %vm814_vm1 = vcmp.lt.s32.totalorder %v3008_v58, 4 }
  0xc4   : > { %vm800_vm11 = vcmp.gt.s32.totalorder %v3024_v1, 0  ;;  %v683_v3 = vsel %vm682_vm10, %v681_v63, 7  ;;  %v695_v5 = vsel %vm694_vm12, 1, %v4512_v10  ;;  %v786_v6 = vsel %vm785_vm13, %v3014_v60, 0 }
  0xc5   : > { %753 = vrot.lane.b32.xlu1 %v741_v50, %s2782_s12  ;;  %v801_v4 = vsel %vm800_vm11, %v3024_v1, 0  ;;  %vm787_vm15 = vcmp.lt.s32.totalorder %v786_v6, 3  ;;  %v815_v11 = vsel %vm814_vm1, 1, %v4512_v10  ;;  %vm702_vm2 = vcmp.gt.s32.totalorder %v687_v51, 0 }
  0xc6   : > { %vm802_vm14 = vcmp.lt.s32.totalorder %v801_v4, 3  ;;  %v788_v9 = vsel %vm787_vm15, %v786_v6, 3  ;;  %v703_v17 = vsel %vm702_vm2, %v687_v51, 0  ;;  %vm779_vm4 = vcmp.gt.s32.totalorder %v2995_v53, 0 }
  0xc7   : > { %644 = vrot.lane.b32.xlu2 %v643_v52, %s2782_s12  ;;  %v803_v7 = vsel %vm802_vm14, %v801_v4, 3  ;;  %vm704_vm3 = vcmp.lt.s32.totalorder %v703_v17, 7  ;;  %vm822_vm5 = vcmp.gt.s32.totalorder %v3008_v58, 0  ;;  %vm660_vm6 = vcmp.gt.s32.totalorder %v2984_v46, 0 }
  0xc8   : > { %v3046_v22 = vsel %vm704_vm3, %v703_v17, 7  ;;  %v780_v28 = vsel %vm779_vm4, %v2995_v53, 0  ;;  %v823_v30 = vsel %vm822_vm5, %v3008_v58, 0  ;;  %v661_v31 = vsel %vm660_vm6, %v2984_v46, 0 }
  0xc9   : > { %v706_v25 = vmul.u32 8, %v3046_v22  ;;  %vm781_vm7 = vcmp.lt.s32.totalorder %v780_v28, 3  ;;  %vm824_vm8 = vcmp.lt.s32.totalorder %v823_v30, 3  ;;  %vm662_vm9 = vcmp.lt.s32.totalorder %v661_v31, 7 }
  0xca   : > { %v782_v33 = vsel %vm781_vm7, %v780_v28, 3  ;;  %v825_v34 = vsel %vm824_vm8, %v823_v30, 3  ;;  %v3071_v35 = vsel %vm662_vm9, %v661_v31, 7  ;;  %v2790_v46 = vmov 56  }
  0xcb   : > { %747 = vrot.lane.b32.xlu0 %v745_v55, %s2782_s12  ;;  %v783_v36 = vmul.u32 4, %v782_v33  ;;  %v826_v37 = vmul.u32 4, %v825_v34  ;;  %v664_v39 = vmul.u32 8, %v3071_v35  ;;  %v2791_v49 = vmov 33  }
  0xcc   : > { %v2792_v50 = vmov 9   ;;  %v2793_v51 = vmov 10   ;;  %v2794_v53 = vmov 58   ;;  %v2795_v55 = vmov 57  }
  0xcd   : > { %690 = vrot.lane.b32.xlu1 %v689_v56, %s2782_s12  ;;  %v3079_v41 = vadd.s32 64, %v783_v36  ;;  %v3081_v44 = vadd.s32 64, %v826_v37  ;;  %v2796_v58 = vmov 35   ;;  %v2799_v63 = vmov 34  }
  0xce   : > { %v4504_v30 = vmov 12   ;;  %v4502_v34 = vmov 36   ;;  %v4494_v37 = vmov 60   ;;  %vm639_vm14 = vcmp.ge.s32.totalorder %v2998_v54, 0 }
  0xcf   : > { %763 = vrot.lane.b32.xlu2 %v762_v59, %s2782_s12  ;;  %v2797_v59 = vmov 81   ;;  %vm640_vm15 = vcmp.lt.s32.totalorder %v2998_v54, 8  ;;  %vm673_vm1 = vcmp.ge.s32.totalorder %v3004_v57, 0  ;;  %vm674_vm2 = vcmp.lt.s32.totalorder %v3004_v57, 8 }
  0xd0   : > { %vm3576_vm4 = vmand %vm639_vm14, %vm640_vm15 }
  0xd1   : > { %vm3580_vm5 = vmand %vm673_vm1, %vm674_vm2  ;;  %vm758_vm2 = vcmp.ge.s32.totalorder %v3014_v60, 0 }
  0xd3   : > { %769 = vrot.lane.b32.xlu0 %v768_v62, %s2782_s12  ;;  %v2798_v62 = vmov 83  }
  0xd5   : > { %810 = vrot.lane.b32.xlu1 %v809_v0, %s2782_s12 }
  0xd7   : > { %669 = vrot.lane.b32.xlu2 %v668_v2, %s2783_s14 }
  0xdb   : > { %684 = vrot.lane.b32.xlu0 %v683_v3, %s2783_s14 }
  0xdf   : > { %696 = vrot.lane.b32.xlu2 %v695_v5, %s2782_s12  ;;  %v2800_v5 = vmov 82  }
  0xe3   : > { %804 = vrot.lane.b32.xlu0 %v803_v7, %s2783_s14 }
  0xe7   : > { %789 = vrot.lane.b32.xlu2 %v788_v9, %s2783_s14 }
  0xef   : > { %816 = vrot.lane.b32.xlu2 %v815_v11, %s2782_s12  ;;  %s395_s12 = scalar_lea.vmem %s4480_s1, %s2926_s24 }
 0x119   : > { %v3038_v13 = vpop.permute.xlu2 %628 }
 0x11a   : > { %v3590_v57 = vmul.f32 %v3038_v13, %v2978_v42 }
 0x121   : > { %v3041_v15 = vpop.permute.xlu2 %644 }
 0x122   : > { %vm646_vm3 = vcmp.ne.s32.totalorder %v3041_v15, 0 }
 0x123   : > { %vm647_vm7 = vmand %vm3576_vm4, %vm646_vm3 }
 0x124   : > { %vm676_vm8 = vmand %vm3580_vm5, %vm646_vm3  ;;  %vm759_vm3 = vcmp.lt.s32.totalorder %v3014_v60, 4 }
 0x125   : > { %v540_v16 = vpop.permute.xlu0 %539  ;;  %v548_v23 = vpop.permute.xlu1 %547 }
 0x126   : > { %v542_v19 = vmax.f32 %v2970_v29, %v540_v16  ;;  %v2801_v16 = vmov 11  }
 0x129   : > { %v3043_v18 = vpop.permute.xlu2 %763 }
 0x12d   : > { %v544_v20 = vpop.permute.xlu0 %543 }
 0x12e   : > { %v546_v21 = vmax.f32 %v542_v19, %v544_v20 }
 0x12f   : > { %v3139_v3 = vpop.permute.xlu1 %634 }
 0x130   : > { %v3048_v24 = vmax.f32 %v546_v21, %v548_v23  ;;  %v4505_v21 = vmov 59  }
 0x131   : > { %v670_v26 = vpop.permute.xlu2 %669 }
 0x132   : > { %555 = vrot.lane.b32.xlu1 %v3048_v24, %s2786_s15  ;;  %561 = vrot.lane.b32.xlu2 %v3048_v24, %s2787_s16  ;;  %v3060_v27 = vadd.s32 %v706_v25, %v670_v26  ;;  %v3077_v40 = vadd.s32 %v670_v26, %v664_v39 }
 0x134   : > { %4551 = vst [vmem:[#allocation2_spill] sm:$0xff] %v3060_v27  ;;  %875 = vperm.xlu0 %2545, %v3060_v27  }
 0x135   : > { %v3105_v52 = vpop.permute.xlu0 %650 }
 0x136   : > { %vm652_vm6 = vcmp.ne.s32.totalorder %v3105_v52, 0 }
 0x137   : > { %v3153_v9 = vpop.permute.xlu1 %753  ;;  %vm3597_vm9 = vmand %vm647_vm7, %vm652_vm6 }
 0x138   : > { %vm3713_vm7 = vmand %vm758_vm2, %vm759_vm3 }
 0x139   : > { %v3066_v32 = vpop.permute.xlu2 %696 }
 0x13a   : > { %567 = vrot.lane.b32.xlu2 %v3048_v24, %s2788_s17  ;;  %919 = vperm.xlu1 %2547, %v3060_v27  }
 0x13c   : > { %2550 = vset.pattern.permute.xlu0 %v2789_v38 }
 0x13d   : > { %v3113_v56 = vpop.permute.xlu0 %747 }
 0x13f   : > { %v3167_v19 = vpop.permute.xlu1 %690 }
 0x141   : > { %v790_v45 = vpop.permute.xlu2 %789 }
 0x142   : > { %853 = vperm.xlu2 %2544, %v3077_v40   ;;  %2549 = vset.pattern.permute.xlu1 %v2790_v46  ;;  %v3086_v47 = vadd.s32 %v790_v45, %v3079_v41  ;;  %v3089_v48 = vadd.s32 %v3081_v44, %v790_v45 }
 0x144   : > { %4552 = vst [vmem:[#allocation3_spill] sm:$0xff] %v3086_v47  ;;  %985 = vperm.xlu0 %2550, %v3086_v47   ;;  %963 = vperm.xlu1 %2549, %v3089_v48  }
 0x145   : > { %4553 = vst [vmem:[#allocation4_spill] sm:$0xff] %v3089_v48  ;;  %v3121_v61 = vpop.permute.xlu0 %769 }
 0x147   : > { %v3180_v23 = vpop.permute.xlu1 %810 }
 0x149   : > { %v3149_v6 = vpop.permute.xlu2 %816 }
 0x14a   : > { %2546 = vset.pattern.permute.xlu2 %v2785_v14  ;;  %vm818_vm2 = vcmp.ne.s32.totalorder %v3149_v6, 0 }
 0x14b   : > { %897 = vperm.xlu2 %2546, %v3077_v40  }
 0x14c   : > { %2555 = vset.pattern.permute.xlu0 %v2791_v49  ;;  %2552 = vset.pattern.permute.xlu1 %v2792_v50 }
 0x14d   : > { %1089 = vperm.xlu0 %2555, %v3060_v27   ;;  %1029 = vperm.xlu1 %2552, %v3077_v40   ;;  %v685_v0 = vpop.permute.xlu0 %684 }
 0x14e   : > { %v3133_v2 = vadd.s32 %v706_v25, %v685_v0  ;;  %v3145_v4 = vadd.s32 %v685_v0, %v664_v39 }
 0x150   : > { %4554 = vst [vmem:[#allocation5_spill] sm:$0xff] %v3133_v2 }
 0x151   : > { %4555 = vst [vmem:[#allocation6_spill] sm:$0xff] %v3145_v4 }
 0x153   : > { %2548 = vset.pattern.permute.xlu2 %v2790_v46 }
 0x154   : > { %941 = vperm.xlu2 %2548, %v3086_v47  }
 0x155   : > { %2560 = vset.pattern.permute.xlu0 %v2793_v51  ;;  %2554 = vset.pattern.permute.xlu1 %v2791_v49  ;;  %v805_v7 = vpop.permute.xlu0 %804 }
 0x156   : > { %1189 = vperm.xlu0 %2560, %v3077_v40   ;;  %1069 = vperm.xlu1 %2554, %v3077_v40   ;;  %v3158_v11 = vadd.s32 %v3081_v44, %v805_v7  ;;  %v3193_v28 = vadd.s32 %v805_v7, %v3079_v41  ;;  %v4498_v44 = vmov 84   ;;  %v4492_v7 = vmov 13  }
 0x158   : > { %4556 = vst [vmem:[#allocation7_spill] sm:$0xff] %v3158_v11 }
 0x159   : > { %4557 = vst [vmem:[#allocation8_spill] sm:$0xff] %v3193_v28 }
 0x15c   : > { %2551 = vset.pattern.permute.xlu2 %v2789_v38 }
 0x15d   : > { %1007 = vperm.xlu2 %2551, %v3089_v48  }
 0x15e   : > { %2565 = vset.pattern.permute.xlu0 %v2794_v53  ;;  %2557 = vset.pattern.permute.xlu1 %v2795_v55 }
 0x15f   : > { %1289 = vperm.xlu0 %2565, %v3089_v48   ;;  %1129 = vperm.xlu1 %2557, %v3089_v48  }
 0x165   : > { %2553 = vset.pattern.permute.xlu2 %v2792_v50 }
 0x166   : > { %1049 = vperm.xlu2 %2553, %v3060_v27  }
 0x167   : > { %2570 = vset.pattern.permute.xlu0 %v2796_v58  ;;  %2559 = vset.pattern.permute.xlu1 %v2797_v59 }
 0x168   : > { %1389 = vperm.xlu0 %2570, %v3077_v40   ;;  %1169 = vperm.xlu1 %2559, %v3089_v48  }
 0x16e   : > { %2556 = vset.pattern.permute.xlu2 %v2795_v55 }
 0x16f   : > { %1109 = vperm.xlu2 %2556, %v3086_v47  }
 0x170   : > { %2575 = vset.pattern.permute.xlu0 %v2798_v62  ;;  %2562 = vset.pattern.permute.xlu1 %v2799_v63 }
 0x171   : > { %1489 = vperm.xlu0 %2575, %v3089_v48   ;;  %1229 = vperm.xlu1 %2562, %v3077_v40  }
 0x177   : > { %2558 = vset.pattern.permute.xlu2 %v2797_v59 }
 0x178   : > { %1149 = vperm.xlu2 %2558, %v3086_v47  }
 0x179   : > { %2583 = vset.pattern.permute.xlu0 %v2785_v14  ;;  %2564 = vset.pattern.permute.xlu1 %v2794_v53 }
 0x17a   : > { %930 = vperm.xlu0 %2583, %v3133_v2   ;;  %1269 = vperm.xlu1 %2564, %v3086_v47  }
 0x180   : > { %2561 = vset.pattern.permute.xlu2 %v2793_v51 }
 0x181   : > { %1209 = vperm.xlu2 %2561, %v3060_v27  }
 0x182   : > { %2588 = vset.pattern.permute.xlu0 %v2792_v50  ;;  %2567 = vset.pattern.permute.xlu1 %v2800_v5 }
 0x183   : > { %1039 = vperm.xlu0 %2588, %v3145_v4   ;;  %1329 = vperm.xlu1 %2567, %v3089_v48  }
 0x189   : > { %2563 = vset.pattern.permute.xlu2 %v2799_v63 }
 0x18a   : > { %1249 = vperm.xlu2 %2563, %v3060_v27  }
 0x18b   : > { %2593 = vset.pattern.permute.xlu0 %v2795_v55  ;;  %2569 = vset.pattern.permute.xlu1 %v2801_v16 }
 0x18c   : > { %v3162_v17 = vpop.permute.xlu2 %561  ;;  %1139 = vperm.xlu0 %2593, %v3158_v11   ;;  %1369 = vperm.xlu1 %2569, %v3060_v27  }
 0x192   : > { %2566 = vset.pattern.permute.xlu2 %v2800_v5 }
 0x193   : > { %1309 = vperm.xlu2 %2566, %v3086_v47  }
 0x194   : > { %v3170_v20 = vpop.permute.xlu2 %567  ;;  %2598 = vset.pattern.permute.xlu0 %v2799_v63  ;;  %2572 = vset.pattern.permute.xlu1 %v4505_v21 }
 0x195   : > { %1239 = vperm.xlu0 %2598, %v3145_v4   ;;  %1429 = vperm.xlu1 %2572, %v3086_v47  }
 0x19b   : > { %2568 = vset.pattern.permute.xlu2 %v2801_v16 }
 0x19c   : > { %1349 = vperm.xlu2 %2568, %v3077_v40   ;;  %v3178_v22 = vpop.permute.xlu2 %853 }
 0x19d   : > { %2603 = vset.pattern.permute.xlu0 %v2800_v5  ;;  %2574 = vset.pattern.permute.xlu1 %v2798_v62 }
 0x19e   : > { %1339 = vperm.xlu0 %2603, %v3158_v11   ;;  %1469 = vperm.xlu1 %2574, %v3086_v47  }
 0x1a4   : > { %2571 = vset.pattern.permute.xlu2 %v2796_v58  ;;  %v3187_v25 = vpop.permute.xlu1 %555 }
 0x1a5   : > { %1409 = vperm.xlu2 %2571, %v3060_v27   ;;  %v3190_v26 = vpop.permute.xlu2 %897 }
 0x1a6   : > { %2608 = vset.pattern.permute.xlu0 %v4505_v21  ;;  %2577 = vset.pattern.permute.xlu1 %v4504_v30 }
 0x1a7   : > { %1439 = vperm.xlu0 %2608, %v3193_v28   ;;  %1529 = vperm.xlu1 %2577, %v3060_v27  }
 0x1ac   : > { %v3203_v33 = vpop.permute.xlu1 %919 }
 0x1ad   : > { %2573 = vset.pattern.permute.xlu2 %v4505_v21  ;;  %v4506_v21 = vmov 15  }
 0x1ae   : > { %1449 = vperm.xlu2 %2573, %v3089_v48   ;;  %v3201_v31 = vpop.permute.xlu2 %941 }
 0x1af   : > { %2613 = vset.pattern.permute.xlu0 %v4504_v30  ;;  %2579 = vset.pattern.permute.xlu1 %v4502_v34 }
 0x1b0   : > { %1539 = vperm.xlu0 %2613, %v3133_v2   ;;  %1569 = vperm.xlu1 %2579, %v3060_v27  }
 0x1b6   : > { %2576 = vset.pattern.permute.xlu2 %v4504_v30  ;;  %v3210_v35 = vpop.permute.xlu1 %963 }
 0x1b7   : > { %1509 = vperm.xlu2 %2576, %v3077_v40   ;;  %v3213_v36 = vpop.permute.xlu2 %1007 }
 0x1b8   : > { %4558 = vst [vmem:[#allocation9_spill] sm:$0xff] %v3213_v36  ;;  %2614 = vset.pattern.permute.xlu0 %v4494_v37  ;;  %2580 = vset.pattern.permute.xlu1 %v2784_v12  ;;  %v4500_v37 = vmov 85  }
 0x1b9   : > { %1589 = vperm.xlu0 %2614, %v3086_v47   ;;  %864 = vperm.xlu1 %2580, %v3145_v4  }
 0x1bf   : > { %2578 = vset.pattern.permute.xlu2 %v4502_v34  ;;  %v3220_v39 = vpop.permute.xlu1 %1029 }
 0x1c0   : > { %1549 = vperm.xlu2 %2578, %v3077_v40   ;;  %v3223_v41 = vpop.permute.xlu2 %1049 }
 0x1c1   : > { %2620 = vset.pattern.permute.xlu0 %v4498_v44  ;;  %2582 = vset.pattern.permute.xlu1 %v2785_v14  ;;  %v4508_v44 = vmov 14  }
 0x1c2   : > { %1639 = vperm.xlu0 %2620, %v3193_v28   ;;  %908 = vperm.xlu1 %2582, %v3145_v4  }
 0x1c8   : > { %2581 = vset.pattern.permute.xlu2 %v2784_v12  ;;  %v3230_v45 = vpop.permute.xlu1 %1069 }
 0x1c9   : > { %4559 = vst [vmem:[#allocation10_spill] sm:$0xff] %v3230_v45  ;;  %886 = vperm.xlu2 %2581, %v3133_v2   ;;  %v3233_v0 = vpop.permute.xlu2 %1109 }
 0x1ca   : > { %4560 = vst [vmem:[#allocation11_spill] sm:$0xff] %v3233_v0  ;;  %2623 = vset.pattern.permute.xlu0 %v4492_v7  ;;  %2585 = vset.pattern.permute.xlu1 %v2790_v46 }
 0x1cb   : > { %1689 = vperm.xlu0 %2623, %v3060_v27   ;;  %974 = vperm.xlu1 %2585, %v3158_v11  }
 0x1d1   : > { %2584 = vset.pattern.permute.xlu2 %v2790_v46  ;;  %v3240_v14 = vpop.permute.xlu1 %1129 }
 0x1d2   : > { %4561 = vst [vmem:[#allocation12_spill] sm:$0xff] %v3240_v14  ;;  %952 = vperm.xlu2 %2584, %v3193_v28   ;;  %v3243_v12 = vpop.permute.xlu2 %1149 }
 0x1d3   : > { %4562 = vst [vmem:[#allocation13_spill] sm:$0xff] %v3243_v12  ;;  %2627 = vset.pattern.permute.xlu0 %v4496_v8  ;;  %2587 = vset.pattern.permute.xlu1 %v2789_v38  ;;  %v4595_v12 = vmov 37  }
 0x1d4   : > { %1739 = vperm.xlu0 %2627, %v3133_v2   ;;  %1018 = vperm.xlu1 %2587, %v3158_v11  }
 0x1da   : > { %2586 = vset.pattern.permute.xlu2 %v2789_v38  ;;  %v3250_v7 = vpop.permute.xlu1 %1169 }
 0x1db   : > { %4563 = vst [vmem:[#allocation14_spill] sm:$0xff] %v3250_v7  ;;  %996 = vperm.xlu2 %2586, %v3193_v28   ;;  %v3253_v46 = vpop.permute.xlu2 %1209 }
 0x1dc   : > { %4564 = vst [vmem:[#allocation15_spill] sm:$0xff] %v3253_v46  ;;  %2630 = vset.pattern.permute.xlu0 %v4500_v37  ;;  %2590 = vset.pattern.permute.xlu1 %v2791_v49  ;;  %v558_v37 = vsub.f32 %v2970_v29, %v3187_v25 }
 0x1dd   : > { %1789 = vperm.xlu0 %2630, %v3086_v47   ;;  %1079 = vperm.xlu1 %2590, %v3145_v4  }
 0x1e3   : > { %2589 = vset.pattern.permute.xlu2 %v2792_v50  ;;  %v3260_v8 = vpop.permute.xlu1 %1229  ;;  %v559_v50 = vmul.f32 1.442695, %v558_v37 }
 0x1e4   : > { %4565 = vst [vmem:[#allocation16_spill] sm:$0xff] %v3260_v8  ;;  %1059 = vperm.xlu2 %2589, %v3133_v2   ;;  %v3263_v38 = vpop.permute.xlu2 %1249 }
 0x1e5   : > { %4566 = vst [vmem:[#allocation17_spill] sm:$0xff] %v3263_v38  ;;  %2634 = vset.pattern.permute.xlu0 %v4508_v44  ;;  %2592 = vset.pattern.permute.xlu1 %v2795_v55  ;;  %2758 = vpow2.f32 %v559_v50  ;;  %v4510_v50 = vmov 38   ;;  %v4589_v38 = vmov 13  }
 0x1e6   : > { %1839 = vperm.xlu0 %2634, %v3145_v4   ;;  %1119 = vperm.xlu1 %2592, %v3193_v28  }
 0x1eb   : > { %v3285_v55 = vpop.eup %2758 }
 0x1ec   : > { %2591 = vset.pattern.permute.xlu2 %v2791_v49  ;;  %v3272_v34 = vpop.permute.xlu1 %1269 }
 0x1ed   : > { %4567 = vst [vmem:[#allocation18_spill] sm:$0xff] %v3272_v34  ;;  %1099 = vperm.xlu2 %2591, %v3133_v2   ;;  %v3275_v30 = vpop.permute.xlu2 %1309 }
 0x1ee   : > { %4568 = vst [vmem:[#allocation19_spill] sm:$0xff] %v3275_v30  ;;  %2638 = vset.pattern.permute.xlu0 %v4506_v21  ;;  %2595 = vset.pattern.permute.xlu1 %v2797_v59 }
 0x1ef   : > { %1999 = vperm.xlu0 %2638, %v3145_v4   ;;  %1179 = vperm.xlu1 %2595, %v3158_v11  }
 0x1f5   : > { %2594 = vset.pattern.permute.xlu2 %v2797_v59  ;;  %v3282_v49 = vpop.permute.xlu1 %1329 }
 0x1f6   : > { %4569 = vst [vmem:[#allocation20_spill] sm:$0xff] %v3282_v49  ;;  %1159 = vperm.xlu2 %2594, %v3193_v28   ;;  %v3287_v25 = vpop.permute.xlu2 %1349 }
 0x1f7   : > { %4570 = vst [vmem:[#allocation21_spill] sm:$0xff] %v3287_v25  ;;  %574 = vrot.lane.b32.xlu0 %v3285_v55, %s2780_s29  ;;  %2597 = vset.pattern.permute.xlu1 %v2793_v51 }
 0x1f8   : > { %1219 = vperm.xlu1 %2597, %v3133_v2  }
 0x1fe   : > { %2596 = vset.pattern.permute.xlu2 %v2793_v51  ;;  %v3294_v37 = vpop.permute.xlu1 %1369 }
 0x1ff   : > { %4571 = vst [vmem:[#allocation22_spill] sm:$0xff] %v3294_v37  ;;  %1199 = vperm.xlu2 %2596, %v3145_v4   ;;  %2009 = vperm.xlu0 %2638, %v3060_v27   ;;  %v3298_v59 = vpop.permute.xlu2 %1409  ;;  %v4583_v37 = vmov 60  }
 0x200   : > { %4572 = vst [vmem:[#allocation23_spill] sm:$0xff] %v3298_v59  ;;  %2600 = vset.pattern.permute.xlu1 %v2794_v53  ;;  %v4582_v59 = vmov 84  }
 0x201   : > { %1279 = vperm.xlu1 %2600, %v3193_v28  }
 0x207   : > { %2599 = vset.pattern.permute.xlu2 %v2799_v63  ;;  %2640 = vset.pattern.permute.xlu0 %v4510_v50  ;;  %v3304_v21 = vpop.permute.xlu1 %1429 }
 0x208   : > { %4573 = vst [vmem:[#allocation24_spill] sm:$0xff] %v3304_v21  ;;  %1259 = vperm.xlu2 %2599, %v3133_v2   ;;  %1899 = vperm.xlu0 %2640, %v3133_v2   ;;  %v3308_v51 = vpop.permute.xlu2 %1449  ;;  %v4581_v21 = vmov 36  }
 0x209   : > { %4574 = vst [vmem:[#allocation25_spill] sm:$0xff] %v3308_v51  ;;  %2602 = vset.pattern.permute.xlu1 %v2800_v5  ;;  %v4579_v51 = vmov 12  }
 0x20a   : > { %1319 = vperm.xlu1 %2602, %v3193_v28  }
 0x210   : > { %2601 = vset.pattern.permute.xlu2 %v2794_v53  ;;  %v3313_v44 = vpop.permute.xlu1 %1469  ;;  %2643 = vset.pattern.permute.xlu0 %v4512_v10 }
 0x211   : > { %4575 = vst [vmem:[#allocation26_spill] sm:$0xff] %v3313_v44  ;;  %1299 = vperm.xlu2 %2601, %v3158_v11   ;;  %v3317_v63 = vpop.permute.xlu2 %1509 }
 0x212   : > { %2605 = vset.pattern.permute.xlu1 %v2801_v16 }
 0x213   : > { %1379 = vperm.xlu1 %2605, %v3133_v2  }
 0x219   : > { %2604 = vset.pattern.permute.xlu2 %v2801_v16  ;;  %v3322_v50 = vpop.permute.xlu1 %1529  ;;  %v4578_v16 = vmov 59  }
 0x21a   : > { %1359 = vperm.xlu2 %2604, %v3145_v4   ;;  %v3325_v5 = vpop.permute.xlu2 %1549 }
 0x21b   : > { %4576 = vst [vmem:[#allocation27_spill] sm:$0xff] %v3325_v5  ;;  %2607 = vset.pattern.permute.xlu1 %v2796_v58 }
 0x21c   : > { %1419 = vperm.xlu1 %2607, %v3133_v2  }
 0x222   : > { %2606 = vset.pattern.permute.xlu2 %v2796_v58  ;;  %v3330_v53 = vpop.permute.xlu1 %1569 }
 0x223   : > { %4577 = vst [vmem:[#allocation28_spill] sm:$0xff] %v3330_v53  ;;  %1399 = vperm.xlu2 %2606, %v3145_v4   ;;  %v3333_v10 = vpop.permute.xlu2 %886 }
 0x224   : > { %2610 = vset.pattern.permute.xlu1 %v2798_v62 }
 0x225   : > { %1479 = vperm.xlu1 %2610, %v3193_v28  }
 0x22b   : > { %2609 = vset.pattern.permute.xlu2 %v4578_v16  ;;  %v3338_v44 = vpop.permute.xlu1 %864 }
 0x22c   : > { %1459 = vperm.xlu2 %2609, %v3158_v11   ;;  %v3341_v5 = vpop.permute.xlu2 %952 }
 0x22d   : > { %2612 = vset.pattern.permute.xlu1 %v4579_v51 }
 0x22e   : > { %1519 = vperm.xlu1 %2612, %v3145_v4  }
 0x234   : > { %2611 = vset.pattern.permute.xlu2 %v2798_v62  ;;  %v3346_v58 = vpop.permute.xlu1 %908  ;;  %v3361_v62 = vpop.permute.xlu0 %875 }
 0x235   : > { %1499 = vperm.xlu2 %2611, %v3158_v11   ;;  %v3349_v53 = vpop.permute.xlu2 %996 }
 0x236   : > { %4580 = vst [vmem:[#allocation29_spill] sm:$0xff] %v3349_v53  ;;  %2616 = vset.pattern.permute.xlu1 %v4581_v21 }
 0x237   : > { %1579 = vperm.xlu1 %2616, %v3133_v2  }
 0x23d   : > { %2615 = vset.pattern.permute.xlu2 %v4581_v21  ;;  %v3354_v16 = vpop.permute.xlu1 %974  ;;  %v3371_v21 = vpop.permute.xlu0 %985 }
 0x23e   : > { %1559 = vperm.xlu2 %2615, %v3145_v4   ;;  %v3357_v51 = vpop.permute.xlu2 %1059  ;;  %4586 = vst [vmem:[#allocation32_spill] sm:$0xff] %v3371_v21 }
 0x23f   : > { %2618 = vset.pattern.permute.xlu1 %v4582_v59 }
 0x240   : > { %1629 = vperm.xlu1 %2618, %v3086_v47  }
 0x245   : > { %v3381_v8 = vpop.permute.xlu0 %1089 }
 0x246   : > { %2617 = vset.pattern.permute.xlu2 %v4583_v37  ;;  %v3364_v25 = vpop.permute.xlu1 %1018  ;;  %4590 = vst [vmem:[#allocation35_spill] sm:$0xff] %v3381_v8 }
 0x247   : > { %4584 = vst [vmem:[#allocation30_spill] sm:$0xff] %v3364_v25  ;;  %1599 = vperm.xlu2 %2617, %v3193_v28   ;;  %v3367_v49 = vpop.permute.xlu2 %1099 }
 0x248   : > { %4585 = vst [vmem:[#allocation31_spill] sm:$0xff] %v3367_v49  ;;  %2619 = vset.pattern.permute.xlu1 %v4583_v37 }
 0x249   : > { %1619 = vperm.xlu1 %2619, %v3158_v11  }
 0x24d   : > { %v3390_v46 = vpop.permute.xlu0 %1189 }
 0x24e   : > { %4593 = vst [vmem:[#allocation38_spill] sm:$0xff] %v3390_v46 }
 0x24f   : > { %1609 = vperm.xlu2 %2617, %v3089_v48   ;;  %v3374_v30 = vpop.permute.xlu1 %1079 }
 0x250   : > { %4587 = vst [vmem:[#allocation33_spill] sm:$0xff] %v3374_v30  ;;  %v3376_v34 = vpop.permute.xlu2 %1159 }
 0x251   : > { %4588 = vst [vmem:[#allocation34_spill] sm:$0xff] %v3376_v34  ;;  %2622 = vset.pattern.permute.xlu1 %v4589_v38 }
 0x252   : > { %1669 = vperm.xlu1 %2622, %v3077_v40  }
 0x257   : > { %2621 = vset.pattern.permute.xlu2 %v4582_v59 }
 0x258   : > { %1649 = vperm.xlu2 %2621, %v3089_v48   ;;  %v3384_v37 = vpop.permute.xlu1 %1119 }
 0x259   : > { %4591 = vst [vmem:[#allocation36_spill] sm:$0xff] %v3384_v37  ;;  %v3386_v7 = vpop.permute.xlu2 %1199  ;;  %v3404_v37 = vpop.permute.xlu0 %1289 }
 0x25a   : > { %4592 = vst [vmem:[#allocation37_spill] sm:$0xff] %v3386_v7  ;;  %1679 = vperm.xlu1 %2622, %v3145_v4  }
 0x25b   : > { %4599 = vst [vmem:[#allocation43_spill] sm:$0xff] %v3404_v37 }
 0x260   : > { %1659 = vperm.xlu2 %2621, %v3158_v11  }
 0x261   : > { %v3392_v34 = vpop.permute.xlu1 %1179 }
 0x262   : > { %4594 = vst [vmem:[#allocation39_spill] sm:$0xff] %v3392_v34  ;;  %2626 = vset.pattern.permute.xlu1 %v4595_v12  ;;  %v3395_v14 = vpop.permute.xlu2 %1259  ;;  %v2813_v34 = vmov 61  }
 0x263   : > { %4596 = vst [vmem:[#allocation40_spill] sm:$0xff] %v3395_v14  ;;  %1719 = vperm.xlu1 %2626, %v3145_v4  }
 0x268   : > { %2624 = vset.pattern.permute.xlu2 %v4589_v38  ;;  %v3414_v38 = vpop.permute.xlu0 %1389 }
 0x269   : > { %1699 = vperm.xlu2 %2624, %v3133_v2   ;;  %4602 = vst [vmem:[#allocation46_spill] sm:$0xff] %v3414_v38 }
 0x26a   : > { %v3400_v59 = vpop.permute.xlu1 %1219 }
 0x26b   : > { %4597 = vst [vmem:[#allocation41_spill] sm:$0xff] %v3400_v59  ;;  %v3402_v7 = vpop.permute.xlu2 %1299  ;;  %1729 = vperm.xlu1 %2626, %v3060_v27  }
 0x26c   : > { %4598 = vst [vmem:[#allocation42_spill] sm:$0xff] %v3402_v7 }
 0x270   : > { %v3422_v37 = vpop.permute.xlu0 %1489 }
 0x271   : > { %2625 = vset.pattern.permute.xlu2 %v4595_v12  ;;  %4605 = vst [vmem:[#allocation49_spill] sm:$0xff] %v3422_v37 }
 0x272   : > { %1709 = vperm.xlu2 %2625, %v3077_v40  }
 0x273   : > { %2629 = vset.pattern.permute.xlu1 %v2813_v34  ;;  %v3409_v14 = vpop.permute.xlu1 %1279 }
 0x274   : > { %4600 = vst [vmem:[#allocation44_spill] sm:$0xff] %v3409_v14  ;;  %v3411_v46 = vpop.permute.xlu2 %1359  ;;  %1769 = vperm.xlu1 %2629, %v3089_v48   ;;  %v4606_v14 = vmov 85  }
 0x275   : > { %4601 = vst [vmem:[#allocation45_spill] sm:$0xff] %v3411_v46 }
 0x27a   : > { %2628 = vset.pattern.permute.xlu2 %v2813_v34  ;;  %v3431_v34 = vpop.permute.xlu0 %930 }
 0x27b   : > { %1749 = vperm.xlu2 %2628, %v3086_v47  }
 0x27c   : > { %1779 = vperm.xlu1 %2629, %v3158_v11   ;;  %v3418_v7 = vpop.permute.xlu1 %1319 }
 0x27d   : > { %4603 = vst [vmem:[#allocation47_spill] sm:$0xff] %v3418_v7  ;;  %v3420_v12 = vpop.permute.xlu2 %1399  ;;  %v4609_v7 = vmov 14  }
 0x27e   : > { %4604 = vst [vmem:[#allocation48_spill] sm:$0xff] %v3420_v12 }
 0x282   : > { %v3441_v59 = vpop.permute.xlu0 %1039 }
 0x283   : > { %1759 = vperm.xlu2 %2628, %v3193_v28  }
 0x284   : > { %2632 = vset.pattern.permute.xlu1 %v4606_v14 }
 0x285   : > { %1819 = vperm.xlu1 %2632, %v3158_v11   ;;  %v3427_v46 = vpop.permute.xlu1 %1379  ;;  %v4612_v11 = vmov 38  }
 0x286   : > { %4607 = vst [vmem:[#allocation50_spill] sm:$0xff] %v3427_v46  ;;  %v3429_v38 = vpop.permute.xlu2 %1459  ;;  %v564_v46 = vsub.f32 %v2970_v29, %v3162_v17  ;;  %v570_v17 = vsub.f32 %v2970_v29, %v3170_v20 }
 0x287   : > { %4608 = vst [vmem:[#allocation51_spill] sm:$0xff] %v3429_v38 }
 0x28b   : > { %2631 = vset.pattern.permute.xlu2 %v4606_v14 }
 0x28c   : > { %1799 = vperm.xlu2 %2631, %v3193_v28  }
 0x28d   : > { %2633 = vset.pattern.permute.xlu1 %v4609_v7 }
 0x28e   : > { %1829 = vperm.xlu1 %2633, %v3077_v40   ;;  %v3437_v37 = vpop.permute.xlu1 %1419 }
 0x28f   : > { %4610 = vst [vmem:[#allocation52_spill] sm:$0xff] %v3437_v37  ;;  %v3439_v12 = vpop.permute.xlu2 %1499  ;;  %v565_v37 = vmul.f32 1.442695, %v564_v46 }
 0x290   : > { %4611 = vst [vmem:[#allocation53_spill] sm:$0xff] %v3439_v12  ;;  %v3454_v12 = vpop.permute.xlu0 %1139 }
 0x291   : > { %4615 = vst [vmem:[#allocation56_spill] sm:$0xff] %v3454_v12  ;;  %2760 = vpow2.f32 %v565_v37 }
 0x294   : > { %1809 = vperm.xlu2 %2631, %v3089_v48  }
 0x296   : > { %2636 = vset.pattern.permute.xlu1 %v4612_v11 }
 0x297   : > { %1869 = vperm.xlu1 %2636, %v3077_v40   ;;  %v3446_v38 = vpop.permute.xlu1 %1479 }
 0x298   : > { %4613 = vst [vmem:[#allocation54_spill] sm:$0xff] %v3446_v38  ;;  %v3448_v14 = vpop.permute.xlu2 %1559  ;;  %v4619_v38 = vmov 15  }
 0x299   : > { %4614 = vst [vmem:[#allocation55_spill] sm:$0xff] %v3448_v14  ;;  %v3462_v14 = vpop.eup %2760 }
 0x29c   : > { %2635 = vset.pattern.permute.xlu2 %v4609_v7  ;;  %v3466_v7 = vpop.permute.xlu0 %1239 }
 0x29d   : > { %1849 = vperm.xlu2 %2635, %v3060_v27   ;;  %4617 = vst [vmem:[#allocation58_spill] sm:$0xff] %v3466_v7 }
 0x29f   : > { %1879 = vperm.xlu1 %2636, %v3145_v4   ;;  %v571_v4 = vmul.f32 1.442695, %v570_v17  ;;  %v4624_v17 = vmov 0  }
 0x2a0   : > { %v3457_v48 = vpop.permute.xlu1 %1519 }
 0x2a1   : > { %v3459_v0 = vpop.permute.xlu2 %1599  ;;  %2762 = vpow2.f32 %v571_v4 }
 0x2a2   : > { %4616 = vst [vmem:[#allocation57_spill] sm:$0xff] %v3459_v0 }
 0x2a4   : > { %v3478_v20 = vpop.permute.xlu0 %1339 }
 0x2a5   : > { %1859 = vperm.xlu2 %2635, %v3133_v2   ;;  %4621 = vst [vmem:[#allocation61_spill] sm:$0xff] %v3478_v20 }
 0x2a7   : > { %579 = vrot.lane.b32.xlu1 %v3462_v14, %s2781_s11  ;;  %v3484_v12 = vpop.eup %2762 }
 0x2a8   : > { %2641 = vset.pattern.permute.xlu1 %v4619_v38 }
 0x2a9   : > { %v3470_v46 = vpop.permute.xlu2 %1609  ;;  %v3473_v37 = vpop.permute.xlu1 %1579 }
 0x2aa   : > { %4618 = vst [vmem:[#allocation59_spill] sm:$0xff] %v3470_v46 }
 0x2ab   : > { %4620 = vst [vmem:[#allocation60_spill] sm:$0xff] %v3473_v37 }
 0x2ac   : > { %v3492_v4 = vpop.permute.xlu0 %1439 }
 0x2ad   : > { %2637 = vset.pattern.permute.xlu2 %v4619_v38  ;;  %4626 = vst [vmem:[#allocation65_spill] sm:$0xff] %v3492_v4 }
 0x2ae   : > { %1989 = vperm.xlu2 %2637, %v3077_v40  }
 0x2af   : > { %2019 = vperm.xlu1 %2641, %v3133_v2   ;;  %v4522_v2 = vmov 62  }
 0x2b2   : > { %v3480_v0 = vpop.permute.xlu2 %1649  ;;  %v3482_v7 = vpop.permute.xlu1 %1629 }
 0x2b3   : > { %4622 = vst [vmem:[#allocation62_spill] sm:$0xff] %v3480_v0 }
 0x2b4   : > { %4623 = vst [vmem:[#allocation63_spill] sm:$0xff] %v3482_v7  ;;  %v3501_v37 = vpop.permute.xlu0 %1539 }
 0x2b6   : > { %584 = vrot.lane.b32.xlu2 %v3484_v12, %s2779_s28 }
 0x2b7   : > { %2639 = vset.pattern.permute.xlu2 %v4612_v11  ;;  %2645 = vset.pattern.permute.xlu1 %v4624_v17 }
 0x2ba   : > { %v3490_v38 = vpop.permute.xlu2 %1659 }
 0x2bb   : > { %4625 = vst [vmem:[#allocation64_spill] sm:$0xff] %v3490_v38  ;;  %v3494_v46 = vpop.permute.xlu1 %1619 }
 0x2bc   : > { %4627 = vst [vmem:[#allocation66_spill] sm:$0xff] %v3494_v46  ;;  %v3510_v46 = vpop.permute.xlu0 %1589 }
 0x2bd   : > { %4632 = vst [vmem:[#allocation71_spill] sm:$0xff] %v3510_v46 }
 0x2be   : > { %1889 = vperm.xlu2 %2639, %v3060_v27  }
 0x2c3   : > { %v3497_v0 = vpop.permute.xlu2 %1699 }
 0x2c4   : > { %4628 = vst [vmem:[#allocation67_spill] sm:$0xff] %v3497_v0  ;;  %v3499_v7 = vpop.permute.xlu1 %1669 }
 0x2c5   : > { %4629 = vst [vmem:[#allocation68_spill] sm:$0xff] %v3499_v7  ;;  %v3516_v7 = vpop.permute.xlu0 %1639 }
 0x2c6   : > { %2642 = vset.pattern.permute.xlu2 %v4522_v2  ;;  %4635 = vst [vmem:[#allocation74_spill] sm:$0xff] %v3516_v7 }
 0x2c7   : > { %1909 = vperm.xlu2 %2642, %v3086_v47  }
 0x2cc   : > { %v3505_v11 = vpop.permute.xlu2 %1709  ;;  %v3507_v38 = vpop.permute.xlu1 %1679 }
 0x2cd   : > { %4630 = vst [vmem:[#allocation69_spill] sm:$0xff] %v3505_v11  ;;  %v3522_v2 = vpop.permute.xlu0 %1689 }
 0x2ce   : > { %4631 = vst [vmem:[#allocation70_spill] sm:$0xff] %v3507_v38 }
 0x2cf   : > { %2644 = vset.pattern.permute.xlu2 %v4624_v17  ;;  %4638 = vst [vmem:[#allocation77_spill] sm:$0xff] %v3522_v2 }
 0x2d5   : > { %v3512_v27 = vpop.permute.xlu1 %1719  ;;  %v3514_v0 = vpop.permute.xlu2 %1749 }
 0x2d6   : > { %4633 = vst [vmem:[#allocation72_spill] sm:$0xff] %v3512_v27  ;;  %v3528_v38 = vpop.permute.xlu0 %1739 }
 0x2d7   : > { %4634 = vst [vmem:[#allocation73_spill] sm:$0xff] %v3514_v0 }
 0x2d8   : > { %4641 = vst [vmem:[#allocation80_spill] sm:$0xff] %v3528_v38 }
 0x2dd   : > { %v3518_v4 = vpop.permute.xlu1 %1729  ;;  %v3520_v20 = vpop.permute.xlu2 %1759 }
 0x2de   : > { %4636 = vst [vmem:[#allocation75_spill] sm:$0xff] %v3518_v4  ;;  %v3534_v27 = vpop.permute.xlu0 %1789 }
 0x2df   : > { %4637 = vst [vmem:[#allocation76_spill] sm:$0xff] %v3520_v20 }
 0x2e0   : > { %4644 = vst [vmem:[#allocation83_spill] sm:$0xff] %v3534_v27 }
 0x2e6   : > { %v3524_v49 = vpop.permute.xlu1 %1769  ;;  %v3526_v11 = vpop.permute.xlu2 %1799 }
 0x2e7   : > { %4639 = vst [vmem:[#allocation78_spill] sm:$0xff] %v3524_v49  ;;  %v3542_v20 = vpop.permute.xlu0 %1839 }
 0x2e8   : > { %4640 = vst [vmem:[#allocation79_spill] sm:$0xff] %v3526_v11  ;;  %v551_v11 = vsub.f32 %v2970_v29, %v3048_v24 }
 0x2ee   : > { %v3530_v17 = vpop.permute.xlu1 %1779  ;;  %v3532_v46 = vpop.permute.xlu2 %1809 }
 0x2ef   : > { %4642 = vst [vmem:[#allocation81_spill] sm:$0xff] %v3530_v17  ;;  %v3550_v17 = vpop.permute.xlu0 %1999 }
 0x2f0   : > { %4643 = vst [vmem:[#allocation82_spill] sm:$0xff] %v3532_v46  ;;  %v552_v46 = vmul.f32 1.442695, %v551_v11 }
 0x2f2   : > { %2764 = vpow2.f32 %v552_v46 }
 0x2f7   : > { %v3536_v0 = vpop.permute.xlu1 %1819  ;;  %v3538_v7 = vpop.permute.xlu2 %1849 }
 0x2f8   : > { %4645 = vst [vmem:[#allocation84_spill] sm:$0xff] %v3536_v0  ;;  %v575_v38 = vpop.permute.xlu0 %574  ;;  %v2765_v8 = vpop.eup %2764 }
 0x2f9   : > { %v577_v30 = vadd.f32 %v2765_v8, %v575_v38 }
 0x2ff   : > { %v3544_v2 = vpop.permute.xlu2 %1859 }
 0x300   : > { %v3540_v4 = vpop.permute.xlu1 %1829  ;;  %4646 = vst [vmem:[#allocation85_spill] sm:$0xff] %v3544_v2 }
 0x308   : > { %v3552_v27 = vpop.permute.xlu2 %1989 }
 0x309   : > { %v3548_v49 = vpop.permute.xlu1 %1869 }
 0x30a   : > { %4647 = vst [vmem:[#allocation86_spill] sm:$0xff] %v3548_v49 }
 0x310   : > { %v585_v25 = vpop.permute.xlu2 %584 }
 0x311   : > { %v3554_v0 = vpop.permute.xlu1 %1879 }
 0x312   : > { %4648 = vst [vmem:[#allocation87_spill] sm:$0xff] %v3554_v0 }
 0x319   : > { %v580_v45 = vpop.permute.xlu1 %579 }
 0x31a   : > { %v582_v28 = vadd.f32 %v580_v45, %v577_v30  ;;  %v3560_v30 = vpop.permute.xlu0 %2009  ;;  %v3562_v45 = vpop.permute.xlu2 %1889 }
 0x31b   : > { %4649 = vst [vmem:[#allocation88_spill] sm:$0xff] %v3562_v45  ;;  %v4682_v45 = vmov 73  }
 0x31c   : > { %v587_v2 = vadd.f32 %v585_v25, %v582_v28 }
 0x31e   : > { %2766 = vrcp.f32 %v587_v2  ;;  %v599_v49 = vand.u32 2147483648, %v587_v2  ;;  %v597_v11 = vand.u32 2147483647, %v587_v2  ;;  %vm593_vm11 = vweird.f32 %v587_v2 }
 0x320   : > { %v600_v47 = vor.u32 1.1754944e-38, %v599_v49  ;;  %vm598_vm13 = vcmp.eq.f32.partialorder %v597_v11, 8.507059e+37  ;;  %v3621_v11 = vmul.f32 %v3139_v3, %v2978_v42 }
 0x321   : > { %v3566_v49 = vpop.permute.xlu1 %2019 }
 0x324   : > { %v2767_v36 = vpop.eup %2766 }
 0x325   : > { %v589_v29 = vmul.f32 %v2767_v36, %v587_v2  ;;  %vm594_vm10 = vweird.f32 %v2767_v36  ;;  %v3564_v2 = vpop.permute.xlu0 %1899 }
 0x326   : > { %vm595_vm12 = vmor %vm593_vm11, %vm594_vm10  ;;  %4650 = vst [vmem:[#allocation89_spill] sm:$0xff] %v3564_v2  ;;  %vm692_vm11 = vcmp.ne.s32.totalorder %v3167_v19, 0  ;;  %v2817_v19 = vmov 3  }
 0x327   : > { %v590_v24 = vsub.f32 1.0, %v589_v29  ;;  %vm3604_vm10 = vmand %vm676_vm8, %vm652_vm6  ;;  %vm765_vm6 = vcmp.ne.s32.totalorder %v3043_v18, 0 }
 0x328   : > { %vm693_vm15 = vmand %vm3576_vm4, %vm692_vm11  ;;  %vm793_vm4 = vcmp.ge.s32.totalorder %v3024_v1, 0 }
 0x329   : > { %v591_v53 = vmul.f32 %v2767_v36, %v590_v24 }
 0x32b   : > { %v592_v46 = vadd.f32 %v2767_v36, %v591_v53 }
 0x32d   : > { %v596_v0 = vsel %vm595_vm12, %v2767_v36, %v592_v46  ;;  %vm708_vm12 = vmand %vm3580_vm5, %vm692_vm11  ;;  %v2820_v36 = vmov 5   ;;  %vm794_vm5 = vcmp.lt.s32.totalorder %v3024_v1, 4  ;;  %vm771_vm11 = vcmp.ne.s32.totalorder %v3121_v61, 0 }
 0x32e   : > { %v601_v21 = vsel %vm598_vm13, %v600_v47, %v596_v0  ;;  %v625_v47 = vsub.f32 1.0, %v2978_v42  ;;  %vm698_vm13 = vcmp.ne.s32.totalorder %v3066_v32, 0  ;;  %vm3721_vm8 = vmand %vm793_vm4, %vm794_vm5 }
 0x32f   : > { %730 = vrot.lane.b32.xlu2 %v601_v21, %s2787_s16  ;;  %714 = vrot.lane.b32.xlu0 %v601_v21, %s2786_s15  ;;  %v603_v28 = vmul.f32 %v2765_v8, %v601_v21  ;;  %v3573_v8 = vpop.permute.xlu2 %1909  ;;  %vm3631_vm14 = vmand %vm708_vm12, %vm698_vm13 }
 0x330   : > { %4651 = vst [vmem:[#allocation90_spill] sm:$0xff] %v3573_v8  ;;  %v3586_v25 = vmul.f32 %v3038_v13, %v625_v47  ;;  %v3644_v0 = vmul.f32 %v3139_v3, %v625_v47  ;;  %vm3653_vm1 = vmand %vm693_vm15, %vm698_vm13  ;;  %v2816_v3 = vmov 2   ;;  %v2819_v47 = vmov 6  }
 0x331   : > { %655 = vrot.lane.b32.xlu1 %v603_v28, %s2815_s18  ;;  %vm766_vm12 = vmand %vm3713_vm7, %vm765_vm6  ;;  %vm812_vm13 = vcmp.ne.s32.totalorder %v3180_v23, 0 }
 0x332   : > { %vm3739_vm15 = vmand %vm3721_vm8, %vm765_vm6 }
 0x333   : > { %vm829_vm3 = vmand %vm3721_vm8, %vm812_vm13 }
 0x334   : > { %vm3777_vm4 = vmand %vm3739_vm15, %vm771_vm11 }
 0x335   : > { %vm3790_vm6 = vmand %vm829_vm3, %vm818_vm2 }
 0x337   : > { %834 = vrot.lane.b32.xlu0 %v601_v21, %s2788_s17  ;;  %v2824_v21 = vmov 72  }
 0x389   : > { %v731_v24 = vpop.permute.xlu2 %730 }
 0x38a   : > { %v733_v46 = vmul.f32 %v3462_v14, %v731_v24 }
 0x3a1   : > { %v715_v54 = vpop.permute.xlu0 %714 }
 0x3a2   : > { %v717_v15 = vmul.f32 %v3285_v55, %v715_v54  ;;  %v850_v54 = vlaneseq }
 0x3a3   : > { %v656_v53 = vpop.permute.xlu1 %655 }
 0x3a4   : > { %v658_v52 = vmul.f32 %v656_v53, %v3586_v25  ;;  %v678_v38 = vmul.f32 %v656_v53, %v3590_v57  ;;  %719 = vrot.lane.b32.xlu1 %v717_v15, %s2815_s18  ;;  %v710_v28 = vmul.f32 %v656_v53, %v3621_v11  ;;  %v4662_v15 = vmov 1  }
 0x3a6   : > { %v3610_v55 = vsel %vm3597_vm9, %v658_v52, 0.0  ;;  %v3614_v29 = vsel %vm3604_vm10, %v678_v38, 0.0  ;;  %v3637_v42 = vsel %vm3631_vm14, %v710_v28, 0.0  ;;  %v700_v52 = vmul.f32 %v656_v53, %v3644_v0  ;;  %v410_v53 = vld [vmem:[%s2935_s30] sm:$0xff] }
 0x3a7   : > { %869 = vperm.xlu2 %2644, %v3614_v29   ;;  %858 = vperm.xlu0 %2643, %v3610_v55   ;;  %v2822_v28 = vmov 7   ;;  %v2823_v38 = vmov 48  }
 0x3a8   : > { %v3659_v24 = vsel %vm3653_vm1, %v700_v52, 0.0  ;;  %2403 = vmatmul.msk.f32.vlgmr.msra.gmra.mxu0 %vm429_vm0, %v410_v53 }
 0x3a9   : > { %v835_v14 = vpop.permute.xlu0 %834 }
 0x3aa   : > { %v837_v32 = vmul.f32 %v3484_v12, %v835_v14  ;;  %v2818_v12 = vmov 4   ;;  %v411_v14 = vld [vmem:[%s2935_s30 + $0x8] sm:$0xff] }
 0x3ac   : > { %774 = vrot.lane.b32.xlu1 %v733_v46, %s2815_s18  ;;  %v4528_v46 = vmov 24  }
 0x3af   : > { %2646 = vset.pattern.permute.xlu2 %v4662_v15  ;;  %2648 = vset.pattern.permute.xlu0 %v4662_v15 }
 0x3b0   : > { %1033 = vperm.xlu2 %2646, %v3610_v55   ;;  %1063 = vperm.xlu0 %2648, %v3637_v42  }
 0x3b1   : > { %2404 = vmatmul.msk.f32.gmra.mxu0 %vm429_vm0, %v411_v14  ;;  %v415_v14 = vld [vmem:[%s2935_s30 + $0x28] sm:$0xff] }
 0x3b4   : > { %839 = vrot.lane.b32.xlu1 %v837_v32, %s2815_s18  ;;  %v412_v32 = vld [vmem:[%s2935_s30 + $0x10] sm:$0xff]  ;;  %s408_s18 = scalar_lea.vmem %s4489_s10, %s2926_s24 }
 0x3b8   : > { %2651 = vset.pattern.permute.xlu2 %v2816_v3  ;;  %2650 = vset.pattern.permute.xlu0 %v2816_v3 }
 0x3b9   : > { %1223 = vperm.xlu2 %2651, %v3637_v42   ;;  %1213 = vperm.xlu0 %2650, %v3659_v24  }
 0x3ba   : > { %2405 = vmatmul.msk.f32.gmra.mxu0 %vm429_vm0, %v412_v32 }
 0x3bc   : > { %880 = vperm.xlu1 %2645, %v3659_v24  }
 0x3c1   : > { %2654 = vset.pattern.permute.xlu2 %v2817_v19  ;;  %2653 = vset.pattern.permute.xlu0 %v2817_v19 }
 0x3c2   : > { %1373 = vperm.xlu2 %2654, %v3659_v24   ;;  %1363 = vperm.xlu0 %2653, %v3614_v29  }
 0x3c4   : > { %891 = vperm.xlu1 %2645, %v3637_v42  }
 0x3ca   : > { %1383 = vperm.xlu2 %2654, %v3637_v42   ;;  %2655 = vset.pattern.permute.xlu0 %v2818_v12 }
 0x3cb   : > { %1513 = vperm.xlu0 %2655, %v3610_v55  }
 0x3cc   : > { %2647 = vset.pattern.permute.xlu1 %v4662_v15 }
 0x3cd   : > { %1043 = vperm.xlu1 %2647, %v3614_v29  }
 0x3d2   : > { %2656 = vset.pattern.permute.xlu2 %v2818_v12 }
 0x3d3   : > { %1523 = vperm.xlu2 %2656, %v3614_v29   ;;  %2662 = vset.pattern.permute.xlu0 %v2819_v47 }
 0x3d4   : > { %1863 = vperm.xlu0 %2662, %v3637_v42  }
 0x3d5   : > { %1053 = vperm.xlu1 %2647, %v3659_v24  }
 0x3db   : > { %1533 = vperm.xlu2 %2656, %v3659_v24  }
 0x3dc   : > { %2665 = vset.pattern.permute.xlu0 %v4528_v46 }
 0x3dd   : > { %2649 = vset.pattern.permute.xlu1 %v2816_v3  ;;  %v413_v3 = vld [vmem:[%s2935_s30 + $0x18] sm:$0xff] }
 0x3de   : > { %1193 = vperm.xlu1 %2649, %v3610_v55   ;;  %2406 = vmatmul.msk.f32.gmra.mxu0 %vm429_vm0, %v413_v3  ;;  %v757_v3 = vmul.f32 %v3153_v9, %v2980_v43 }
 0x3e3   : > { %2658 = vset.pattern.permute.xlu2 %v2820_v36 }
 0x3e4   : > { %1673 = vperm.xlu2 %2658, %v3610_v55  }
 0x3e6   : > { %1203 = vperm.xlu1 %2649, %v3614_v29  }
 0x3ec   : > { %1683 = vperm.xlu2 %2658, %v3614_v29  }
 0x3ee   : > { %2652 = vset.pattern.permute.xlu1 %v2817_v19  ;;  %v414_v19 = vld [vmem:[%s2935_s30 + $0x20] sm:$0xff] }
 0x3ef   : > { %1353 = vperm.xlu1 %2652, %v3610_v55   ;;  %2407 = vmatmul.msk.f32.gmra.mxu0 %vm429_vm0, %v414_v19 }
 0x3f4   : > { %2660 = vset.pattern.permute.xlu2 %v2819_v47 }
 0x3f5   : > { %1833 = vperm.xlu2 %2660, %v3610_v55  }
 0x3f7   : > { %2657 = vset.pattern.permute.xlu1 %v2818_v12  ;;  %2408 = vmatmul.msk.f32.gmra.mxu0 %vm429_vm0, %v415_v14 }
 0x3f8   : > { %1543 = vperm.xlu1 %2657, %v3637_v42  }
 0x3fd   : > { %2663 = vset.pattern.permute.xlu2 %v2822_v28 }
 0x3fe   : > { %1993 = vperm.xlu2 %2663, %v3610_v55  }
 0x400   : > { %2659 = vset.pattern.permute.xlu1 %v2820_v36 }
 0x401   : > { %v3689_v15 = vpop.permute.xlu2 %869  ;;  %1693 = vperm.xlu1 %2659, %v3659_v24  }
 0x406   : > { %2013 = vperm.xlu2 %2663, %v3659_v24  }
 0x409   : > { %1703 = vperm.xlu1 %2659, %v3637_v42  }
 0x40a   : > { %v3696_v52 = vpop.permute.xlu2 %1033 }
 0x40e   : > { %2666 = vset.pattern.permute.xlu2 %v4528_v46 }
 0x411   : > { %2661 = vset.pattern.permute.xlu1 %v2819_v47 }
 0x412   : > { %1843 = vperm.xlu1 %2661, %v3614_v29  }
 0x413   : > { %v3702_v55 = vpop.permute.xlu2 %1223 }
 0x416   : > { %v3710_v12 = vpop.permute.xlu1 %719 }
 0x417   : > { %v722_v36 = vmul.f32 %v3710_v12, %v3586_v25  ;;  %v724_v60 = vmul.f32 %v3710_v12, %v3590_v57  ;;  %v744_v57 = vsub.f32 1.0, %v2980_v43  ;;  %v726_v13 = vmul.f32 %v3710_v12, %v3644_v0 }
 0x419   : > { %v3731_v1 = vsel %vm3597_vm9, %v722_v36, 0.0  ;;  %v3735_v18 = vsel %vm3604_vm10, %v724_v60, 0.0  ;;  %vm3748_vm9 = vmand %vm766_vm12, %vm771_vm11  ;;  %v756_v32 = vmul.f32 %v3153_v9, %v744_v57  ;;  %v750_v19 = vmul.f32 %v3113_v56, %v744_v57 }
 0x41a   : > { %1853 = vperm.xlu1 %2661, %v3659_v24   ;;  %913 = vperm.xlu2 %2666, %v3735_v18   ;;  %vm813_vm10 = vmand %vm3713_vm7, %vm812_vm13  ;;  %v751_v36 = vmul.f32 %v3113_v56, %v2980_v43  ;;  %v3796_v53 = vsel %vm3653_vm1, %v726_v13, 0.0 }
 0x41b   : > { %902 = vperm.xlu0 %2665, %v3731_v1   ;;  %vm3784_vm5 = vmand %vm813_vm10, %vm818_vm2 }
 0x41c   : > { %v3760_v24 = vpop.permute.xlu2 %1373 }
 0x41e   : > { %v775_v47 = vpop.permute.xlu1 %774 }
 0x41f   : > { %v777_v56 = vmul.f32 %v775_v47, %v750_v19  ;;  %v798_v9 = vmul.f32 %v775_v47, %v751_v36  ;;  %v820_v23 = vmul.f32 %v775_v47, %v756_v32  ;;  %v831_v60 = vmul.f32 %v775_v47, %v757_v3 }
 0x421   : > { %v3800_v25 = vsel %vm3748_vm9, %v777_v56, 0.0  ;;  %v3804_v57 = vsel %vm3777_vm4, %v798_v9, 0.0  ;;  %v3808_v14 = vsel %vm3784_vm5, %v820_v23, 0.0  ;;  %v3812_v6 = vsel %vm3790_vm6, %v831_v60, 0.0 }
 0x422   : > { %2664 = vset.pattern.permute.xlu1 %v2822_v28  ;;  %924 = vperm.xlu2 %2666, %v3796_v53  }
 0x423   : > { %2669 = vset.pattern.permute.xlu0 %v2823_v38  ;;  %2003 = vperm.xlu1 %2664, %v3614_v29  }
 0x424   : > { %957 = vperm.xlu0 %2669, %v3804_v57   ;;  %v3818_v13 = vpop.permute.xlu2 %1383 }
 0x426   : > { %v840_v47 = vpop.permute.xlu1 %839 }
 0x427   : > { %v842_v56 = vmul.f32 %v840_v47, %v750_v19  ;;  %v844_v9 = vmul.f32 %v840_v47, %v751_v36  ;;  %v846_v23 = vmul.f32 %v840_v47, %v756_v32  ;;  %v848_v46 = vmul.f32 %v840_v47, %v757_v3 }
 0x428   : > { %v728_v19 = vmul.f32 %v3710_v12, %v3621_v11  ;;  %v4679_v36 = vmov 24   ;;  %v3858_v11 = vpop.permute.xlu0 %858  ;;  %v4529_v12 = vmov 73  }
 0x429   : > { %v3822_v60 = vsel %vm3748_vm9, %v842_v56, 0.0  ;;  %v3826_v28 = vsel %vm3777_vm4, %v844_v9, 0.0  ;;  %v3830_v29 = vsel %vm3784_vm5, %v846_v23, 0.0  ;;  %v3834_v8 = vsel %vm3790_vm6, %v848_v46, 0.0 }
 0x42a   : > { %2670 = vset.pattern.permute.xlu2 %v2823_v38  ;;  %v3847_v46 = vsel %vm3631_vm14, %v728_v19, 0.0  ;;  %v3866_v56 = vand.u32 127, %v850_v54  ;;  %v2827_v23 = vmov 25  }
 0x42b   : > { %2023 = vperm.xlu1 %2664, %v3637_v42   ;;  %968 = vperm.xlu2 %2670, %v3808_v14   ;;  %v4531_v42 = vmov 49  }
 0x42c   : > { %2672 = vset.pattern.permute.xlu0 %v2824_v21  ;;  %vm1041_vm14 = vcmp.eq.s32.totalorder %v3441_v59, %v3866_v56  ;;  %vm1031_vm1 = vcmp.eq.s32.totalorder %v3220_v39, %v3866_v56  ;;  %vm1051_vm7 = vcmp.eq.s32.totalorder %v3223_v41, %v3866_v56  ;;  %v4535_v59 = vmov 26  }
 0x42d   : > { %1012 = vperm.xlu0 %2672, %v3830_v29   ;;  %v3839_v32 = vpop.permute.xlu2 %1523  ;;  %v1036_v19 = vsel %vm1031_vm1, %v3696_v52, 0.0  ;;  %vm1061_vm8 = vcmp.eq.s32.totalorder %v3357_v51, %v3866_v56  ;;  %v4681_v51 = vmov 49   ;;  %vm2011_vm11 = vcmp.eq.s32.totalorder %v3560_v30, %v3866_v56 }
 0x42e   : > { %v3841_v3 = vpop.permute.xlu1 %880  ;;  %vm1511_vm12 = vcmp.eq.s32.totalorder %v3317_v63, %v3866_v56  ;;  %vm1521_vm13 = vcmp.eq.s32.totalorder %v3457_v48, %v3866_v56  ;;  %vm1531_vm15 = vcmp.eq.s32.totalorder %v3322_v50, %v3866_v56  ;;  %vm1541_vm9 = vcmp.eq.s32.totalorder %v3501_v37, %v3866_v56  ;;  %v3937_v50 = vpop.f32.mrf.mxu0 }
 0x42f   : > { %v1526_v30 = vsel %vm1521_vm13, %v3839_v32, 0.0  ;;  %v4539_v37 = vmov 52   ;;  %vm1841_vm10 = vcmp.eq.s32.totalorder %v3542_v20, %v3866_v56  ;;  %vm1831_vm2 = vcmp.eq.s32.totalorder %v3540_v4, %v3866_v56 }
 0x430   : > { %v1064_v9 = vpop.permute.xlu0 %1063  ;;  %vm1851_vm3 = vcmp.eq.s32.totalorder %v3538_v7, %v3866_v56  ;;  %vm2001_vm4 = vcmp.eq.s32.totalorder %v3550_v17, %v3866_v56  ;;  %vm1991_vm5 = vcmp.eq.s32.totalorder %v3552_v27, %v3866_v56  ;;  %vm855_vm6 = vcmp.eq.s32.totalorder %v3178_v22, %v3866_v56 }
 0x431   : > { %v1066_v52 = vsel %vm1061_vm8, %v1064_v9, 0.0  ;;  %v861_v17 = vsel %vm855_vm6, %v3858_v11, 0.0  ;;  %vm866_vm1 = vcmp.eq.s32.totalorder %v3338_v44, %v3866_v56  ;;  %vm888_vm8 = vcmp.eq.s32.totalorder %v3333_v10, %v3866_v56 }
 0x432   : > { %v872_v11 = vsel %vm866_vm1, %v3689_v15, 0.0  ;;  %vm932_vm13 = vcmp.eq.s32.totalorder %v3431_v34, %v3866_v56  ;;  %vm2148_vm1 = vcmask 654336  }
 0x433   : > { %2667 = vset.pattern.permute.xlu1 %v4679_v36  ;;  %979 = vperm.xlu2 %2670, %v3812_v6  }
 0x434   : > { %935 = vperm.xlu1 %2667, %v3847_v46  }
 0x435   : > { %2676 = vset.pattern.permute.xlu0 %v4531_v42  ;;  %v3853_v0 = vpop.permute.xlu2 %1533 }
 0x436   : > { %1113 = vperm.xlu0 %2676, %v3800_v25   ;;  %v3856_v43 = vpop.permute.xlu1 %891  ;;  %v1536_v63 = vsel %vm1531_vm15, %v3853_v0, 0.0  ;;  %vm921_vm15 = vcmp.eq.s32.totalorder %v3203_v33, %v3866_v56 }
 0x438   : > { %v3885_v42 = vpop.permute.xlu0 %1213 }
 0x43b   : > { %2673 = vset.pattern.permute.xlu2 %v2824_v21 }
 0x43c   : > { %2668 = vset.pattern.permute.xlu1 %v2823_v38  ;;  %1023 = vperm.xlu2 %2673, %v3834_v8  }
 0x43d   : > { %946 = vperm.xlu1 %2668, %v3800_v25  }
 0x43e   : > { %2680 = vset.pattern.permute.xlu0 %v4529_v12  ;;  %v3863_v61 = vpop.permute.xlu2 %1673 }
 0x43f   : > { %4680 = vst [vmem:[#allocation91_spill] sm:$0xff] %v3863_v61  ;;  %1163 = vperm.xlu0 %2680, %v3826_v28   ;;  %v1044_v47 = vpop.permute.xlu1 %1043 }
 0x440   : > { %v1046_v38 = vsel %vm1041_vm14, %v1044_v47, 0.0  ;;  %vm877_vm14 = vcmp.eq.s32.totalorder %v3361_v62, %v3866_v56 }
 0x441   : > { %v1047_v54 = vadd.f32 %v1046_v38, %v1036_v19  ;;  %v4533_v38 = vmov 74  }
 0x444   : > { %2674 = vset.pattern.permute.xlu2 %v2827_v23 }
 0x445   : > { %2671 = vset.pattern.permute.xlu1 %v2824_v21  ;;  %1073 = vperm.xlu2 %2674, %v3731_v1  }
 0x446   : > { %990 = vperm.xlu1 %2671, %v3822_v60   ;;  %v3875_v36 = vpop.permute.xlu2 %1683 }
 0x447   : > { %2684 = vset.pattern.permute.xlu0 %v4535_v59  ;;  %v1054_v47 = vpop.permute.xlu1 %1053  ;;  %v4545_v59 = vmov 51  }
 0x448   : > { %v1056_v12 = vsel %vm1051_vm7, %v1054_v47, 0.0  ;;  %1263 = vperm.xlu0 %2684, %v3847_v46   ;;  %v4537_v47 = vmov 27   ;;  %vm2021_vm7 = vcmp.eq.s32.totalorder %v3566_v49, %v3866_v56  ;;  %v894_v49 = vsel %vm888_vm8, %v3856_v43, 0.0 }
 0x449   : > { %v1057_v39 = vadd.f32 %v1056_v12, %v1047_v54  ;;  %v3896_v12 = vpop.permute.xlu0 %1363 }
 0x44b   : > { %v3883_v21 = vadd.f32 %v1066_v52, %v1057_v39 }
 0x44d   : > { %1083 = vperm.xlu2 %2674, %v3735_v18  }
 0x44e   : > { %1001 = vperm.xlu1 %2671, %v3826_v28  }
 0x44f   : > { %v3889_v41 = vpop.permute.xlu2 %1833 }
 0x450   : > { %2687 = vset.pattern.permute.xlu0 %v4533_v38  ;;  %v3892_v19 = vpop.permute.xlu1 %1193 }
 0x451   : > { %1313 = vperm.xlu0 %2687, %v3822_v60  }
 0x455   : > { %2677 = vset.pattern.permute.xlu2 %v4681_v51 }
 0x456   : > { %2675 = vset.pattern.permute.xlu1 %v2827_v23  ;;  %1123 = vperm.xlu2 %2677, %v3804_v57   ;;  %v1514_v23 = vpop.permute.xlu0 %1513 }
 0x457   : > { %1093 = vperm.xlu1 %2675, %v3796_v53  }
 0x458   : > { %v3900_v9 = vpop.permute.xlu1 %1203  ;;  %v3902_v54 = vpop.permute.xlu2 %1993 }
 0x459   : > { %2691 = vset.pattern.permute.xlu0 %v4537_v47  ;;  %v1516_v47 = vsel %vm1511_vm12, %v1514_v23, 0.0  ;;  %vm910_vm12 = vcmp.eq.s32.totalorder %v3346_v58, %v3866_v56  ;;  %v4689_v58 = vmov 51  }
 0x45a   : > { %1413 = vperm.xlu0 %2691, %v3796_v53   ;;  %v1527_v2 = vadd.f32 %v1526_v30, %v1516_v47  ;;  %v4543_v47 = vmov 28   ;;  %v3951_v30 = vpop.f32.mrf.mxu0 }
 0x45c   : > { %v1537_v48 = vadd.f32 %v1536_v63, %v1527_v2 }
 0x45e   : > { %1133 = vperm.xlu2 %2677, %v3808_v14  }
 0x45f   : > { %1103 = vperm.xlu1 %2675, %v3847_v46  }
 0x460   : > { %v2014_v39 = vpop.permute.xlu2 %2013 }
 0x461   : > { %v3910_v52 = vsel %vm2011_vm11, %v2014_v39, 0.0  ;;  %v3912_v38 = vpop.permute.xlu1 %1353  ;;  %vm899_vm11 = vcmp.eq.s32.totalorder %v3190_v26, %v3866_v56 }
 0x462   : > { %2695 = vset.pattern.permute.xlu0 %v4545_v59 }
 0x463   : > { %1463 = vperm.xlu0 %2695, %v3812_v6  }
 0x466   : > { %2681 = vset.pattern.permute.xlu2 %v4682_v45 }
 0x467   : > { %2678 = vset.pattern.permute.xlu1 %v4681_v51  ;;  %1173 = vperm.xlu2 %2681, %v3830_v29   ;;  %v4684_v51 = vmov 26  }
 0x468   : > { %1143 = vperm.xlu1 %2678, %v3812_v6  }
 0x46a   : > { %v1544_v23 = vpop.permute.xlu1 %1543 }
 0x46b   : > { %v1546_v32 = vsel %vm1541_vm9, %v1544_v23, 0.0  ;;  %2699 = vset.pattern.permute.xlu0 %v4543_v47  ;;  %v2835_v23 = vmov 50   ;;  %vm943_vm9 = vcmp.eq.s32.totalorder %v3201_v31, %v3866_v56 }
 0x46c   : > { %v3931_v39 = vadd.f32 %v1546_v32, %v1537_v48  ;;  %1563 = vperm.xlu0 %2699, %v3735_v18   ;;  %v4541_v48 = vmov 76   ;;  %v3959_v32 = vpop.f32.mrf.mxu0 }
 0x46f   : > { %1183 = vperm.xlu2 %2681, %v3834_v8  }
 0x470   : > { %2679 = vset.pattern.permute.xlu1 %v4682_v45 }
 0x471   : > { %1153 = vperm.xlu1 %2679, %v3822_v60  }
 0x473   : > { %v3939_v0 = vpop.permute.xlu1 %1693 }
 0x474   : > { %4683 = vst [vmem:[#allocation92_spill] sm:$0xff] %v3939_v0  ;;  %2702 = vset.pattern.permute.xlu0 %v4539_v37  ;;  %v3942_v2 = vpop.permute.xlu2 %913  ;;  %v1836_v37 = vsel %vm1831_vm2, %v3889_v41, 0.0  ;;  %v486_v20 = vpop.f32.mrf.mxu0  ;;  %vm965_vm2 = vcmp.eq.s32.totalorder %v3210_v35, %v3866_v56 }
 0x475   : > { %1613 = vperm.xlu0 %2702, %v3808_v14  }
 0x477   : > { %2682 = vset.pattern.permute.xlu2 %v4684_v51 }
 0x478   : > { %1233 = vperm.xlu2 %2682, %v3731_v1  }
 0x479   : > { %2683 = vset.pattern.permute.xlu1 %v4684_v51 }
 0x47a   : > { %1243 = vperm.xlu1 %2683, %v3735_v18  }
 0x47b   : > { %v3949_v45 = vpop.permute.xlu1 %1703 }
 0x47c   : > { %4685 = vst [vmem:[#allocation93_spill] sm:$0xff] %v3949_v45  ;;  %v3953_v63 = vpop.permute.xlu2 %924  ;;  %v4549_v45 = vmov 29  }
 0x47d   : > { %2706 = vset.pattern.permute.xlu0 %v4541_v48 }
 0x47e   : > { %1663 = vperm.xlu0 %2706, %v3834_v8  }
 0x480   : > { %2685 = vset.pattern.permute.xlu2 %v2835_v23 }
 0x481   : > { %1273 = vperm.xlu2 %2685, %v3800_v25  }
 0x482   : > { %1253 = vperm.xlu1 %2683, %v3796_v53  }
 0x484   : > { %v1844_v51 = vpop.permute.xlu1 %1843 }
 0x485   : > { %v1846_v48 = vsel %vm1841_vm10, %v1844_v51, 0.0  ;;  %v3966_v47 = vpop.permute.xlu2 %968  ;;  %vm954_vm10 = vcmp.eq.s32.totalorder %v3341_v5, %v3866_v56 }
 0x486   : > { %v1847_v59 = vadd.f32 %v1846_v48, %v1836_v37  ;;  %2707 = vset.pattern.permute.xlu0 %v4549_v45  ;;  %v4547_v37 = vmov 53   ;;  %v4687_v48 = vmov 74   ;;  %v971_v31 = vsel %vm965_vm2, %v3966_v47, 0.0 }
 0x487   : > { %1713 = vperm.xlu0 %2707, %v3731_v1  }
 0x489   : > { %1283 = vperm.xlu2 %2685, %v3804_v57  }
 0x48a   : > { %2686 = vset.pattern.permute.xlu1 %v2835_v23  ;;  %v489_v23 = vpop.f32.mrf.mxu0 }
 0x48b   : > { %1293 = vperm.xlu1 %2686, %v3808_v14  }
 0x48c   : > { %v1854_v4 = vpop.permute.xlu1 %1853 }
 0x48d   : > { %v1856_v41 = vsel %vm1851_vm3, %v1854_v4, 0.0  ;;  %v3974_v51 = vpop.permute.xlu2 %979  ;;  %vm976_vm3 = vcmp.eq.s32.totalorder %v3354_v16, %v3866_v56  ;;  %v4692_v16 = vld [vmem:[#allocation29_spill] sm:$0xff] }
 0x48e   : > { %v3976_v0 = vadd.f32 %v1856_v41, %v1847_v59  ;;  %v1996_v59 = vsel %vm1991_vm5, %v3902_v54, 0.0  ;;  %v2768_v54 = vld [vmem:[%s4484_s5] ss:$0 sm:$0xff]  ;;  %vm998_vm5 = vcmp.eq.s32.totalorder %v4692_v16, %v3866_v56  ;;  %v4701_v16 = vld [vmem:[#allocation11_spill] sm:$0xff] }
 0x48f   : > { %2711 = vset.pattern.permute.xlu0 %v4547_v37  ;;  %v3990_v37 = vpop.permute.xlu0 %1863  ;;  %v487_v44 = vadd.f32 %v2768_v54, %v486_v20  ;;  %v484_v10 = vadd.f32 %v2768_v54, %v3959_v32  ;;  %v481_v20 = vadd.f32 %v2768_v54, %v3951_v30  ;;  %v478_v43 = vadd.f32 %v2768_v54, %v3937_v50 }
 0x490   : > { %4686 = vst [vmem:[#allocation94_spill] sm:$0xff] %v3976_v0  ;;  %1763 = vperm.xlu0 %2711, %v3804_v57   ;;  %v2838_v0 = vmov 77   ;;  %v916_v30 = vsel %vm910_vm12, %v3942_v2, 0.0  ;;  %v927_v50 = vsel %vm921_vm15, %v3953_v63, 0.0 }
 0x491   : > { %2688 = vset.pattern.permute.xlu2 %v4687_v48 }
 0x492   : > { %1323 = vperm.xlu2 %2688, %v3826_v28   ;;  %v492_v27 = vpop.f32.mrf.mxu0 }
 0x493   : > { %1303 = vperm.xlu1 %2686, %v3812_v6  }
 0x495   : > { %v2004_v7 = vpop.permute.xlu1 %2003 }
 0x496   : > { %v2006_v4 = vsel %vm2001_vm4, %v2004_v7, 0.0  ;;  %v3988_v41 = vpop.permute.xlu2 %1023  ;;  %v490_v7 = vadd.f32 %v2768_v54, %v489_v23 }
 0x497   : > { %v2007_v45 = vadd.f32 %v2006_v4, %v1996_v59  ;;  %v493_v59 = vadd.f32 %v2768_v54, %v492_v27  ;;  %v903_v23 = vpop.permute.xlu0 %902 }
 0x498   : > { %2714 = vset.pattern.permute.xlu0 %v2838_v0  ;;  %v905_v27 = vsel %vm899_vm11, %v903_v23, 0.0 }
 0x499   : > { %1813 = vperm.xlu0 %2714, %v3830_v29   ;;  %v2017_v61 = vadd.f32 %v3910_v52, %v2007_v45  ;;  %v883_v52 = vsel %vm877_vm14, %v3841_v3, 0.0  ;;  %2183 = vmatpush.msra.mxu2 %v493_v59  ;;  %v2839_v3 = vmov 39  }
 0x49a   : > { %1333 = vperm.xlu2 %2688, %v3830_v29   ;;  %2445 = vmatpush.msra.mxu3 %v493_v59  ;;  %v2840_v59 = vmov 54  }
 0x49b   : > { %2689 = vset.pattern.permute.xlu1 %v4687_v48  ;;  %v873_v48 = vadd.f32 %v872_v11, %v861_v17  ;;  %2184 = vmatpush.msra.mxu2 %v490_v7 }
 0x49c   : > { %1343 = vperm.xlu1 %2689, %v3834_v8   ;;  %2446 = vmatpush.msra.mxu3 %v490_v7 }
 0x49d   : > { %v2024_v22 = vpop.permute.xlu1 %2023  ;;  %v884_v15 = vadd.f32 %v883_v52, %v873_v48  ;;  %2185 = vmatpush.msra.mxu2 %v487_v44  ;;  %v2841_v48 = vmov 31  }
 0x49e   : > { %v2026_v45 = vsel %vm2021_vm7, %v2024_v22, 0.0  ;;  %2447 = vmatpush.msra.mxu3 %v487_v44  ;;  %v2842_v44 = vmov 75  }
 0x49f   : > { %v4014_v62 = vadd.f32 %v2026_v45, %v2017_v61  ;;  %v4016_v4 = vpop.permute.xlu2 %1073  ;;  %v4688_v61 = vmov 27   ;;  %v895_v17 = vadd.f32 %v894_v49, %v884_v15  ;;  %2186 = vmatpush.msra.mxu2 %v484_v10  ;;  %v958_v11 = vpop.permute.xlu0 %957 }
 0x4a0   : > { %2448 = vmatpush.msra.mxu3 %v484_v10  ;;  %v960_v63 = vsel %vm954_vm10, %v958_v11, 0.0  ;;  %v982_v10 = vsel %vm976_vm3, %v3974_v51, 0.0  ;;  %v4696_v11 = vld [vmem:[#allocation8_spill] sm:$0xff] }
 0x4a1   : > { %2715 = vset.pattern.permute.xlu0 %v2839_v3  ;;  %v906_v26 = vadd.f32 %v905_v27, %v895_v17  ;;  %2187 = vmatpush.msra.mxu2 %v481_v20  ;;  %v4690_v27 = vld [vmem:[#allocation32_spill] sm:$0xff]  ;;  %v2843_v17 = vmov 86  }
 0x4a2   : > { %2029 = vperm.xlu0 %2715, %v3077_v40   ;;  %2692 = vset.pattern.permute.xlu2 %v4688_v61  ;;  %vm987_vm4 = vcmp.eq.s32.totalorder %v4690_v27, %v3866_v56  ;;  %v2845_v27 = vmov 78  }
 0x4a3   : > { %1423 = vperm.xlu2 %2692, %v3847_v46   ;;  %2449 = vmatpush.msra.mxu3 %v481_v20  ;;  %v917_v7 = vadd.f32 %v916_v30, %v906_v26  ;;  %v4691_v20 = vld [vmem:[#allocation3_spill] sm:$0xff]  ;;  %v4693_v30 = vld [vmem:[#allocation9_spill] sm:$0xff] }
 0x4a4   : > { %2690 = vset.pattern.permute.xlu1 %v4688_v61  ;;  %2188 = vmatpush.msra.mxu2 %v478_v43  ;;  %vm1009_vm6 = vcmp.eq.s32.totalorder %v4693_v30, %v3866_v56  ;;  %v4702_v30 = vld [vmem:[#allocation36_spill] sm:$0xff] }
 0x4a5   : > { %1393 = vperm.xlu1 %2690, %v3731_v1   ;;  %2450 = vmatpush.msra.mxu3 %v478_v43  ;;  %v928_v54 = vadd.f32 %v927_v50, %v917_v7  ;;  %v4694_v50 = vld [vmem:[#allocation30_spill] sm:$0xff]  ;;  %vm1121_vm15 = vcmp.eq.s32.totalorder %v4702_v30, %v3866_v56 }
 0x4a6   : > { %v936_v32 = vpop.permute.xlu1 %935  ;;  %vm1020_vm14 = vcmp.eq.s32.totalorder %v4694_v50, %v3866_v56  ;;  %v4703_v50 = vld [vmem:[#allocation12_spill] sm:$0xff]  ;;  %v4712_v30 = vld [vmem:[#allocation34_spill] sm:$0xff] }
 0x4a7   : > { %v4032_v40 = vpop.permute.xlu2 %1083  ;;  %v938_v2 = vsel %vm932_vm13, %v936_v32, 0.0  ;;  %v1013_v47 = vpop.permute.xlu0 %1012  ;;  %vm1111_vm13 = vcmp.eq.s32.totalorder %v4701_v16, %v3866_v56 }
 0x4a8   : > { %v939_v22 = vadd.f32 %v938_v2, %v928_v54  ;;  %v1026_v54 = vsel %vm1020_vm14, %v3988_v41, 0.0 }
 0x4aa   : > { %2723 = vset.pattern.permute.xlu0 %v2840_v59 }
 0x4ab   : > { %1923 = vperm.xlu0 %2723, %v3804_v57   ;;  %2693 = vset.pattern.permute.xlu2 %v4689_v58 }
 0x4ac   : > { %1433 = vperm.xlu2 %2693, %v3800_v25  }
 0x4ad   : > { %1403 = vperm.xlu1 %2690, %v3735_v18  }
 0x4af   : > { %v947_v34 = vpop.permute.xlu1 %946 }
 0x4b0   : > { %v949_v52 = vsel %vm943_vm9, %v947_v34, 0.0  ;;  %v4047_v33 = vpop.permute.xlu2 %1123  ;;  %v4695_v34 = vmov 28   ;;  %vm1131_vm9 = vcmp.eq.s32.totalorder %v4703_v50, %v3866_v56 }
 0x4b1   : > { %v950_v45 = vadd.f32 %v949_v52, %v939_v22  ;;  %v2844_v22 = vmov 63  }
 0x4b3   : > { %2728 = vset.pattern.permute.xlu0 %v2841_v48  ;;  %v961_v23 = vadd.f32 %v960_v63, %v950_v45  ;;  %v4697_v45 = vld [vmem:[#allocation10_spill] sm:$0xff] }
 0x4b4   : > { %2053 = vperm.xlu0 %2728, %v3796_v53   ;;  %2696 = vset.pattern.permute.xlu2 %v2842_v44  ;;  %vm1071_vm7 = vcmp.eq.s32.totalorder %v4697_v45, %v3866_v56 }
 0x4b5   : > { %2694 = vset.pattern.permute.xlu1 %v4689_v58  ;;  %1473 = vperm.xlu2 %2696, %v3822_v60   ;;  %v972_v49 = vadd.f32 %v971_v31, %v961_v23  ;;  %v1015_v58 = vsel %vm1009_vm6, %v1013_v47, 0.0  ;;  %v1076_v23 = vsel %vm1071_vm7, %v4016_v4, 0.0  ;;  %v4698_v31 = vld [vmem:[#allocation33_spill] sm:$0xff]  ;;  %v1114_v4 = vpop.permute.xlu0 %1113  ;;  %vm1161_vm6 = vcmp.eq.s32.totalorder %v4712_v30, %v3866_v56 }
 0x4b6   : > { %1443 = vperm.xlu1 %2694, %v3804_v57   ;;  %vm1081_vm8 = vcmp.eq.s32.totalorder %v4698_v31, %v3866_v56 }
 0x4b7   : > { %v983_v61 = vadd.f32 %v982_v10, %v972_v49  ;;  %v4699_v49 = vld [vmem:[#allocation35_spill] sm:$0xff] }
 0x4b8   : > { %v991_v5 = vpop.permute.xlu1 %990  ;;  %v4059_v15 = vpop.permute.xlu2 %1133  ;;  %vm1091_vm11 = vcmp.eq.s32.totalorder %v4699_v49, %v3866_v56  ;;  %v4706_v49 = vld [vmem:[#allocation37_spill] sm:$0xff] }
 0x4b9   : > { %v993_v35 = vsel %vm987_vm4, %v991_v5, 0.0  ;;  %v1077_v5 = vadd.f32 %v1076_v23, %v3883_v21  ;;  %v1136_v45 = vsel %vm1131_vm9, %v4059_v15, 0.0  ;;  %vm1201_vm2 = vcmp.eq.s32.totalorder %v4706_v49, %v3866_v56 }
 0x4ba   : > { %v994_v26 = vadd.f32 %v993_v35, %v983_v61  ;;  %v1206_v15 = vsel %vm1201_vm2, %v3900_v9, 0.0  ;;  %v4710_v9 = vld [vmem:[#allocation13_spill] sm:$0xff] }
 0x4bb   : > { %vm1151_vm4 = vcmp.eq.s32.totalorder %v4710_v9, %v3866_v56 }
 0x4bc   : > { %2733 = vset.pattern.permute.xlu0 %v2843_v17 }
 0x4bd   : > { %1949 = vperm.xlu0 %2733, %v4691_v20   ;;  %1483 = vperm.xlu2 %2696, %v3826_v28  }
 0x4be   : > { %1453 = vperm.xlu1 %2694, %v3808_v14  }
 0x4c0   : > { %v1002_v51 = vpop.permute.xlu1 %1001 }
 0x4c1   : > { %v1004_v43 = vsel %vm998_vm5, %v1002_v51, 0.0  ;;  %v4072_v32 = vpop.permute.xlu2 %1173 }
 0x4c2   : > { %v1005_v7 = vadd.f32 %v1004_v43, %v994_v26  ;;  %v1116_v43 = vsel %vm1111_vm13, %v1114_v4, 0.0  ;;  %v2847_v4 = vmov 87  }
 0x4c4   : > { %v1016_v2 = vadd.f32 %v1015_v58, %v1005_v7  ;;  %v1126_v58 = vsel %vm1121_vm15, %v4047_v33, 0.0 }
 0x4c5   : > { %2738 = vset.pattern.permute.xlu0 %v2844_v22  ;;  %2700 = vset.pattern.permute.xlu2 %v4695_v34 }
 0x4c6   : > { %2079 = vperm.xlu0 %2738, %v4696_v11   ;;  %2697 = vset.pattern.permute.xlu1 %v2842_v44  ;;  %v1027_v52 = vadd.f32 %v1026_v54, %v1016_v2  ;;  %v1086_v44 = vsel %vm1081_vm8, %v4032_v40, 0.0  ;;  %v4700_v40 = vld [vmem:[#allocation31_spill] sm:$0xff]  ;;  %v4704_v2 = vmov 52   ;;  %v2846_v54 = vmov 55  }
 0x4c7   : > { %1573 = vperm.xlu2 %2700, %v3796_v53   ;;  %1493 = vperm.xlu1 %2697, %v3830_v29   ;;  %v1087_v61 = vadd.f32 %v1086_v44, %v1077_v5  ;;  %vm1101_vm12 = vcmp.eq.s32.totalorder %v4700_v40, %v3866_v56  ;;  %v1164_v40 = vpop.permute.xlu0 %1163 }
 0x4c8   : > { %2418 = vmatmul.msk.f32.vlgmr.msra.gmra.mxu2 %vm2148_vm1, %v1027_v52  ;;  %v1166_v50 = vsel %vm1161_vm6, %v1164_v40, 0.0 }
 0x4c9   : > { %v1094_v41 = vpop.permute.xlu1 %1093  ;;  %v4087_v63 = vpop.permute.xlu2 %1183 }
 0x4ca   : > { %v1096_v10 = vsel %vm1091_vm11, %v1094_v41, 0.0  ;;  %v4705_v41 = vld [vmem:[#allocation56_spill] sm:$0xff] }
 0x4cb   : > { %v1097_v35 = vadd.f32 %v1096_v10, %v1087_v61  ;;  %vm1141_vm10 = vcmp.eq.s32.totalorder %v4705_v41, %v3866_v56  ;;  %v4708_v10 = vmov 76   ;;  %v4715_v41 = vld [vmem:[#allocation16_spill] sm:$0xff] }
 0x4cc   : > { %vm1231_vm8 = vcmp.eq.s32.totalorder %v4715_v41, %v3866_v56 }
 0x4ce   : > { %2743 = vset.pattern.permute.xlu0 %v2845_v27 }
 0x4cf   : > { %1583 = vperm.xlu2 %2700, %v3847_v46   ;;  %1973 = vperm.xlu0 %2743, %v3830_v29  }
 0x4d0   : > { %1503 = vperm.xlu1 %2697, %v3834_v8  }
 0x4d1   : > { %v1104_v21 = vpop.permute.xlu1 %1103 }
 0x4d2   : > { %v1106_v47 = vsel %vm1101_vm12, %v1104_v21, 0.0  ;;  %v1234_v26 = vpop.permute.xlu2 %1233  ;;  %v4709_v21 = vld [vmem:[#allocation4_spill] sm:$0xff] }
 0x4d3   : > { %v1107_v51 = vadd.f32 %v1106_v47, %v1097_v35 }
 0x4d5   : > { %v1117_v7 = vadd.f32 %v1116_v43, %v1107_v51 }
 0x4d7   : > { %2703 = vset.pattern.permute.xlu2 %v4704_v2  ;;  %2748 = vset.pattern.permute.xlu0 %v2846_v54  ;;  %v1127_v52 = vadd.f32 %v1126_v58, %v1117_v7 }
 0x4d8   : > { %2698 = vset.pattern.permute.xlu1 %v4695_v34  ;;  %1623 = vperm.xlu2 %2703, %v3812_v6   ;;  %v4707_v34 = vld [vmem:[#allocation38_spill] sm:$0xff] }
 0x4d9   : > { %2103 = vperm.xlu0 %2748, %v3812_v6   ;;  %1553 = vperm.xlu1 %2698, %v3731_v1   ;;  %v1137_v33 = vadd.f32 %v1136_v45, %v1127_v52  ;;  %vm1191_vm3 = vcmp.eq.s32.totalorder %v4707_v34, %v3866_v56  ;;  %v4714_v45 = vld [vmem:[#allocation41_spill] sm:$0xff]  ;;  %v4717_v34 = vmov 29  }
 0x4da   : > { %v1144_v23 = vpop.permute.xlu1 %1143  ;;  %v1196_v61 = vsel %vm1191_vm3, %v3892_v19, 0.0  ;;  %v4711_v19 = vld [vmem:[#allocation15_spill] sm:$0xff]  ;;  %vm1221_vm7 = vcmp.eq.s32.totalorder %v4714_v45, %v3866_v56 }
 0x4db   : > { %v1146_v31 = vsel %vm1141_vm10, %v1144_v23, 0.0  ;;  %v1274_v44 = vpop.permute.xlu2 %1273  ;;  %v1207_v35 = vadd.f32 %v1206_v15, %v1196_v61  ;;  %vm1211_vm5 = vcmp.eq.s32.totalorder %v4711_v19, %v3866_v56  ;;  %v4716_v23 = vld [vmem:[#allocation39_spill] sm:$0xff]  ;;  %v4718_v61 = vld [vmem:[#allocation58_spill] sm:$0xff] }
 0x4dc   : > { %v1147_v5 = vadd.f32 %v1146_v31, %v1137_v33  ;;  %v1216_v43 = vsel %vm1211_vm5, %v3885_v42, 0.0  ;;  %v1226_v42 = vsel %vm1221_vm7, %v3702_v55, 0.0  ;;  %vm1181_vm11 = vcmp.eq.s32.totalorder %v4716_v23, %v3866_v56 }
 0x4dd   : > { %v1217_v58 = vadd.f32 %v1216_v43, %v1207_v35  ;;  %v1236_v31 = vsel %vm1231_vm8, %v1234_v26, 0.0  ;;  %v1186_v49 = vsel %vm1181_vm11, %v4087_v63, 0.0  ;;  %vm1241_vm12 = vcmp.eq.s32.totalorder %v4718_v61, %v3866_v56  ;;  %v4719_v63 = vld [vmem:[#allocation17_spill] sm:$0xff] }
 0x4de   : > { %vm1251_vm13 = vcmp.eq.s32.totalorder %v4719_v63, %v3866_v56  ;;  %v4727_v63 = vld [vmem:[#allocation47_spill] sm:$0xff] }
 0x4df   : > { %v1227_v15 = vadd.f32 %v1226_v42, %v1217_v58  ;;  %v4723_v42 = vld [vmem:[#allocation44_spill] sm:$0xff]  ;;  %vm1321_vm5 = vcmp.eq.s32.totalorder %v4727_v63, %v3866_v56  ;;  %v4736_v63 = vld [vmem:[#allocation23_spill] sm:$0xff] }
 0x4e0   : > { %2704 = vset.pattern.permute.xlu2 %v4708_v10  ;;  %vm1281_vm10 = vcmp.eq.s32.totalorder %v4723_v42, %v3866_v56 }
 0x4e1   : > { %2751 = vset.pattern.permute.xlu0 %v2847_v4  ;;  %2701 = vset.pattern.permute.xlu1 %v4704_v2  ;;  %v4713_v2 = vld [vmem:[#allocation14_spill] sm:$0xff]  ;;  %v1237_v35 = vadd.f32 %v1236_v31, %v1227_v15  ;;  %v4724_v31 = vld [vmem:[#allocation43_spill] sm:$0xff] }
 0x4e2   : > { %1633 = vperm.xlu2 %2704, %v3822_v60   ;;  %2129 = vperm.xlu0 %2751, %v4709_v21   ;;  %vm1171_vm14 = vcmp.eq.s32.totalorder %v4713_v2, %v3866_v56  ;;  %v4721_v2 = vld [vmem:[#allocation18_spill] sm:$0xff]  ;;  %vm1291_vm2 = vcmp.eq.s32.totalorder %v4724_v31, %v3866_v56 }
 0x4e3   : > { %1593 = vperm.xlu1 %2701, %v3800_v25   ;;  %v1154_v47 = vpop.permute.xlu1 %1153  ;;  %v1284_v16 = vpop.permute.xlu2 %1283  ;;  %v1176_v33 = vsel %vm1171_vm14, %v4072_v32, 0.0  ;;  %vm1271_vm9 = vcmp.eq.s32.totalorder %v4721_v2, %v3866_v56  ;;  %v4732_v31 = vld [vmem:[#allocation22_spill] sm:$0xff] }
 0x4e4   : > { %v1156_v51 = vsel %vm1151_vm4, %v1154_v47, 0.0  ;;  %v1286_v23 = vsel %vm1281_vm10, %v1284_v16, 0.0  ;;  %v4726_v16 = vld [vmem:[#allocation19_spill] sm:$0xff]  ;;  %vm1371_vm11 = vcmp.eq.s32.totalorder %v4732_v31, %v3866_v56 }
 0x4e5   : > { %v1157_v7 = vadd.f32 %v1156_v51, %v1147_v5  ;;  %v1264_v51 = vpop.permute.xlu0 %1263  ;;  %vm1311_vm4 = vcmp.eq.s32.totalorder %v4726_v16, %v3866_v56  ;;  %v4742_v31 = vld [vmem:[#allocation51_spill] sm:$0xff] }
 0x4e7   : > { %v1167_v52 = vadd.f32 %v1166_v50, %v1157_v7  ;;  %v4720_v7 = vld [vmem:[#allocation40_spill] sm:$0xff] }
 0x4e8   : > { %vm1261_vm15 = vcmp.eq.s32.totalorder %v4720_v7, %v3866_v56 }
 0x4e9   : > { %v1177_v5 = vadd.f32 %v1176_v33, %v1167_v52  ;;  %v1266_v58 = vsel %vm1261_vm15, %v1264_v51, 0.0  ;;  %v1276_v52 = vsel %vm1271_vm9, %v1274_v44, 0.0  ;;  %v4728_v51 = vld [vmem:[#allocation20_spill] sm:$0xff]  ;;  %vm1411_vm9 = vcmp.eq.s32.totalorder %v4736_v63, %v3866_v56 }
 0x4ea   : > { %2708 = vset.pattern.permute.xlu2 %v4717_v34  ;;  %vm1331_vm6 = vcmp.eq.s32.totalorder %v4728_v51, %v3866_v56  ;;  %v4737_v51 = vld [vmem:[#allocation52_spill] sm:$0xff] }
 0x4eb   : > { %1603 = vperm.xlu1 %2701, %v3804_v57   ;;  %1723 = vperm.xlu2 %2708, %v3735_v18   ;;  %v1187_v32 = vadd.f32 %v1186_v49, %v1177_v5  ;;  %vm1421_vm10 = vcmp.eq.s32.totalorder %v4737_v51, %v3866_v56 }
 0x4ec   : > { %v1244_v55 = vpop.permute.xlu1 %1243  ;;  %v1324_v40 = vpop.permute.xlu2 %1323 }
 0x4ed   : > { %v1246_v9 = vsel %vm1241_vm12, %v1244_v55, 0.0  ;;  %2419 = vmatmul.msk.f32.gmra.mxu2 %vm2148_vm1, %v1187_v32  ;;  %v1314_v44 = vpop.permute.xlu0 %1313  ;;  %v4725_v32 = vld [vmem:[#allocation42_spill] sm:$0xff] }
 0x4ee   : > { %v1247_v26 = vadd.f32 %v1246_v9, %v1237_v35  ;;  %vm1301_vm3 = vcmp.eq.s32.totalorder %v4725_v32, %v3866_v56 }
 0x4f3   : > { %2705 = vset.pattern.permute.xlu1 %v4708_v10  ;;  %1733 = vperm.xlu2 %2708, %v3796_v53   ;;  %v4722_v10 = vmov 53  }
 0x4f4   : > { %1643 = vperm.xlu1 %2705, %v3826_v28   ;;  %v1254_v47 = vpop.permute.xlu1 %1253  ;;  %v1334_v19 = vpop.permute.xlu2 %1333 }
 0x4f5   : > { %v1256_v43 = vsel %vm1251_vm13, %v1254_v47, 0.0  ;;  %v1326_v47 = vsel %vm1321_vm5, %v1324_v40, 0.0  ;;  %vm1461_vm5 = vcmp.eq.s32.totalorder %v4742_v31, %v3866_v56 }
 0x4f6   : > { %v1257_v30 = vadd.f32 %v1256_v43, %v1247_v26  ;;  %v1316_v26 = vsel %vm1311_vm4, %v1314_v44, 0.0 }
 0x4f8   : > { %v1267_v50 = vadd.f32 %v1266_v58, %v1257_v30  ;;  %v1336_v30 = vsel %vm1331_vm6, %v1334_v19, 0.0  ;;  %v4729_v58 = vld [vmem:[#allocation61_spill] sm:$0xff] }
 0x4f9   : > { %vm1341_vm14 = vcmp.eq.s32.totalorder %v4729_v58, %v3866_v56 }
 0x4fa   : > { %v1277_v33 = vadd.f32 %v1276_v52, %v1267_v50 }
 0x4fb   : > { %2712 = vset.pattern.permute.xlu2 %v4722_v10 }
 0x4fc   : > { %1653 = vperm.xlu1 %2705, %v3830_v29   ;;  %1773 = vperm.xlu2 %2712, %v3808_v14   ;;  %v1287_v5 = vadd.f32 %v1286_v23, %v1277_v33  ;;  %v2848_v23 = vmov 30  }
 0x4fd   : > { %v1294_v45 = vpop.permute.xlu1 %1293  ;;  %v4166_v41 = vpop.permute.xlu2 %1423 }
 0x4fe   : > { %v1296_v49 = vsel %vm1291_vm2, %v1294_v45, 0.0  ;;  %v4730_v45 = vld [vmem:[#allocation21_spill] sm:$0xff] }
 0x4ff   : > { %v1297_v15 = vadd.f32 %v1296_v49, %v1287_v5  ;;  %vm1351_vm7 = vcmp.eq.s32.totalorder %v4730_v45, %v3866_v56  ;;  %v1376_v49 = vsel %vm1371_vm11, %v3760_v24, 0.0 }
 0x500   : > { %v1356_v19 = vsel %vm1351_vm7, %v3912_v38, 0.0 }
 0x504   : > { %2709 = vset.pattern.permute.xlu1 %v4717_v34  ;;  %1783 = vperm.xlu2 %2712, %v3812_v6  }
 0x505   : > { %1743 = vperm.xlu1 %2709, %v3847_v46   ;;  %v1304_v61 = vpop.permute.xlu1 %1303 }
 0x506   : > { %v1306_v35 = vsel %vm1301_vm3, %v1304_v61, 0.0  ;;  %v1434_v55 = vpop.permute.xlu2 %1433 }
 0x507   : > { %v1307_v9 = vadd.f32 %v1306_v35, %v1297_v15  ;;  %v4733_v15 = vld [vmem:[#allocation50_spill] sm:$0xff]  ;;  %v1414_v35 = vpop.permute.xlu0 %1413 }
 0x508   : > { %vm1381_vm12 = vcmp.eq.s32.totalorder %v4733_v15, %v3866_v56  ;;  %v4743_v15 = vld [vmem:[#allocation26_spill] sm:$0xff] }
 0x509   : > { %v1317_v34 = vadd.f32 %v1316_v26, %v1307_v9  ;;  %v4735_v9 = vld [vmem:[#allocation48_spill] sm:$0xff]  ;;  %vm1471_vm6 = vcmp.eq.s32.totalorder %v4743_v15, %v3866_v56 }
 0x50a   : > { %vm1401_vm15 = vcmp.eq.s32.totalorder %v4735_v9, %v3866_v56  ;;  %v4746_v9 = vld [vmem:[#allocation49_spill] sm:$0xff] }
 0x50b   : > { %v1327_v43 = vadd.f32 %v1326_v47, %v1317_v34  ;;  %vm1491_vm7 = vcmp.eq.s32.totalorder %v4746_v9, %v3866_v56 }
 0x50c   : > { %2716 = vset.pattern.permute.xlu2 %v2838_v0 }
 0x50d   : > { %2710 = vset.pattern.permute.xlu1 %v4722_v10  ;;  %1823 = vperm.xlu2 %2716, %v3834_v8   ;;  %v1337_v7 = vadd.f32 %v1336_v30, %v1327_v43  ;;  %v4731_v10 = vld [vmem:[#allocation45_spill] sm:$0xff]  ;;  %v1426_v30 = vsel %vm1421_vm10, %v4166_v41, 0.0 }
 0x50e   : > { %1753 = vperm.xlu1 %2710, %v3800_v25   ;;  %v1344_v50 = vpop.permute.xlu1 %1343  ;;  %vm1361_vm8 = vcmp.eq.s32.totalorder %v4731_v10, %v3866_v56 }
 0x50f   : > { %v1346_v2 = vsel %vm1341_vm14, %v1344_v50, 0.0  ;;  %v4189_v40 = vpop.permute.xlu2 %1473  ;;  %v1366_v33 = vsel %vm1361_vm8, %v3896_v12, 0.0  ;;  %v4734_v12 = vld [vmem:[#allocation46_spill] sm:$0xff] }
 0x510   : > { %v1347_v52 = vadd.f32 %v1346_v2, %v1337_v7  ;;  %v1367_v42 = vadd.f32 %v1366_v33, %v1356_v19  ;;  %vm1391_vm13 = vcmp.eq.s32.totalorder %v4734_v12, %v3866_v56  ;;  %v4738_v7 = vld [vmem:[#allocation24_spill] sm:$0xff]  ;;  %v1464_v33 = vpop.permute.xlu0 %1463 }
 0x511   : > { %vm1431_vm2 = vcmp.eq.s32.totalorder %v4738_v7, %v3866_v56  ;;  %v4748_v7 = vld [vmem:[#allocation5_spill] sm:$0xff] }
 0x512   : > { %2420 = vmatmul.msk.f32.gmra.mxu2 %vm2148_vm1, %v1347_v52  ;;  %v1377_v44 = vadd.f32 %v1376_v49, %v1367_v42  ;;  %v1436_v50 = vsel %vm1431_vm2, %v1434_v55, 0.0  ;;  %v4739_v52 = vld [vmem:[#allocation65_spill] sm:$0xff]  ;;  %v4740_v55 = vld [vmem:[#allocation6_spill] sm:$0xff] }
 0x513   : > { %vm1441_vm3 = vcmp.eq.s32.totalorder %v4739_v52, %v3866_v56  ;;  %v4741_v42 = vld [vmem:[#allocation25_spill] sm:$0xff] }
 0x514   : > { %vm1451_vm4 = vcmp.eq.s32.totalorder %v4741_v42, %v3866_v56 }
 0x515   : > { %2717 = vset.pattern.permute.xlu2 %v2848_v23 }
 0x516   : > { %2713 = vset.pattern.permute.xlu1 %v2838_v0  ;;  %1873 = vperm.xlu2 %2717, %v3731_v1   ;;  %v1386_v0 = vsel %vm1381_vm12, %v3818_v13, 0.0  ;;  %v1416_v13 = vsel %vm1411_vm9, %v1414_v35, 0.0  ;;  %v4745_v35 = vmov 62  }
 0x517   : > { %1793 = vperm.xlu1 %2713, %v3822_v60   ;;  %v1394_v38 = vpop.permute.xlu1 %1393  ;;  %v1484_v5 = vpop.permute.xlu2 %1483  ;;  %v1387_v61 = vadd.f32 %v1386_v0, %v1377_v44  ;;  %v1466_v44 = vsel %vm1461_vm5, %v1464_v33, 0.0  ;;  %v4744_v0 = vld [vmem:[#allocation54_spill] sm:$0xff] }
 0x518   : > { %v1396_v32 = vsel %vm1391_vm13, %v1394_v38, 0.0  ;;  %vm1481_vm14 = vcmp.eq.s32.totalorder %v4744_v0, %v3866_v56 }
 0x519   : > { %v1397_v16 = vadd.f32 %v1396_v32, %v1387_v61  ;;  %v1486_v61 = vsel %vm1481_vm14, %v1484_v5, 0.0  ;;  %v1564_v5 = vpop.permute.xlu0 %1563 }
 0x51e   : > { %1903 = vperm.xlu2 %2717, %v3847_v46  }
 0x51f   : > { %1803 = vperm.xlu1 %2713, %v3826_v28   ;;  %v1404_v24 = vpop.permute.xlu1 %1403 }
 0x520   : > { %v1406_v26 = vsel %vm1401_vm15, %v1404_v24, 0.0 }
 0x521   : > { %v1407_v34 = vadd.f32 %v1406_v26, %v1397_v16  ;;  %v4215_v47 = vpop.permute.xlu2 %1573 }
 0x523   : > { %v1417_v43 = vadd.f32 %v1416_v13, %v1407_v34  ;;  %v4747_v34 = vld [vmem:[#allocation53_spill] sm:$0xff] }
 0x524   : > { %vm1501_vm8 = vcmp.eq.s32.totalorder %v4747_v34, %v3866_v56 }
 0x525   : > { %v1427_v58 = vadd.f32 %v1426_v30, %v1417_v43 }
 0x526   : > { %2721 = vset.pattern.permute.xlu2 %v2841_v48 }
 0x527   : > { %2718 = vset.pattern.permute.xlu1 %v2848_v23  ;;  %2033 = vperm.xlu2 %2721, %v3731_v1   ;;  %v1437_v2 = vadd.f32 %v1436_v50, %v1427_v58  ;;  %v4749_v58 = vld [vmem:[#allocation27_spill] sm:$0xff] }
 0x528   : > { %1883 = vperm.xlu1 %2718, %v3735_v18   ;;  %v1444_v45 = vpop.permute.xlu1 %1443  ;;  %vm1551_vm11 = vcmp.eq.s32.totalorder %v4749_v58, %v3866_v56 }
 0x529   : > { %v1446_v19 = vsel %vm1441_vm3, %v1444_v45, 0.0  ;;  %v1584_v10 = vpop.permute.xlu2 %1583  ;;  %v4750_v45 = vld [vmem:[#allocation55_spill] sm:$0xff] }
 0x52a   : > { %v1447_v41 = vadd.f32 %v1446_v19, %v1437_v2  ;;  %v1614_v2 = vpop.permute.xlu0 %1613  ;;  %vm1561_vm12 = vcmp.eq.s32.totalorder %v4750_v45, %v3866_v56  ;;  %v4763_v45 = vld [vmem:[#allocation68_spill] sm:$0xff] }
 0x52b   : > { %v1566_v33 = vsel %vm1561_vm12, %v1564_v5, 0.0  ;;  %v4759_v5 = vld [vmem:[#allocation63_spill] sm:$0xff] }
 0x52f   : > { %2722 = vset.pattern.permute.xlu2 %v2839_v3 }
 0x530   : > { %1893 = vperm.xlu1 %2718, %v3796_v53   ;;  %2039 = vperm.xlu2 %2722, %v4740_v55   ;;  %v1454_v1 = vpop.permute.xlu1 %1453  ;;  %v1476_v53 = vsel %vm1471_vm6, %v4189_v40, 0.0  ;;  %v4751_v55 = vld [vmem:[#allocation28_spill] sm:$0xff] }
 0x531   : > { %v1456_v23 = vsel %vm1451_vm4, %v1454_v1, 0.0  ;;  %vm1571_vm13 = vcmp.eq.s32.totalorder %v4751_v55, %v3866_v56  ;;  %v4752_v1 = vld [vmem:[#allocation60_spill] sm:$0xff]  ;;  %vm1631_vm4 = vcmp.eq.s32.totalorder %v4759_v5, %v3866_v56 }
 0x532   : > { %v1457_v38 = vadd.f32 %v1456_v23, %v1447_v41  ;;  %v4234_v49 = vpop.permute.xlu2 %1623  ;;  %v1576_v42 = vsel %vm1571_vm13, %v4215_v47, 0.0  ;;  %vm1581_vm15 = vcmp.eq.s32.totalorder %v4752_v1, %v3866_v56  ;;  %v4767_v1 = vld [vmem:[#allocation85_spill] sm:$0xff] }
 0x533   : > { %v1586_v31 = vsel %vm1581_vm15, %v1584_v10, 0.0 }
 0x534   : > { %v1467_v12 = vadd.f32 %v1466_v44, %v1457_v38  ;;  %v4754_v44 = vld [vmem:[#allocation71_spill] sm:$0xff] }
 0x535   : > { %vm1591_vm9 = vcmp.eq.s32.totalorder %v4754_v44, %v3866_v56 }
 0x536   : > { %v1477_v32 = vadd.f32 %v1476_v53, %v1467_v12  ;;  %v1664_v12 = vpop.permute.xlu0 %1663 }
 0x538   : > { %2719 = vset.pattern.permute.xlu1 %v2840_v59  ;;  %2725 = vset.pattern.permute.xlu2 %v4745_v35  ;;  %v1487_v16 = vadd.f32 %v1486_v61, %v1477_v32  ;;  %v4757_v61 = vld [vmem:[#allocation59_spill] sm:$0xff] }
 0x539   : > { %1913 = vperm.xlu1 %2719, %v3800_v25   ;;  %1929 = vperm.xlu2 %2725, %v4709_v21   ;;  %v1494_v24 = vpop.permute.xlu1 %1493  ;;  %vm1611_vm2 = vcmp.eq.s32.totalorder %v4757_v61, %v3866_v56 }
 0x53a   : > { %v1496_v26 = vsel %vm1491_vm7, %v1494_v24, 0.0  ;;  %v1616_v9 = vsel %vm1611_vm2, %v1614_v2, 0.0  ;;  %v4761_v2 = vld [vmem:[#allocation70_spill] sm:$0xff]  ;;  %vm1671_vm7 = vcmp.eq.s32.totalorder %v4763_v45, %v3866_v56  ;;  %v4777_v45 = vld [vmem:[#allocation73_spill] sm:$0xff] }
 0x53b   : > { %v1497_v40 = vadd.f32 %v1496_v26, %v1487_v16  ;;  %vm1681_vm6 = vcmp.eq.s32.totalorder %v4761_v2, %v3866_v56 }
 0x53c   : > { %v1634_v63 = vpop.permute.xlu2 %1633 }
 0x53e   : > { %v1714_v24 = vpop.permute.xlu0 %1713 }
 0x541   : > { %2720 = vset.pattern.permute.xlu1 %v4745_v35  ;;  %2727 = vset.pattern.permute.xlu2 %v2840_v59 }
 0x542   : > { %1919 = vperm.xlu1 %2720, %v4696_v11   ;;  %1933 = vperm.xlu2 %2727, %v3808_v14   ;;  %v1504_v13 = vpop.permute.xlu1 %1503 }
 0x543   : > { %v1506_v51 = vsel %vm1501_vm8, %v1504_v13, 0.0  ;;  %v1636_v13 = vsel %vm1631_vm4, %v1634_v63, 0.0  ;;  %vm1751_vm4 = vcmp.eq.s32.totalorder %v4777_v45, %v3866_v56 }
 0x544   : > { %v1507_v43 = vadd.f32 %v1506_v51, %v1497_v40 }
 0x545   : > { %v4253_v30 = vpop.permute.xlu2 %1723 }
 0x546   : > { %2421 = vmatmul.msk.f32.gmra.mxu2 %vm2148_vm1, %v1507_v43  ;;  %v4760_v43 = vld [vmem:[#allocation74_spill] sm:$0xff]  ;;  %v4306_v63 = vpop.permute.xlu0 %1763 }
 0x547   : > { %vm1641_vm5 = vcmp.eq.s32.totalorder %v4760_v43, %v3866_v56 }
 0x54a   : > { %2724 = vset.pattern.permute.xlu1 %v2841_v48  ;;  %2730 = vset.pattern.permute.xlu2 %v2839_v3 }
 0x54b   : > { %2043 = vperm.xlu1 %2724, %v3735_v18   ;;  %2059 = vperm.xlu2 %2730, %v4748_v7   ;;  %v1554_v50 = vpop.permute.xlu1 %1553 }
 0x54c   : > { %v1556_v52 = vsel %vm1551_vm11, %v1554_v50, 0.0  ;;  %vm1861_vm11 = vcmp.eq.s32.totalorder %v4767_v1, %v3866_v56 }
 0x54d   : > { %v1557_v19 = vadd.f32 %v1556_v52, %v3931_v39  ;;  %v4265_v41 = vpop.permute.xlu2 %1733  ;;  %v4753_v39 = vld [vmem:[#allocation2_spill] sm:$0xff]  ;;  %v4762_v52 = vld [vmem:[#allocation77_spill] sm:$0xff]  ;;  %v1866_v44 = vsel %vm1861_vm11, %v3990_v37, 0.0 }
 0x54e   : > { %vm1691_vm14 = vcmp.eq.s32.totalorder %v4762_v52, %v3866_v56 }
 0x54f   : > { %v1567_v18 = vadd.f32 %v1566_v33, %v1557_v19  ;;  %v4765_v33 = vld [vmem:[#allocation92_spill] sm:$0xff] }
 0x550   : > { %v1696_v55 = vsel %vm1691_vm14, %v4765_v33, 0.0  ;;  %v4778_v33 = vld [vmem:[#allocation76_spill] sm:$0xff] }
 0x551   : > { %v1577_v23 = vadd.f32 %v1576_v42, %v1567_v18  ;;  %v4766_v18 = vld [vmem:[#allocation67_spill] sm:$0xff] }
 0x552   : > { %vm1701_vm8 = vcmp.eq.s32.totalorder %v4766_v18, %v3866_v56 }
 0x553   : > { %2726 = vset.pattern.permute.xlu1 %v2839_v3  ;;  %2732 = vset.pattern.permute.xlu2 %v2841_v48  ;;  %v1587_v38 = vadd.f32 %v1586_v31, %v1577_v23  ;;  %v4755_v3 = vld [vmem:[#allocation7_spill] sm:$0xff]  ;;  %v4756_v48 = vld [vmem:[#allocation57_spill] sm:$0xff]  ;;  %v4769_v31 = vld [vmem:[#allocation64_spill] sm:$0xff] }
 0x554   : > { %2049 = vperm.xlu1 %2726, %v4753_v39   ;;  %2063 = vperm.xlu2 %2732, %v3847_v46   ;;  %vm1601_vm10 = vcmp.eq.s32.totalorder %v4756_v48, %v3866_v56  ;;  %vm1661_vm12 = vcmp.eq.s32.totalorder %v4769_v31, %v3866_v56 }
 0x555   : > { %v1594_v15 = vpop.permute.xlu1 %1593  ;;  %v1666_v37 = vsel %vm1661_vm12, %v1664_v12, 0.0  ;;  %v2849_v12 = vmov 79  }
 0x556   : > { %v1596_v47 = vsel %vm1591_vm9, %v1594_v15, 0.0  ;;  %v4278_v53 = vpop.permute.xlu2 %1773  ;;  %2754 = vset.pattern.permute.xlu0 %v2849_v12 }
 0x557   : > { %v1597_v0 = vadd.f32 %v1596_v47, %v1587_v38  ;;  %v4770_v38 = vld [vmem:[#allocation62_spill] sm:$0xff]  ;;  %v4771_v47 = vld [vmem:[#allocation69_spill] sm:$0xff] }
 0x558   : > { %vm1651_vm13 = vcmp.eq.s32.totalorder %v4770_v38, %v3866_v56  ;;  %vm1711_vm15 = vcmp.eq.s32.totalorder %v4771_v47, %v3866_v56  ;;  %v4780_v38 = vld [vmem:[#allocation81_spill] sm:$0xff]  ;;  %v4781_v47 = vld [vmem:[#allocation83_spill] sm:$0xff] }
 0x559   : > { %v1716_v48 = vsel %vm1711_vm15, %v1714_v24, 0.0 }
 0x55c   : > { %2729 = vset.pattern.permute.xlu1 %v4745_v35  ;;  %2735 = vset.pattern.permute.xlu2 %v2845_v27  ;;  %v4758_v35 = vld [vmem:[#allocation66_spill] sm:$0xff] }
 0x55d   : > { %1939 = vperm.xlu1 %2729, %v4755_v3   ;;  %v1604_v10 = vpop.permute.xlu1 %1603  ;;  %1953 = vperm.xlu2 %2735, %v3822_v60   ;;  %vm1621_vm3 = vcmp.eq.s32.totalorder %v4758_v35, %v3866_v56 }
 0x55e   : > { %v1606_v46 = vsel %vm1601_vm10, %v1604_v10, 0.0  ;;  %v4286_v32 = vpop.permute.xlu2 %1783  ;;  %v1626_v40 = vsel %vm1621_vm3, %v4234_v49, 0.0 }
 0x55f   : > { %v1607_v16 = vadd.f32 %v1606_v46, %v1597_v0  ;;  %v4772_v46 = vld [vmem:[#allocation86_spill] sm:$0xff] }
 0x560   : > { %vm1871_vm9 = vcmp.eq.s32.totalorder %v4772_v46, %v3866_v56 }
 0x561   : > { %v1617_v26 = vadd.f32 %v1616_v9, %v1607_v16  ;;  %v4773_v16 = vld [vmem:[#allocation94_spill] sm:$0xff] }
 0x562   : > { %v1867_v9 = vadd.f32 %v1866_v44, %v4773_v16 }
 0x563   : > { %v1627_v34 = vadd.f32 %v1626_v40, %v1617_v26  ;;  %v4774_v26 = vld [vmem:[#allocation72_spill] sm:$0xff] }
 0x564   : > { %vm1721_vm10 = vcmp.eq.s32.totalorder %v4774_v26, %v3866_v56 }
 0x565   : > { %2731 = vset.pattern.permute.xlu1 %v2840_v59  ;;  %2737 = vset.pattern.permute.xlu2 %v2843_v17  ;;  %v1637_v51 = vadd.f32 %v1636_v13, %v1627_v34  ;;  %v1686_v59 = vsel %vm1681_vm6, %v3875_v36, 0.0  ;;  %v4768_v36 = vld [vmem:[#allocation93_spill] sm:$0xff]  ;;  %v1726_v5 = vsel %vm1721_vm10, %v4253_v30, 0.0  ;;  %v4775_v13 = vld [vmem:[#allocation75_spill] sm:$0xff]  ;;  %vm1761_vm6 = vcmp.eq.s32.totalorder %v4778_v33, %v3866_v56 }
 0x566   : > { %1943 = vperm.xlu1 %2731, %v3812_v6   ;;  %v1644_v7 = vpop.permute.xlu1 %1643  ;;  %1959 = vperm.xlu2 %2737, %v4696_v11   ;;  %v4764_v6 = vld [vmem:[#allocation91_spill] sm:$0xff]  ;;  %v1706_v23 = vsel %vm1701_vm8, %v4768_v36, 0.0  ;;  %vm1731_vm2 = vcmp.eq.s32.totalorder %v4775_v13, %v3866_v56  ;;  %v4779_v36 = vld [vmem:[#allocation78_spill] sm:$0xff]  ;;  %vm1791_vm8 = vcmp.eq.s32.totalorder %v4781_v47, %v3866_v56 }
 0x567   : > { %v1646_v58 = vsel %vm1641_vm5, %v1644_v7, 0.0  ;;  %v4301_v49 = vpop.permute.xlu2 %1823  ;;  %v1676_v19 = vsel %vm1671_vm7, %v4764_v6, 0.0  ;;  %v1736_v43 = vsel %vm1731_vm2, %v4265_v41, 0.0  ;;  %vm1771_vm14 = vcmp.eq.s32.totalorder %v4779_v36, %v3866_v56 }
 0x568   : > { %v1647_v50 = vadd.f32 %v1646_v58, %v1637_v51  ;;  %v1687_v42 = vadd.f32 %v1686_v59, %v1676_v19  ;;  %v1814_v51 = vpop.permute.xlu0 %1813  ;;  %v4776_v58 = vld [vmem:[#allocation80_spill] sm:$0xff]  ;;  %v1776_v31 = vsel %vm1771_vm14, %v4278_v53, 0.0  ;;  %vm1781_vm7 = vcmp.eq.s32.totalorder %v4780_v38, %v3866_v56 }
 0x569   : > { %vm1741_vm3 = vcmp.eq.s32.totalorder %v4776_v58, %v3866_v56  ;;  %v1786_v44 = vsel %vm1781_vm7, %v4286_v32, 0.0 }
 0x56a   : > { %v1697_v15 = vadd.f32 %v1696_v55, %v1687_v42  ;;  %v1766_v42 = vsel %vm1761_vm6, %v4306_v63, 0.0 }
 0x56c   : > { %v1707_v35 = vadd.f32 %v1706_v23, %v1697_v15 }
 0x56e   : > { %2734 = vset.pattern.permute.xlu1 %v2844_v22  ;;  %v1654_v39 = vpop.permute.xlu1 %1653  ;;  %2740 = vset.pattern.permute.xlu2 %v2846_v54  ;;  %v1717_v34 = vadd.f32 %v1716_v48, %v1707_v35  ;;  %v4782_v48 = vld [vmem:[#allocation79_spill] sm:$0xff] }
 0x56f   : > { %v1656_v0 = vsel %vm1651_vm13, %v1654_v39, 0.0  ;;  %2069 = vperm.xlu1 %2734, %v4691_v20   ;;  %2083 = vperm.xlu2 %2740, %v3804_v57   ;;  %vm1801_vm11 = vcmp.eq.s32.totalorder %v4782_v48, %v3866_v56  ;;  %v4785_v35 = vld [vmem:[#allocation87_spill] sm:$0xff] }
 0x570   : > { %v1657_v10 = vadd.f32 %v1656_v0, %v1647_v50  ;;  %v1874_v61 = vpop.permute.xlu2 %1873  ;;  %v1727_v7 = vadd.f32 %v1726_v5, %v1717_v34  ;;  %v2030_v52 = vpop.permute.xlu0 %2029  ;;  %vm1881_vm15 = vcmp.eq.s32.totalorder %v4785_v35, %v3866_v56 }
 0x571   : > { %v1876_v40 = vsel %vm1871_vm9, %v1874_v61, 0.0  ;;  %vm2031_vm5 = vcmp.eq.s32.totalorder %v2030_v52, %v3866_v56  ;;  %v4784_v61 = vld [vmem:[#allocation84_spill] sm:$0xff] }
 0x572   : > { %v1667_v57 = vadd.f32 %v1666_v37, %v1657_v10  ;;  %v4339_v24 = vadd.f32 %v1876_v40, %v1867_v9  ;;  %v1737_v30 = vadd.f32 %v1736_v43, %v1727_v7  ;;  %vm1821_vm13 = vcmp.eq.s32.totalorder %v4784_v61, %v3866_v56  ;;  %v4786_v40 = vld [vmem:[#allocation88_spill] sm:$0xff] }
 0x573   : > { %v1826_v9 = vsel %vm1821_vm13, %v4301_v49, 0.0  ;;  %vm1891_vm9 = vcmp.eq.s32.totalorder %v4786_v40, %v3866_v56 }
 0x574   : > { %2422 = vmatmul.msk.f32.gmra.mxu2 %vm2148_vm1, %v1667_v57  ;;  %v4787_v57 = vld [vmem:[#allocation89_spill] sm:$0xff] }
 0x575   : > { %vm1901_vm10 = vcmp.eq.s32.totalorder %v4787_v57, %v3866_v56 }
 0x577   : > { %2736 = vset.pattern.permute.xlu1 %v2846_v54  ;;  %v1744_v50 = vpop.permute.xlu1 %1743  ;;  %2742 = vset.pattern.permute.xlu2 %v2844_v22 }
 0x578   : > { %v1746_v2 = vsel %vm1741_vm3, %v1744_v50, 0.0  ;;  %2073 = vperm.xlu1 %2736, %v3800_v25   ;;  %2089 = vperm.xlu2 %2742, %v4709_v21   ;;  %v4352_v41 = vpop.permute.xlu2 %1903 }
 0x579   : > { %v1747_v59 = vadd.f32 %v1746_v2, %v1737_v30 }
 0x580   : > { %2739 = vset.pattern.permute.xlu1 %v2845_v27  ;;  %v1754_v6 = vpop.permute.xlu1 %1753  ;;  %2745 = vset.pattern.permute.xlu2 %v2843_v17 }
 0x581   : > { %v1756_v19 = vsel %vm1751_vm4, %v1754_v6, 0.0  ;;  %1963 = vperm.xlu1 %2739, %v3826_v28   ;;  %1979 = vperm.xlu2 %2745, %v4755_v3   ;;  %v2034_v25 = vpop.permute.xlu2 %2033 }
 0x582   : > { %v1757_v55 = vadd.f32 %v1756_v19, %v1747_v59  ;;  %v2036_v18 = vsel %vm2031_vm5, %v2034_v25, 0.0 }
 0x583   : > { %v4365_v1 = vadd.f32 %v2036_v18, %v4014_v62 }
 0x584   : > { %v1767_v23 = vadd.f32 %v1766_v42, %v1757_v55 }
 0x586   : > { %v1777_v39 = vadd.f32 %v1776_v31, %v1767_v23 }
 0x588   : > { %v1787_v15 = vadd.f32 %v1786_v44, %v1777_v39 }
 0x589   : > { %2741 = vset.pattern.permute.xlu1 %v2843_v17  ;;  %v1794_v62 = vpop.permute.xlu1 %1793  ;;  %2747 = vset.pattern.permute.xlu2 %v2845_v27  ;;  %v4783_v17 = vld [vmem:[#allocation82_spill] sm:$0xff] }
 0x58a   : > { %v1796_v63 = vsel %vm1791_vm8, %v1794_v62, 0.0  ;;  %1969 = vperm.xlu1 %2741, %v4709_v21   ;;  %1983 = vperm.xlu2 %2747, %v3834_v8   ;;  %v2040_v53 = vpop.permute.xlu2 %2039  ;;  %vm1811_vm12 = vcmp.eq.s32.totalorder %v4783_v17, %v3866_v56 }
 0x58b   : > { %v1797_v0 = vadd.f32 %v1796_v63, %v1787_v15  ;;  %v1816_v46 = vsel %vm1811_vm12, %v1814_v51, 0.0  ;;  %vm2041_vm3 = vcmp.eq.s32.totalorder %v2040_v53, %v3866_v56 }
 0x591   : > { %v1804_v32 = vpop.permute.xlu1 %1803 }
 0x592   : > { %v1806_v10 = vsel %vm1801_vm11, %v1804_v32, 0.0  ;;  %2744 = vset.pattern.permute.xlu1 %v2846_v54  ;;  %2750 = vset.pattern.permute.xlu2 %v2849_v12 }
 0x593   : > { %v1807_v27 = vadd.f32 %v1806_v10, %v1797_v0  ;;  %2093 = vperm.xlu1 %2744, %v3808_v14   ;;  %2113 = vperm.xlu2 %2750, %v3822_v60   ;;  %v4387_v21 = vpop.permute.xlu2 %1929 }
 0x594   : > { %vm1931_vm14 = vcmp.eq.s32.totalorder %v4387_v21, %v3866_v56 }
 0x595   : > { %v1817_v16 = vadd.f32 %v1816_v46, %v1807_v27 }
 0x597   : > { %v1827_v54 = vadd.f32 %v1826_v9, %v1817_v16 }
 0x599   : > { %2423 = vmatmul.msk.f32.vlgmr.msra.gmra.mxu3 %vm2148_vm1, %v1827_v54 }
 0x59a   : > { %v1884_v37 = vpop.permute.xlu1 %1883 }
 0x59b   : > { %v1886_v26 = vsel %vm1881_vm15, %v1884_v37, 0.0  ;;  %2746 = vset.pattern.permute.xlu1 %v2844_v22  ;;  %2123 = vperm.xlu2 %2750, %v3826_v28   ;;  %v1906_v28 = vsel %vm1901_vm10, %v4352_v41, 0.0 }
 0x59c   : > { %v1887_v14 = vadd.f32 %v1886_v26, %v4339_v24  ;;  %2099 = vperm.xlu1 %2746, %v4755_v3   ;;  %v1934_v60 = vpop.permute.xlu2 %1933 }
 0x59d   : > { %v1936_v38 = vsel %vm1931_vm14, %v1934_v60, 0.0  ;;  %vm2222_vm14 = vcmp.lt.s32.totalorder %v3866_v56, 8 }
 0x5a2   : > { %v1894_v49 = vpop.permute.xlu1 %1893 }
 0x5a3   : > { %v1896_v5 = vsel %vm1891_vm9, %v1894_v49, 0.0  ;;  %2753 = vset.pattern.permute.xlu2 %v2847_v4 }
 0x5a4   : > { %v1897_v34 = vadd.f32 %v1896_v5, %v1887_v14  ;;  %2749 = vset.pattern.permute.xlu1 %v2847_v4  ;;  %2139 = vperm.xlu2 %2753, %v4755_v3   ;;  %v1924_v4 = vpop.permute.xlu0 %1923 }
 0x5a5   : > { %2109 = vperm.xlu1 %2749, %v4691_v20   ;;  %v2060_v22 = vpop.permute.xlu2 %2059 }
 0x5a6   : > { %v1907_v24 = vadd.f32 %v1906_v28, %v1897_v34  ;;  %vm2061_vm2 = vcmp.eq.s32.totalorder %v2060_v22, %v3866_v56 }
 0x5ab   : > { %v1914_v13 = vpop.permute.xlu1 %1913 }
 0x5ad   : > { %2119 = vperm.xlu1 %2749, %v4696_v11   ;;  %v2054_v11 = vpop.permute.xlu0 %2053 }
 0x5ae   : > { %v2064_v51 = vpop.permute.xlu2 %2063 }
 0x5af   : > { %v2066_v43 = vsel %vm2061_vm2, %v2064_v51, 0.0 }
 0x5b4   : > { %v1920_v7 = vpop.permute.xlu1 %1919 }
 0x5b5   : > { %2752 = vset.pattern.permute.xlu1 %v2849_v12  ;;  %v1950_v19 = vpop.permute.xlu0 %1949  ;;  %vm1921_vm6 = vcmp.eq.s32.totalorder %v1920_v7, %v3866_v56 }
 0x5b6   : > { %2133 = vperm.xlu1 %2752, %v3830_v29   ;;  %v1926_v18 = vsel %vm1921_vm6, %v1924_v4, 0.0  ;;  %vm1951_vm8 = vcmp.eq.s32.totalorder %v1950_v19, %v3866_v56 }
 0x5b7   : > { %v1954_v41 = vpop.permute.xlu2 %1953 }
 0x5b8   : > { %v1956_v47 = vsel %vm1951_vm8, %v1954_v41, 0.0  ;;  %v2270_v41 = vld [vmem:[%s4487_s8] sm:$0xff]  ;;  %vm2229_vm8 = vcmp.lt.s32.totalorder %v3866_v56, 12 }
 0x5bd   : > { %v2044_v3 = vpop.permute.xlu1 %2043  ;;  %v2080_v36 = vpop.permute.xlu0 %2079 }
 0x5be   : > { %v2046_v58 = vsel %vm2041_vm3, %v2044_v3, 0.0  ;;  %2143 = vperm.xlu1 %2752, %v3834_v8   ;;  %v4788_v8 = vld [vmem:[#allocation90_spill] sm:$0xff]  ;;  %vm2081_vm9 = vcmp.eq.s32.totalorder %v2080_v36, %v3866_v56 }
 0x5bf   : > { %v2047_v20 = vadd.f32 %v2046_v58, %v4365_v1  ;;  %vm1911_vm5 = vcmp.eq.s32.totalorder %v4788_v8, %v3866_v56 }
 0x5c0   : > { %v1960_v52 = vpop.permute.xlu2 %1959  ;;  %v1916_v55 = vsel %vm1911_vm5, %v1914_v13, 0.0 }
 0x5c1   : > { %v1917_v42 = vadd.f32 %v1916_v55, %v1907_v24  ;;  %vm1961_vm11 = vcmp.eq.s32.totalorder %v1960_v52, %v3866_v56 }
 0x5c3   : > { %v1927_v1 = vadd.f32 %v1926_v18, %v1917_v42 }
 0x5c5   : > { %v1937_v44 = vadd.f32 %v1936_v38, %v1927_v1  ;;  %v1974_v0 = vpop.permute.xlu0 %1973 }
 0x5c6   : > { %v2050_v30 = vpop.permute.xlu1 %2049 }
 0x5c7   : > { %vm2051_vm4 = vcmp.eq.s32.totalorder %v2050_v30, %v3866_v56 }
 0x5c8   : > { %v2056_v50 = vsel %vm2051_vm4, %v2054_v11, 0.0  ;;  %v2273_v11 = vld [vmem:[%s4487_s8 + $0x18] sm:$0xff] }
 0x5c9   : > { %v2057_v2 = vadd.f32 %v2056_v50, %v2047_v20  ;;  %v2084_v45 = vpop.permute.xlu2 %2083  ;;  %v2272_v50 = vld [vmem:[%s4487_s8 + $0x10] sm:$0xff]  ;;  %2293 = vmatpush.msrb.mxu3 %v2273_v11 }
 0x5ca   : > { %v2086_v60 = vsel %vm2081_vm9, %v2084_v45, 0.0  ;;  %v2850_v45 = vmov 0.0  }
 0x5cb   : > { %v2067_v59 = vadd.f32 %v2066_v43, %v2057_v2  ;;  %v2271_v2 = vld [vmem:[%s4487_s8 + $0x8] sm:$0xff]  ;;  %2294 = vmatpush.msrb.mxu3 %v2272_v50 }
 0x5cd   : > { %v2104_v54 = vpop.permute.xlu0 %2103  ;;  %2295 = vmatpush.msrb.mxu3 %v2271_v2 }
 0x5cf   : > { %v1940_v12 = vpop.permute.xlu1 %1939  ;;  %2296 = vmatpush.msrb.mxu3 %v2270_v41 }
 0x5d0   : > { %vm1941_vm7 = vcmp.eq.s32.totalorder %v1940_v12, %v3866_v56 }
 0x5d2   : > { %v2090_v25 = vpop.permute.xlu2 %2089 }
 0x5d3   : > { %vm2091_vm10 = vcmp.eq.s32.totalorder %v2090_v25, %v3866_v56 }
 0x5d5   : > { %v2130_v28 = vpop.permute.xlu0 %2129 }
 0x5d6   : > { %vm2131_vm5 = vcmp.eq.s32.totalorder %v2130_v28, %v3866_v56 }
 0x5d8   : > { %v1944_v29 = vpop.permute.xlu1 %1943 }
 0x5d9   : > { %v1946_v39 = vsel %vm1941_vm7, %v1944_v29, 0.0  ;;  %vm2228_vm7 = vcmp.ge.s32.totalorder %v3866_v56, 8 }
 0x5da   : > { %v1947_v15 = vadd.f32 %v1946_v39, %v1937_v44  ;;  %vm2230_vm9 = vmand %vm2228_vm7, %vm2229_vm8 }
 0x5db   : > { %v1980_v23 = vpop.permute.xlu2 %1979 }
 0x5dc   : > { %v1957_v63 = vadd.f32 %v1956_v47, %v1947_v15  ;;  %vm1981_vm13 = vcmp.eq.s32.totalorder %v1980_v23, %v3866_v56 }
 0x5e1   : > { %v2070_v6 = vpop.permute.xlu1 %2069 }
 0x5e2   : > { %vm2071_vm15 = vcmp.eq.s32.totalorder %v2070_v6, %v3866_v56 }
 0x5e4   : > { %v1984_v48 = vpop.permute.xlu2 %1983 }
 0x5e5   : > { %v1986_v27 = vsel %vm1981_vm13, %v1984_v48, 0.0  ;;  %vm2236_vm13 = vcmp.lt.s32.totalorder %v3866_v56, 16 }
 0x5ea   : > { %v2074_v33 = vpop.permute.xlu1 %2073 }
 0x5eb   : > { %v2076_v35 = vsel %vm2071_vm15, %v2074_v33, 0.0  ;;  %vm2215_vm15 = vcmp.lt.s32.totalorder %v3866_v56, 4  ;;  %v2428_v33 = vsel %vm2230_vm9, 1.0, %v2850_v45 }
 0x5ec   : > { %v2077_v26 = vadd.f32 %v2076_v35, %v2067_v59  ;;  %v2190_v59 = vpop.f32.mrf.mxu2  ;;  %v2426_v25 = vsel %vm2215_vm15, 1.0, %v2850_v45 }
 0x5ed   : > { %v2114_v9 = vpop.permute.xlu2 %2113  ;;  %v2219_v18 = vmul.f32 %v2426_v25, %v2190_v59 }
 0x5ee   : > { %v2087_v49 = vadd.f32 %v2086_v60, %v2077_v26 }
 0x5f3   : > { %v1964_v31 = vpop.permute.xlu1 %1963 }
 0x5f4   : > { %v1966_v62 = vsel %vm1961_vm11, %v1964_v31, 0.0  ;;  %v2193_v12 = vpop.f32.mrf.mxu2 }
 0x5f5   : > { %v1967_v32 = vadd.f32 %v1966_v62, %v1957_v63  ;;  %v2124_v14 = vpop.permute.xlu2 %2123 }
 0x5fc   : > { %v1970_v53 = vpop.permute.xlu1 %1969  ;;  %v2196_v52 = vpop.f32.mrf.mxu2 }
 0x5fd   : > { %vm1971_vm12 = vcmp.eq.s32.totalorder %v1970_v53, %v3866_v56  ;;  %v2233_v42 = vmul.f32 %v2428_v33, %v2196_v52 }
 0x5fe   : > { %v1976_v10 = vsel %vm1971_vm12, %v1974_v0, 0.0  ;;  %v2140_v43 = vpop.permute.xlu2 %2139  ;;  %vm2235_vm12 = vcmp.ge.s32.totalorder %v3866_v56, 12 }
 0x5ff   : > { %v1977_v17 = vadd.f32 %v1976_v10, %v1967_v32  ;;  %vm2141_vm6 = vcmp.eq.s32.totalorder %v2140_v43, %v3866_v56 }
 0x601   : > { %v1987_v21 = vadd.f32 %v1986_v27, %v1977_v17 }
 0x603   : > { %2424 = vmatmul.msk.f32.gmra.mxu3 %vm2148_vm1, %v1987_v21 }
 0x604   : > { %v2199_v29 = vpop.f32.mrf.mxu2 }
 0x605   : > { %v2094_v46 = vpop.permute.xlu1 %2093 }
 0x606   : > { %v2096_v40 = vsel %vm2091_vm10, %v2094_v46, 0.0  ;;  %vm2242_vm10 = vcmp.ge.s32.totalorder %v3866_v56, 16 }
 0x607   : > { %v2097_v57 = vadd.f32 %v2096_v40, %v2087_v49 }
 0x60c   : > { %v2202_v1 = vpop.f32.mrf.mxu2 }
 0x60e   : > { %v2100_v61 = vpop.permute.xlu1 %2099 }
 0x60f   : > { %vm2101_vm2 = vcmp.eq.s32.totalorder %v2100_v61, %v3866_v56  ;;  %v2301_v61 = vld [vmem:[%s395_s12] sm:$0xff] }
 0x610   : > { %v2106_v5 = vsel %vm2101_vm2, %v2104_v54, 0.0  ;;  %vm2243_vm2 = vcmp.lt.s32.totalorder %v3866_v56, 20 }
 0x611   : > { %v2107_v24 = vadd.f32 %v2106_v5, %v2097_v57 }
 0x617   : > { %v2110_v16 = vpop.permute.xlu1 %2109 }
 0x618   : > { %vm2111_vm3 = vcmp.eq.s32.totalorder %v2110_v16, %v3866_v56 }
 0x619   : > { %v2116_v22 = vsel %vm2111_vm3, %v2114_v9, 0.0  ;;  %vm2237_vm3 = vmand %vm2235_vm12, %vm2236_vm13  ;;  %vm2264_vm12 = vcmp.lt.s32.totalorder %v3866_v56, 32 }
 0x61a   : > { %v2117_v51 = vadd.f32 %v2116_v22, %v2107_v24  ;;  %v2429_v55 = vsel %vm2237_vm3, 1.0, %v2850_v45 }
 0x61b   : > { %v2240_v31 = vmul.f32 %v2429_v55, %v2199_v29 }
 0x61c   : > { %v2205_v19 = vpop.f32.mrf.mxu3 }
 0x61f   : > { %v2120_v37 = vpop.permute.xlu1 %2119 }
 0x620   : > { %vm2121_vm4 = vcmp.eq.s32.totalorder %v2120_v37, %v3866_v56 }
 0x621   : > { %v2126_v13 = vsel %vm2121_vm4, %v2124_v14, 0.0  ;;  %vm2249_vm4 = vcmp.ge.s32.totalorder %v3866_v56, 20 }
 0x622   : > { %v2127_v4 = vadd.f32 %v2126_v13, %v2117_v51 }
 0x628   : > { %v2134_v34 = vpop.permute.xlu1 %2133 }
 0x629   : > { %v2136_v7 = vsel %vm2131_vm5, %v2134_v34, 0.0  ;;  %vm2250_vm5 = vcmp.lt.s32.totalorder %v3866_v56, 24 }
 0x62a   : > { %v2137_v3 = vadd.f32 %v2136_v7, %v2127_v4  ;;  %vm2251_vm7 = vmand %vm2249_vm4, %vm2250_vm5 }
 0x62b   : > { %v2431_v38 = vsel %vm2251_vm7, 1.0, %v2850_v45 }
 0x62c   : > { %v2254_v63 = vmul.f32 %v2431_v38, %v2205_v19 }
 0x630   : > { %v2144_v58 = vpop.permute.xlu1 %2143 }
 0x631   : > { %v2146_v20 = vsel %vm2141_vm6, %v2144_v58, 0.0  ;;  %vm2244_vm6 = vmand %vm2242_vm10, %vm2243_vm2 }
 0x632   : > { %v2147_v30 = vadd.f32 %v2146_v20, %v2137_v3  ;;  %v2430_v36 = vsel %vm2244_vm6, 1.0, %v2850_v45 }
 0x633   : > { %v2247_v15 = vmul.f32 %v2430_v36, %v2202_v1 }
 0x634   : > { %2425 = vmatmul.msk.f32.gmra.mxu3 %vm2148_vm1, %v2147_v30  ;;  %vm2221_vm1 = vcmp.ge.s32.totalorder %v3866_v56, 4 }
 0x635   : > { %vm2223_vm11 = vmand %vm2221_vm1, %vm2222_vm14  ;;  %vm2256_vm1 = vcmp.ge.s32.totalorder %v3866_v56, 24  ;;  %vm2257_vm14 = vcmp.lt.s32.totalorder %v3866_v56, 28 }
 0x636   : > { %v2427_v6 = vsel %vm2223_vm11, 1.0, %v2850_v45  ;;  %vm2258_vm8 = vmand %vm2256_vm1, %vm2257_vm14  ;;  %vm2263_vm11 = vcmp.ge.s32.totalorder %v3866_v56, 28  ;;  %v2757_v56 = vld [vmem:[%s4488_s9] ss:$0 sm:$0xff] }
 0x637   : > { %v2226_v8 = vmul.f32 %v2427_v6, %v2193_v12  ;;  %v2432_v47 = vsel %vm2258_vm8, 1.0, %v2850_v45  ;;  %vm2265_vm13 = vmand %vm2263_vm11, %vm2264_vm12 }
 0x638   : > { %v2433_v48 = vsel %vm2265_vm13, 1.0, %v2850_v45 }
 0x639   : > { %v2227_v23 = vadd.f32 %v2226_v8, %v2219_v18 }
 0x63b   : > { %v2234_v44 = vadd.f32 %v2233_v42, %v2227_v23 }
 0x63d   : > { %v2241_v62 = vadd.f32 %v2240_v31, %v2234_v44 }
 0x63f   : > { %v2248_v53 = vadd.f32 %v2247_v15, %v2241_v62 }
 0x641   : > { %v2255_v32 = vadd.f32 %v2254_v63, %v2248_v53 }
 0x686   : > { %v2208_v39 = vpop.f32.mrf.mxu3 }
 0x687   : > { %v2261_v0 = vmul.f32 %v2432_v47, %v2208_v39 }
 0x689   : > { %v2262_v17 = vadd.f32 %v2261_v0, %v2255_v32 }
 0x6b7   : > { %v2211_v10 = vpop.f32.mrf.mxu3 }
 0x6b8   : > { %v2268_v27 = vmul.f32 %v2433_v48, %v2211_v10 }
 0x6ba   : > { %v2269_v21 = vadd.f32 %v2268_v27, %v2262_v17 }
 0x6bc   : > { %2434 = vmatmul.msk.f32.vlgmr.msrb.gmra.mxu3 %vm429_vm0, %v2269_v21 }
 0x73f   : > { %v2298_v46 = vpop.f32.mrf.mxu3 }
 0x740   : > { %v2299_v16 = vadd.f32 %v2757_v56, %v2298_v46 }
 0x742   : > { %v2302_v9 = vadd.f32 %v2301_v61, %v2299_v16 }
 0x744   : > { %2303 = vst.msk [vmem:[%s408_s18] sm:$0xff] %vm429_vm0, %v2302_v9 }
 0x745 PF: > { %s20_s13 = sadd.s32 1, %s2775_s13  }
 0x746   : > { %p17_p4 = scmp.ge.s32.totalorder %s20_s13, 4  }
 0x748   :  { %19 = sbr.rel (!%p17_p4) target bundleno = 1 (0x1), region = 99 }

</bundles_post_ra>
